<compile_context>
chip_gen: v7x
topology: tpu7x:2x2x1
jax: 0.10.0
libtpu: 0.0.40
codegen_flags: <defaults>
</compile_context>

<pallas_src>
import math
import functools

import jax
import jax.numpy as jnp
from jax import lax
from jax.experimental import pallas as pl
from jax.experimental.pallas import tpu as pltpu

_EPS = 1e-5  # PyTorch LayerNorm default eps


def _layernorm(x, w, b):
    mu = jnp.mean(x, axis=-1, keepdims=True)
    var = jnp.mean((x - mu) ** 2, axis=-1, keepdims=True)
    return (x - mu) * lax.rsqrt(var + _EPS) * w + b


def _full_spec(shape):
    nd = len(shape)
    return pl.BlockSpec(shape, lambda b, _nd=nd: (0,) * _nd)


# ----------------- single fused kernel: embed + PE + encoder stack + head -----------------
def fused_kernel(num_heads, num_layers, pred_length,
                 other_ref, geo_ref, pe_ref,
                 w_in, b_in, ln_in_w, ln_in_b, w_geo, b_geo, ln_pe_w, ln_pe_b,
                 ln1_w, ln1_b, wq_r, bq_r, wk_r, bk_r, wv_r, bv_r, wo_r, bo,
                 ln2_w, ln2_b, w1, b1, w2, b2,
                 hw1, hb1, hln_w, hln_b, hw2, hb2,
                 out_ref, h_scr):
    S, D = h_scr.shape
    hd = D // num_heads
    scale = 1.0 / math.sqrt(hd)

    # ---- input / geo embedding + positional encoding ----
    other = other_ref[0]                                   # (S, input_dim)
    geo = geo_ref[0]                                       # (S, 2)
    x_emb = jnp.dot(other, w_in[...], preferred_element_type=jnp.float32) + b_in[...]
    x_emb = _layernorm(x_emb, ln_in_w[...], ln_in_b[...])                 # input_norm
    g_emb = jnp.dot(geo, w_geo[...], preferred_element_type=jnp.float32) + b_geo[...]
    comb = jnp.concatenate([x_emb, g_emb], axis=-1) + pe_ref[...]         # (S, d_eff)
    h_scr[...] = _layernorm(comb, ln_pe_w[...], ln_pe_b[...])             # PE norm
    # dropout: identity in eval mode

    # ---- transformer encoder layers (all layers share deep-copied weights) ----
    def layer_body(_, carry):
        x = h_scr[...]                                      # (S, D)
        # --- self-attention block (norm_first) ---
        xn = _layernorm(x, ln1_w[...], ln1_b[...])
        xn_b = jnp.broadcast_to(xn, (num_heads, S, D))      # tiny; batched-head LHS

        q = lax.dot_general(xn_b, wq_r[...], (((2,), (1,)), ((0,), (0,))),
                            preferred_element_type=jnp.float32)           # (H, S, hd)
        q = (q + bq_r[...]) * scale
        k = lax.dot_general(xn_b, wk_r[...], (((2,), (1,)), ((0,), (0,))),
                            preferred_element_type=jnp.float32) + bk_r[...]
        v = lax.dot_general(xn_b, wv_r[...], (((2,), (1,)), ((0,), (0,))),
                            preferred_element_type=jnp.float32) + bv_r[...]

        s = lax.dot_general(q, k, (((2,), (2,)), ((0,), (0,))),
                            preferred_element_type=jnp.float32)           # (H, S, S)
        s = s - jnp.max(s, axis=-1, keepdims=True)
        p = jnp.exp(s)
        p = p * pl.reciprocal(jnp.sum(p, axis=-1, keepdims=True), approx=True)

        o = lax.dot_general(p, v, (((2,), (1,)), ((0,), (0,))),
                            preferred_element_type=jnp.float32)           # (H, S, hd)
        proj = lax.dot_general(o, wo_r[...], (((2,), (1,)), ((0,), (0,))),
                               preferred_element_type=jnp.float32)        # (H, S, D)
        attn = proj[0]
        for hh in range(1, num_heads):
            attn = attn + proj[hh]
        attn = attn + bo[...]
        x = x + attn                                         # residual (dropout = identity)

        # --- feed-forward block (norm_first) ---
        xn2 = _layernorm(x, ln2_w[...], ln2_b[...])
        hmid = jnp.maximum(
            jnp.dot(xn2, w1[...], preferred_element_type=jnp.float32) + b1[...], 0.0)
        ff = jnp.dot(hmid, w2[...], preferred_element_type=jnp.float32) + b2[...]
        h_scr[...] = x + ff
        return carry

    lax.fori_loop(0, num_layers, layer_body, 0)

    # ---- prediction head on the last pred_length positions (VMEM-resident slice) ----
    tail = h_scr[pl.ds(S - pred_length, pred_length), :]                   # (P, D)
    th = jnp.maximum(
        jnp.dot(tail, hw1[...], preferred_element_type=jnp.float32) + hb1[...], 0.0)
    th = _layernorm(th, hln_w[...], hln_b[...])
    o_head = jnp.dot(th, hw2[...], preferred_element_type=jnp.float32) + hb2[...]  # (P, 1)
    out_ref[0] = o_head


# ----------------- parameters / buffers (deterministic, synthetic) -----------------
def _make_pe(max_len, d):
    position = jnp.arange(max_len, dtype=jnp.float32)[:, None]
    div_term = jnp.exp(jnp.arange(0, d, 2, dtype=jnp.float32) * (-math.log(10000.0) / d))
    ang = position * div_term
    pe = jnp.zeros((max_len, d), jnp.float32)
    pe = pe.at[:, 0::2].set(jnp.sin(ang))
    pe = pe.at[:, 1::2].set(jnp.cos(ang))
    return pe


def init_params(key, *, input_dim, model_dim, dim_feedforward, max_len=5000):
    d_geo = model_dim // 4
    d_eff = model_dim + d_geo
    d_half = model_dim // 2

    def linear(k, fin, fout):
        kw, kb = jax.random.split(k)
        bound = 1.0 / math.sqrt(fin)
        w = jax.random.uniform(kw, (fin, fout), jnp.float32, -bound, bound)
        b = jax.random.uniform(kb, (1, fout), jnp.float32, -bound, bound)
        return w, b

    ks = list(jax.random.split(key, 10))
    p = {}
    p["w_in"], p["b_in"] = linear(ks[0], input_dim, model_dim)
    p["ln_in_w"] = jnp.ones((1, model_dim), jnp.float32)
    p["ln_in_b"] = jnp.zeros((1, model_dim), jnp.float32)
    p["w_geo"], p["b_geo"] = linear(ks[1], 2, d_geo)
    p["ln_pe_w"] = jnp.ones((1, d_eff), jnp.float32)
    p["ln_pe_b"] = jnp.zeros((1, d_eff), jnp.float32)
    p["pe"] = _make_pe(max_len, d_eff)

    # nn.TransformerEncoder deep-copies one layer -> all layers share identical weights.
    lyr = {}
    lyr["ln1_w"] = jnp.ones((1, d_eff), jnp.float32)
    lyr["ln1_b"] = jnp.zeros((1, d_eff), jnp.float32)
    lyr["wq"], lyr["bq"] = linear(ks[2], d_eff, d_eff)
    lyr["wk"], lyr["bk"] = linear(ks[3], d_eff, d_eff)
    lyr["wv"], lyr["bv"] = linear(ks[4], d_eff, d_eff)
    lyr["wo"], lyr["bo"] = linear(ks[5], d_eff, d_eff)
    lyr["ln2_w"] = jnp.ones((1, d_eff), jnp.float32)
    lyr["ln2_b"] = jnp.zeros((1, d_eff), jnp.float32)
    lyr["w1"], lyr["b1"] = linear(ks[6], d_eff, dim_feedforward)
    lyr["w2"], lyr["b2"] = linear(ks[7], dim_feedforward, d_eff)
    p["layer"] = lyr

    head = {}
    head["w1"], head["b1"] = linear(ks[8], d_eff, d_half)
    head["ln_w"] = jnp.ones((1, d_half), jnp.float32)
    head["ln_b"] = jnp.zeros((1, d_half), jnp.float32)
    head["w2"], head["b2"] = linear(ks[9], d_half, 1)
    p["head"] = head
    return p


# ----------------- full forward: one fused pallas_call -----------------
def spatio_temporal_transformer(x, params, *, num_heads, num_layers, pred_length):
    B, S, _ = x.shape
    geo = x[:, :, 1:3]
    other = jnp.concatenate([x[:, :, :1], x[:, :, 3:]], axis=-1)
    Fo = other.shape[-1]

    lyr = params["layer"]
    head = params["head"]
    D = params["pe"].shape[-1]                     # d_eff
    hd = D // num_heads
    pe = params["pe"][:S]                          # pe[:x.size(1)] (broadcast over batch)

    # Host-side weight restructuring (one-time, folds under jit): split attention weights
    # per head so the kernel uses batched matmuls with no in-kernel lane reshapes.
    def split_w(w):   # (D, D) -> (H, D, hd)
        return w.reshape(D, num_heads, hd).transpose(1, 0, 2)

    def split_b(b):   # (1, D) -> (H, 1, hd)
        return b.reshape(num_heads, hd)[:, None, :]

    args = (
        other, geo, pe,
        params["w_in"], params["b_in"], params["ln_in_w"], params["ln_in_b"],
        params["w_geo"], params["b_geo"], params["ln_pe_w"], params["ln_pe_b"],
        lyr["ln1_w"], lyr["ln1_b"],
        split_w(lyr["wq"]), split_b(lyr["bq"]),
        split_w(lyr["wk"]), split_b(lyr["bk"]),
        split_w(lyr["wv"]), split_b(lyr["bv"]),
        lyr["wo"].reshape(num_heads, hd, D), lyr["bo"],
        lyr["ln2_w"], lyr["ln2_b"],
        lyr["w1"], lyr["b1"], lyr["w2"], lyr["b2"],
        head["w1"], head["b1"], head["ln_w"], head["ln_b"], head["w2"], head["b2"],
    )

    in_specs = [pl.BlockSpec((1, S, Fo), lambda b: (b, 0, 0)),
                pl.BlockSpec((1, S, 2), lambda b: (b, 0, 0))] + \
               [_full_spec(a.shape) for a in args[2:]]

    kernel = functools.partial(fused_kernel, num_heads, num_layers, pred_length)

    out = pl.pallas_call(
        kernel,
        out_shape=jax.ShapeDtypeStruct((B, pred_length, 1), jnp.float32),
        grid=(B,),
        in_specs=in_specs,
        out_specs=pl.BlockSpec((1, pred_length, 1), lambda b: (b, 0, 0)),
        scratch_shapes=[pltpu.VMEM((S, D), jnp.float32)],
        compiler_params=pltpu.CompilerParams(dimension_semantics=("parallel",)),
    )(*args)
    return out[..., 0]                              # squeeze(-1)


if __name__ == "__main__":
    # small but consistent config
    input_dim = 5          # "other" features; raw x has input_dim + 2 = 7 columns
    model_dim = 32
    num_heads = 4
    num_layers = 2
    pred_length = 5
    dim_feedforward = 2048  # nn.TransformerEncoderLayer default
    B, S = 2, 8

    key = jax.random.PRNGKey(0)
    kx, kp = jax.random.split(key)
    x = jax.random.normal(kx, (B, S, input_dim + 2), jnp.float32)
    params = init_params(kp, input_dim=input_dim, model_dim=model_dim,
                         dim_feedforward=dim_feedforward)

    fwd = jax.jit(functools.partial(spatio_temporal_transformer,
                                    num_heads=num_heads, num_layers=num_layers,
                                    pred_length=pred_length))
    out = jax.block_until_ready(fwd(x, params))
    assert out.shape == (B, pred_length), out.shape
    assert bool(jnp.all(jnp.isfinite(out)))
    print("KERNEL_OK")
</pallas_src>

<mosaic_0001>
module attributes {stable_mosaic.version = 11 : i64} {
  func.func @fused_kernel(%arg0: i32, %arg1: memref<1x8x5xf32, #tpu.memory_space<vmem>>, %arg2: memref<1x8x2xf32, #tpu.memory_space<vmem>>, %arg3: memref<8x40xf32, #tpu.memory_space<vmem>>, %arg4: memref<5x32xf32, #tpu.memory_space<vmem>>, %arg5: memref<1x32xf32, #tpu.memory_space<vmem>>, %arg6: memref<1x32xf32, #tpu.memory_space<vmem>>, %arg7: memref<1x32xf32, #tpu.memory_space<vmem>>, %arg8: memref<2x8xf32, #tpu.memory_space<vmem>>, %arg9: memref<1x8xf32, #tpu.memory_space<vmem>>, %arg10: memref<1x40xf32, #tpu.memory_space<vmem>>, %arg11: memref<1x40xf32, #tpu.memory_space<vmem>>, %arg12: memref<1x40xf32, #tpu.memory_space<vmem>>, %arg13: memref<1x40xf32, #tpu.memory_space<vmem>>, %arg14: memref<4x40x10xf32, #tpu.memory_space<vmem>>, %arg15: memref<4x1x10xf32, #tpu.memory_space<vmem>>, %arg16: memref<4x40x10xf32, #tpu.memory_space<vmem>>, %arg17: memref<4x1x10xf32, #tpu.memory_space<vmem>>, %arg18: memref<4x40x10xf32, #tpu.memory_space<vmem>>, %arg19: memref<4x1x10xf32, #tpu.memory_space<vmem>>, %arg20: memref<4x10x40xf32, #tpu.memory_space<vmem>>, %arg21: memref<1x40xf32, #tpu.memory_space<vmem>>, %arg22: memref<1x40xf32, #tpu.memory_space<vmem>>, %arg23: memref<1x40xf32, #tpu.memory_space<vmem>>, %arg24: memref<40x2048xf32, #tpu.memory_space<vmem>>, %arg25: memref<1x2048xf32, #tpu.memory_space<vmem>>, %arg26: memref<2048x40xf32, #tpu.memory_space<vmem>>, %arg27: memref<1x40xf32, #tpu.memory_space<vmem>>, %arg28: memref<40x16xf32, #tpu.memory_space<vmem>>, %arg29: memref<1x16xf32, #tpu.memory_space<vmem>>, %arg30: memref<1x16xf32, #tpu.memory_space<vmem>>, %arg31: memref<1x16xf32, #tpu.memory_space<vmem>>, %arg32: memref<16x1xf32, #tpu.memory_space<vmem>>, %arg33: memref<1x1xf32, #tpu.memory_space<vmem>>, %arg34: memref<1x5x1xf32, #tpu.memory_space<vmem>>, %arg35: memref<8x40xf32, #tpu.memory_space<vmem>>) attributes {dimension_semantics = [#tpu.dimension_semantics<parallel>], iteration_bounds = array<i64: 2>, scalar_prefetch = 0 : i64, scratch_operands = 1 : i64, tpu.core_type = #tpu.core_type<tc>, window_params = [{transform_indices = @transform_0, window_bounds = array<i64: 1, 8, 5>}, {transform_indices = @transform_1, window_bounds = array<i64: 1, 8, 2>}, {pipeline_mode = #tpu.pipeline_mode<synchronous>, transform_indices = @transform_2, window_bounds = array<i64: 8, 40>}, {pipeline_mode = #tpu.pipeline_mode<synchronous>, transform_indices = @transform_3, window_bounds = array<i64: 5, 32>}, {pipeline_mode = #tpu.pipeline_mode<synchronous>, transform_indices = @transform_4, window_bounds = array<i64: 1, 32>}, {pipeline_mode = #tpu.pipeline_mode<synchronous>, transform_indices = @transform_5, window_bounds = array<i64: 1, 32>}, {pipeline_mode = #tpu.pipeline_mode<synchronous>, transform_indices = @transform_6, window_bounds = array<i64: 1, 32>}, {pipeline_mode = #tpu.pipeline_mode<synchronous>, transform_indices = @transform_7, window_bounds = array<i64: 2, 8>}, {pipeline_mode = #tpu.pipeline_mode<synchronous>, transform_indices = @transform_8, window_bounds = array<i64: 1, 8>}, {pipeline_mode = #tpu.pipeline_mode<synchronous>, transform_indices = @transform_9, window_bounds = array<i64: 1, 40>}, {pipeline_mode = #tpu.pipeline_mode<synchronous>, transform_indices = @transform_10, window_bounds = array<i64: 1, 40>}, {pipeline_mode = #tpu.pipeline_mode<synchronous>, transform_indices = @transform_11, window_bounds = array<i64: 1, 40>}, {pipeline_mode = #tpu.pipeline_mode<synchronous>, transform_indices = @transform_12, window_bounds = array<i64: 1, 40>}, {pipeline_mode = #tpu.pipeline_mode<synchronous>, transform_indices = @transform_13, window_bounds = array<i64: 4, 40, 10>}, {pipeline_mode = #tpu.pipeline_mode<synchronous>, transform_indices = @transform_14, window_bounds = array<i64: 4, 1, 10>}, {pipeline_mode = #tpu.pipeline_mode<synchronous>, transform_indices = @transform_15, window_bounds = array<i64: 4, 40, 10>}, {pipeline_mode = #tpu.pipeline_mode<synchronous>, transform_indices = @transform_16, window_bounds = array<i64: 4, 1, 10>}, {pipeline_mode = #tpu.pipeline_mode<synchronous>, transform_indices = @transform_17, window_bounds = array<i64: 4, 40, 10>}, {pipeline_mode = #tpu.pipeline_mode<synchronous>, transform_indices = @transform_18, window_bounds = array<i64: 4, 1, 10>}, {pipeline_mode = #tpu.pipeline_mode<synchronous>, transform_indices = @transform_19, window_bounds = array<i64: 4, 10, 40>}, {pipeline_mode = #tpu.pipeline_mode<synchronous>, transform_indices = @transform_20, window_bounds = array<i64: 1, 40>}, {pipeline_mode = #tpu.pipeline_mode<synchronous>, transform_indices = @transform_21, window_bounds = array<i64: 1, 40>}, {pipeline_mode = #tpu.pipeline_mode<synchronous>, transform_indices = @transform_22, window_bounds = array<i64: 1, 40>}, {pipeline_mode = #tpu.pipeline_mode<synchronous>, transform_indices = @transform_23, window_bounds = array<i64: 40, 2048>}, {pipeline_mode = #tpu.pipeline_mode<synchronous>, transform_indices = @transform_24, window_bounds = array<i64: 1, 2048>}, {pipeline_mode = #tpu.pipeline_mode<synchronous>, transform_indices = @transform_25, window_bounds = array<i64: 2048, 40>}, {pipeline_mode = #tpu.pipeline_mode<synchronous>, transform_indices = @transform_26, window_bounds = array<i64: 1, 40>}, {pipeline_mode = #tpu.pipeline_mode<synchronous>, transform_indices = @transform_27, window_bounds = array<i64: 40, 16>}, {pipeline_mode = #tpu.pipeline_mode<synchronous>, transform_indices = @transform_28, window_bounds = array<i64: 1, 16>}, {pipeline_mode = #tpu.pipeline_mode<synchronous>, transform_indices = @transform_29, window_bounds = array<i64: 1, 16>}, {pipeline_mode = #tpu.pipeline_mode<synchronous>, transform_indices = @transform_30, window_bounds = array<i64: 1, 16>}, {pipeline_mode = #tpu.pipeline_mode<synchronous>, transform_indices = @transform_31, window_bounds = array<i64: 16, 1>}, {pipeline_mode = #tpu.pipeline_mode<synchronous>, transform_indices = @transform_32, window_bounds = array<i64: 1, 1>}, {transform_indices = @transform_33, window_bounds = array<i64: 1, 5, 1>}]} {
    %c0 = arith.constant 0 : index
    %c0_0 = arith.constant 0 : index
    %c0_1 = arith.constant 0 : index
    %0 = vector.load %arg1[%c0, %c0_0, %c0_1] : memref<1x8x5xf32, #tpu.memory_space<vmem>>, vector<1x8x5xf32>
    %1 = vector.shape_cast %0 : vector<1x8x5xf32> to vector<8x5xf32>
    %c0_2 = arith.constant 0 : index
    %c0_3 = arith.constant 0 : index
    %c0_4 = arith.constant 0 : index
    %2 = vector.load %arg2[%c0_2, %c0_3, %c0_4] : memref<1x8x2xf32, #tpu.memory_space<vmem>>, vector<1x8x2xf32>
    %3 = vector.shape_cast %2 : vector<1x8x2xf32> to vector<8x2xf32>
    %c0_5 = arith.constant 0 : index
    %c0_6 = arith.constant 0 : index
    %4 = vector.load %arg4[%c0_5, %c0_6] : memref<5x32xf32, #tpu.memory_space<vmem>>, vector<5x32xf32>
    %cst = arith.constant dense<0.000000e+00> : vector<8x32xf32>
    %5 = tpu.matmul %1, %4, %cst {dimension_numbers = #tpu.dot_dimension_numbers<[1], [0], [0], [1], [0, 0, 1, 1], [], []>} : vector<8x5xf32>, vector<5x32xf32>, vector<8x32xf32> -> vector<8x32xf32>
    %c0_7 = arith.constant 0 : index
    %c0_8 = arith.constant 0 : index
    %6 = vector.load %arg5[%c0_7, %c0_8] : memref<1x32xf32, #tpu.memory_space<vmem>>, vector<1x32xf32>
    %7 = vector.broadcast %6 : vector<1x32xf32> to vector<8x32xf32>
    %8 = arith.addf %5, %7 : vector<8x32xf32>
    %c0_9 = arith.constant 0 : index
    %c0_10 = arith.constant 0 : index
    %9 = vector.load %arg6[%c0_9, %c0_10] : memref<1x32xf32, #tpu.memory_space<vmem>>, vector<1x32xf32>
    %c0_11 = arith.constant 0 : index
    %c0_12 = arith.constant 0 : index
    %10 = vector.load %arg7[%c0_11, %c0_12] : memref<1x32xf32, #tpu.memory_space<vmem>>, vector<1x32xf32>
    %cst_13 = arith.constant dense<0.000000e+00> : vector<8xf32>
    %11 = vector.multi_reduction <add>, %8, %cst_13 [1] : vector<8x32xf32> to vector<8xf32>
    %12 = vector.shape_cast %11 : vector<8xf32> to vector<8x1xf32>
    %cst_14 = arith.constant 3.200000e+01 : f32
    %13 = vector.broadcast %cst_14 : f32 to vector<8x1xf32>
    %14 = arith.divf %12, %13 : vector<8x1xf32>
    %15 = vector.broadcast %14 : vector<8x1xf32> to vector<8x32xf32>
    %16 = arith.subf %8, %15 : vector<8x32xf32>
    %17 = arith.mulf %16, %16 : vector<8x32xf32>
    %cst_15 = arith.constant dense<0.000000e+00> : vector<8xf32>
    %18 = vector.multi_reduction <add>, %17, %cst_15 [1] : vector<8x32xf32> to vector<8xf32>
    %19 = vector.shape_cast %18 : vector<8xf32> to vector<8x1xf32>
    %cst_16 = arith.constant 3.200000e+01 : f32
    %20 = vector.broadcast %cst_16 : f32 to vector<8x1xf32>
    %21 = arith.divf %19, %20 : vector<8x1xf32>
    %22 = vector.broadcast %14 : vector<8x1xf32> to vector<8x32xf32>
    %23 = arith.subf %8, %22 : vector<8x32xf32>
    %cst_17 = arith.constant 9.99999974E-6 : f32
    %24 = vector.broadcast %cst_17 : f32 to vector<8x1xf32>
    %25 = arith.addf %21, %24 : vector<8x1xf32>
    %26 = math.rsqrt %25 : vector<8x1xf32>
    %27 = vector.broadcast %26 : vector<8x1xf32> to vector<8x32xf32>
    %28 = arith.mulf %23, %27 : vector<8x32xf32>
    %29 = vector.broadcast %9 : vector<1x32xf32> to vector<8x32xf32>
    %30 = arith.mulf %28, %29 : vector<8x32xf32>
    %31 = vector.broadcast %10 : vector<1x32xf32> to vector<8x32xf32>
    %32 = arith.addf %30, %31 : vector<8x32xf32>
    %c0_18 = arith.constant 0 : index
    %c0_19 = arith.constant 0 : index
    %33 = vector.load %arg8[%c0_18, %c0_19] : memref<2x8xf32, #tpu.memory_space<vmem>>, vector<2x8xf32>
    %cst_20 = arith.constant dense<0.000000e+00> : vector<8x8xf32>
    %34 = tpu.matmul %3, %33, %cst_20 {dimension_numbers = #tpu.dot_dimension_numbers<[1], [0], [0], [1], [0, 0, 1, 1], [], []>} : vector<8x2xf32>, vector<2x8xf32>, vector<8x8xf32> -> vector<8x8xf32>
    %c0_21 = arith.constant 0 : index
    %c0_22 = arith.constant 0 : index
    %35 = vector.load %arg9[%c0_21, %c0_22] : memref<1x8xf32, #tpu.memory_space<vmem>>, vector<1x8xf32>
    %36 = vector.broadcast %35 : vector<1x8xf32> to vector<8x8xf32>
    %37 = arith.addf %34, %36 : vector<8x8xf32>
    %38 = tpu.concatenate %32, %37 in 1 : vector<8x32xf32>, vector<8x8xf32> -> vector<8x40xf32>
    %c0_23 = arith.constant 0 : index
    %c0_24 = arith.constant 0 : index
    %39 = vector.load %arg3[%c0_23, %c0_24] : memref<8x40xf32, #tpu.memory_space<vmem>>, vector<8x40xf32>
    %40 = arith.addf %38, %39 : vector<8x40xf32>
    %c0_25 = arith.constant 0 : index
    %c0_26 = arith.constant 0 : index
    %41 = vector.load %arg10[%c0_25, %c0_26] : memref<1x40xf32, #tpu.memory_space<vmem>>, vector<1x40xf32>
    %c0_27 = arith.constant 0 : index
    %c0_28 = arith.constant 0 : index
    %42 = vector.load %arg11[%c0_27, %c0_28] : memref<1x40xf32, #tpu.memory_space<vmem>>, vector<1x40xf32>
    %cst_29 = arith.constant dense<0.000000e+00> : vector<8xf32>
    %43 = vector.multi_reduction <add>, %40, %cst_29 [1] : vector<8x40xf32> to vector<8xf32>
    %44 = vector.shape_cast %43 : vector<8xf32> to vector<8x1xf32>
    %cst_30 = arith.constant 4.000000e+01 : f32
    %45 = vector.broadcast %cst_30 : f32 to vector<8x1xf32>
    %46 = arith.divf %44, %45 : vector<8x1xf32>
    %47 = vector.broadcast %46 : vector<8x1xf32> to vector<8x40xf32>
    %48 = arith.subf %40, %47 : vector<8x40xf32>
    %49 = arith.mulf %48, %48 : vector<8x40xf32>
    %cst_31 = arith.constant dense<0.000000e+00> : vector<8xf32>
    %50 = vector.multi_reduction <add>, %49, %cst_31 [1] : vector<8x40xf32> to vector<8xf32>
    %51 = vector.shape_cast %50 : vector<8xf32> to vector<8x1xf32>
    %cst_32 = arith.constant 4.000000e+01 : f32
    %52 = vector.broadcast %cst_32 : f32 to vector<8x1xf32>
    %53 = arith.divf %51, %52 : vector<8x1xf32>
    %54 = vector.broadcast %46 : vector<8x1xf32> to vector<8x40xf32>
    %55 = arith.subf %40, %54 : vector<8x40xf32>
    %cst_33 = arith.constant 9.99999974E-6 : f32
    %56 = vector.broadcast %cst_33 : f32 to vector<8x1xf32>
    %57 = arith.addf %53, %56 : vector<8x1xf32>
    %58 = math.rsqrt %57 : vector<8x1xf32>
    %59 = vector.broadcast %58 : vector<8x1xf32> to vector<8x40xf32>
    %60 = arith.mulf %55, %59 : vector<8x40xf32>
    %61 = vector.broadcast %41 : vector<1x40xf32> to vector<8x40xf32>
    %62 = arith.mulf %60, %61 : vector<8x40xf32>
    %63 = vector.broadcast %42 : vector<1x40xf32> to vector<8x40xf32>
    %64 = arith.addf %62, %63 : vector<8x40xf32>
    %c0_34 = arith.constant 0 : index
    %c0_35 = arith.constant 0 : index
    %65 = vector.load %arg35[%c0_34, %c0_35] : memref<8x40xf32, #tpu.memory_space<vmem>>, vector<8x40xf32>
    tpu.vector_store %arg35[%c0_34, %c0_35], %64 {strides = array<i32>} : memref<8x40xf32, #tpu.memory_space<vmem>>, vector<8x40xf32>,
    %c0_i32 = arith.constant 0 : i32
    %c2_i32 = arith.constant 2 : i32
    %66 = arith.addi %c0_i32, %c2_i32 : i32
    %c1_i32 = arith.constant 1 : i32
    scf.for %arg36 = %c0_i32 to %66 step %c1_i32  : i32 {
      %c0_60 = arith.constant 0 : index
      %c0_61 = arith.constant 0 : index
      %107 = vector.load %arg35[%c0_60, %c0_61] : memref<8x40xf32, #tpu.memory_space<vmem>>, vector<8x40xf32>
      %c0_62 = arith.constant 0 : index
      %c0_63 = arith.constant 0 : index
      %108 = vector.load %arg12[%c0_62, %c0_63] : memref<1x40xf32, #tpu.memory_space<vmem>>, vector<1x40xf32>
      %c0_64 = arith.constant 0 : index
      %c0_65 = arith.constant 0 : index
      %109 = vector.load %arg13[%c0_64, %c0_65] : memref<1x40xf32, #tpu.memory_space<vmem>>, vector<1x40xf32>
      %cst_66 = arith.constant dense<0.000000e+00> : vector<8xf32>
      %110 = vector.multi_reduction <add>, %107, %cst_66 [1] : vector<8x40xf32> to vector<8xf32>
      %111 = vector.shape_cast %110 : vector<8xf32> to vector<8x1xf32>
      %cst_67 = arith.constant 4.000000e+01 : f32
      %112 = vector.broadcast %cst_67 : f32 to vector<8x1xf32>
      %113 = arith.divf %111, %112 : vector<8x1xf32>
      %114 = vector.broadcast %113 : vector<8x1xf32> to vector<8x40xf32>
      %115 = arith.subf %107, %114 : vector<8x40xf32>
      %116 = arith.mulf %115, %115 : vector<8x40xf32>
      %cst_68 = arith.constant dense<0.000000e+00> : vector<8xf32>
      %117 = vector.multi_reduction <add>, %116, %cst_68 [1] : vector<8x40xf32> to vector<8xf32>
      %118 = vector.shape_cast %117 : vector<8xf32> to vector<8x1xf32>
      %cst_69 = arith.constant 4.000000e+01 : f32
      %119 = vector.broadcast %cst_69 : f32 to vector<8x1xf32>
      %120 = arith.divf %118, %119 : vector<8x1xf32>
      %121 = vector.broadcast %113 : vector<8x1xf32> to vector<8x40xf32>
      %122 = arith.subf %107, %121 : vector<8x40xf32>
      %cst_70 = arith.constant 9.99999974E-6 : f32
      %123 = vector.broadcast %cst_70 : f32 to vector<8x1xf32>
      %124 = arith.addf %120, %123 : vector<8x1xf32>
      %125 = math.rsqrt %124 : vector<8x1xf32>
      %126 = vector.broadcast %125 : vector<8x1xf32> to vector<8x40xf32>
      %127 = arith.mulf %122, %126 : vector<8x40xf32>
      %128 = vector.broadcast %108 : vector<1x40xf32> to vector<8x40xf32>
      %129 = arith.mulf %127, %128 : vector<8x40xf32>
      %130 = vector.broadcast %109 : vector<1x40xf32> to vector<8x40xf32>
      %131 = arith.addf %129, %130 : vector<8x40xf32>
      %132 = vector.shape_cast %131 : vector<8x40xf32> to vector<1x8x40xf32>
      %133 = vector.broadcast %132 : vector<1x8x40xf32> to vector<4x8x40xf32>
      %c0_71 = arith.constant 0 : index
      %c0_72 = arith.constant 0 : index
      %c0_73 = arith.constant 0 : index
      %134 = vector.load %arg14[%c0_71, %c0_72, %c0_73] : memref<4x40x10xf32, #tpu.memory_space<vmem>>, vector<4x40x10xf32>
      %cst_74 = arith.constant dense<0.000000e+00> : vector<4x8x10xf32>
      %135 = tpu.matmul %133, %134, %cst_74 {dimension_numbers = #tpu.dot_dimension_numbers<[2], [1], [1], [2], [0, 0, 0, 1, 1, 2], [0], [0]>} : vector<4x8x40xf32>, vector<4x40x10xf32>, vector<4x8x10xf32> -> vector<4x8x10xf32>
      %c0_75 = arith.constant 0 : index
      %c0_76 = arith.constant 0 : index
      %c0_77 = arith.constant 0 : index
      %136 = vector.load %arg15[%c0_75, %c0_76, %c0_77] : memref<4x1x10xf32, #tpu.memory_space<vmem>>, vector<4x1x10xf32>
      %137 = vector.broadcast %136 : vector<4x1x10xf32> to vector<4x8x10xf32>
      %138 = arith.addf %135, %137 : vector<4x8x10xf32>
      %cst_78 = arith.constant 0.316227764 : f32
      %139 = vector.broadcast %cst_78 : f32 to vector<4x8x10xf32>
      %140 = arith.mulf %138, %139 : vector<4x8x10xf32>
      %c0_79 = arith.constant 0 : index
      %c0_80 = arith.constant 0 : index
      %c0_81 = arith.constant 0 : index
      %141 = vector.load %arg16[%c0_79, %c0_80, %c0_81] : memref<4x40x10xf32, #tpu.memory_space<vmem>>, vector<4x40x10xf32>
      %cst_82 = arith.constant dense<0.000000e+00> : vector<4x8x10xf32>
      %142 = tpu.matmul %133, %141, %cst_82 {dimension_numbers = #tpu.dot_dimension_numbers<[2], [1], [1], [2], [0, 0, 0, 1, 1, 2], [0], [0]>} : vector<4x8x40xf32>, vector<4x40x10xf32>, vector<4x8x10xf32> -> vector<4x8x10xf32>
      %c0_83 = arith.constant 0 : index
      %c0_84 = arith.constant 0 : index
      %c0_85 = arith.constant 0 : index
      %143 = vector.load %arg17[%c0_83, %c0_84, %c0_85] : memref<4x1x10xf32, #tpu.memory_space<vmem>>, vector<4x1x10xf32>
      %144 = vector.broadcast %143 : vector<4x1x10xf32> to vector<4x8x10xf32>
      %145 = arith.addf %142, %144 : vector<4x8x10xf32>
      %c0_86 = arith.constant 0 : index
      %c0_87 = arith.constant 0 : index
      %c0_88 = arith.constant 0 : index
      %146 = vector.load %arg18[%c0_86, %c0_87, %c0_88] : memref<4x40x10xf32, #tpu.memory_space<vmem>>, vector<4x40x10xf32>
      %cst_89 = arith.constant dense<0.000000e+00> : vector<4x8x10xf32>
      %147 = tpu.matmul %133, %146, %cst_89 {dimension_numbers = #tpu.dot_dimension_numbers<[2], [1], [1], [2], [0, 0, 0, 1, 1, 2], [0], [0]>} : vector<4x8x40xf32>, vector<4x40x10xf32>, vector<4x8x10xf32> -> vector<4x8x10xf32>
      %c0_90 = arith.constant 0 : index
      %c0_91 = arith.constant 0 : index
      %c0_92 = arith.constant 0 : index
      %148 = vector.load %arg19[%c0_90, %c0_91, %c0_92] : memref<4x1x10xf32, #tpu.memory_space<vmem>>, vector<4x1x10xf32>
      %149 = vector.broadcast %148 : vector<4x1x10xf32> to vector<4x8x10xf32>
      %150 = arith.addf %147, %149 : vector<4x8x10xf32>
      %cst_93 = arith.constant dense<0.000000e+00> : vector<4x8x8xf32>
      %151 = tpu.matmul %140, %145, %cst_93 {dimension_numbers = #tpu.dot_dimension_numbers<[2], [2], [1], [1], [0, 0, 0, 1, 1, 1], [0], [0]>} : vector<4x8x10xf32>, vector<4x8x10xf32>, vector<4x8x8xf32> -> vector<4x8x8xf32>
      %cst_94 = arith.constant dense<0xFF800000> : vector<4x8xf32>
      %152 = vector.multi_reduction <maximumf>, %151, %cst_94 [2] : vector<4x8x8xf32> to vector<4x8xf32>
      %153 = vector.shape_cast %152 : vector<4x8xf32> to vector<4x8x1xf32>
      %154 = vector.broadcast %153 : vector<4x8x1xf32> to vector<4x8x8xf32>
      %155 = arith.subf %151, %154 : vector<4x8x8xf32>
      %156 = math.exp %155 : vector<4x8x8xf32>
      %cst_95 = arith.constant dense<0.000000e+00> : vector<4x8xf32>
      %157 = vector.multi_reduction <add>, %156, %cst_95 [2] : vector<4x8x8xf32> to vector<4x8xf32>
      %158 = vector.shape_cast %157 : vector<4x8xf32> to vector<4x8x1xf32>
      %159 = tpu.reciprocal %158 {approx = true} : vector<4x8x1xf32> -> vector<4x8x1xf32>
      %160 = vector.broadcast %159 : vector<4x8x1xf32> to vector<4x8x8xf32>
      %161 = arith.mulf %156, %160 : vector<4x8x8xf32>
      %cst_96 = arith.constant dense<0.000000e+00> : vector<4x8x10xf32>
      %162 = tpu.matmul %161, %150, %cst_96 {dimension_numbers = #tpu.dot_dimension_numbers<[2], [1], [1], [2], [0, 0, 0, 1, 1, 2], [0], [0]>} : vector<4x8x8xf32>, vector<4x8x10xf32>, vector<4x8x10xf32> -> vector<4x8x10xf32>
      %c0_97 = arith.constant 0 : index
      %c0_98 = arith.constant 0 : index
      %c0_99 = arith.constant 0 : index
      %163 = vector.load %arg20[%c0_97, %c0_98, %c0_99] : memref<4x10x40xf32, #tpu.memory_space<vmem>>, vector<4x10x40xf32>
      %cst_100 = arith.constant dense<0.000000e+00> : vector<4x8x40xf32>
      %164 = tpu.matmul %162, %163, %cst_100 {dimension_numbers = #tpu.dot_dimension_numbers<[2], [1], [1], [2], [0, 0, 0, 1, 1, 2], [0], [0]>} : vector<4x8x10xf32>, vector<4x10x40xf32>, vector<4x8x40xf32> -> vector<4x8x40xf32>
      %165 = vector.extract_strided_slice %164 {offsets = [0, 0, 0], sizes = [1, 8, 40], strides = [1, 1, 1]} : vector<4x8x40xf32> to vector<1x8x40xf32>
      %166 = vector.shape_cast %165 : vector<1x8x40xf32> to vector<8x40xf32>
      %167 = vector.extract_strided_slice %164 {offsets = [1, 0, 0], sizes = [1, 8, 40], strides = [1, 1, 1]} : vector<4x8x40xf32> to vector<1x8x40xf32>
      %168 = vector.shape_cast %167 : vector<1x8x40xf32> to vector<8x40xf32>
      %169 = arith.addf %166, %168 : vector<8x40xf32>
      %170 = vector.extract_strided_slice %164 {offsets = [2, 0, 0], sizes = [1, 8, 40], strides = [1, 1, 1]} : vector<4x8x40xf32> to vector<1x8x40xf32>
      %171 = vector.shape_cast %170 : vector<1x8x40xf32> to vector<8x40xf32>
      %172 = arith.addf %169, %171 : vector<8x40xf32>
      %173 = vector.extract_strided_slice %164 {offsets = [3, 0, 0], sizes = [1, 8, 40], strides = [1, 1, 1]} : vector<4x8x40xf32> to vector<1x8x40xf32>
      %174 = vector.shape_cast %173 : vector<1x8x40xf32> to vector<8x40xf32>
      %175 = arith.addf %172, %174 : vector<8x40xf32>
      %c0_101 = arith.constant 0 : index
      %c0_102 = arith.constant 0 : index
      %176 = vector.load %arg21[%c0_101, %c0_102] : memref<1x40xf32, #tpu.memory_space<vmem>>, vector<1x40xf32>
      %177 = vector.broadcast %176 : vector<1x40xf32> to vector<8x40xf32>
      %178 = arith.addf %175, %177 : vector<8x40xf32>
      %179 = arith.addf %107, %178 : vector<8x40xf32>
      %c0_103 = arith.constant 0 : index
      %c0_104 = arith.constant 0 : index
      %180 = vector.load %arg22[%c0_103, %c0_104] : memref<1x40xf32, #tpu.memory_space<vmem>>, vector<1x40xf32>
      %c0_105 = arith.constant 0 : index
      %c0_106 = arith.constant 0 : index
      %181 = vector.load %arg23[%c0_105, %c0_106] : memref<1x40xf32, #tpu.memory_space<vmem>>, vector<1x40xf32>
      %cst_107 = arith.constant dense<0.000000e+00> : vector<8xf32>
      %182 = vector.multi_reduction <add>, %179, %cst_107 [1] : vector<8x40xf32> to vector<8xf32>
      %183 = vector.shape_cast %182 : vector<8xf32> to vector<8x1xf32>
      %cst_108 = arith.constant 4.000000e+01 : f32
      %184 = vector.broadcast %cst_108 : f32 to vector<8x1xf32>
      %185 = arith.divf %183, %184 : vector<8x1xf32>
      %186 = vector.broadcast %185 : vector<8x1xf32> to vector<8x40xf32>
      %187 = arith.subf %179, %186 : vector<8x40xf32>
      %188 = arith.mulf %187, %187 : vector<8x40xf32>
      %cst_109 = arith.constant dense<0.000000e+00> : vector<8xf32>
      %189 = vector.multi_reduction <add>, %188, %cst_109 [1] : vector<8x40xf32> to vector<8xf32>
      %190 = vector.shape_cast %189 : vector<8xf32> to vector<8x1xf32>
      %cst_110 = arith.constant 4.000000e+01 : f32
      %191 = vector.broadcast %cst_110 : f32 to vector<8x1xf32>
      %192 = arith.divf %190, %191 : vector<8x1xf32>
      %193 = vector.broadcast %185 : vector<8x1xf32> to vector<8x40xf32>
      %194 = arith.subf %179, %193 : vector<8x40xf32>
      %cst_111 = arith.constant 9.99999974E-6 : f32
      %195 = vector.broadcast %cst_111 : f32 to vector<8x1xf32>
      %196 = arith.addf %192, %195 : vector<8x1xf32>
      %197 = math.rsqrt %196 : vector<8x1xf32>
      %198 = vector.broadcast %197 : vector<8x1xf32> to vector<8x40xf32>
      %199 = arith.mulf %194, %198 : vector<8x40xf32>
      %200 = vector.broadcast %180 : vector<1x40xf32> to vector<8x40xf32>
      %201 = arith.mulf %199, %200 : vector<8x40xf32>
      %202 = vector.broadcast %181 : vector<1x40xf32> to vector<8x40xf32>
      %203 = arith.addf %201, %202 : vector<8x40xf32>
      %c0_112 = arith.constant 0 : index
      %c0_113 = arith.constant 0 : index
      %204 = vector.load %arg24[%c0_112, %c0_113] : memref<40x2048xf32, #tpu.memory_space<vmem>>, vector<40x2048xf32>
      %cst_114 = arith.constant dense<0.000000e+00> : vector<8x2048xf32>
      %205 = tpu.matmul %203, %204, %cst_114 {dimension_numbers = #tpu.dot_dimension_numbers<[1], [0], [0], [1], [0, 0, 1, 1], [], []>} : vector<8x40xf32>, vector<40x2048xf32>, vector<8x2048xf32> -> vector<8x2048xf32>
      %c0_115 = arith.constant 0 : index
      %c0_116 = arith.constant 0 : index
      %206 = vector.load %arg25[%c0_115, %c0_116] : memref<1x2048xf32, #tpu.memory_space<vmem>>, vector<1x2048xf32>
      %207 = vector.broadcast %206 : vector<1x2048xf32> to vector<8x2048xf32>
      %208 = arith.addf %205, %207 : vector<8x2048xf32>
      %cst_117 = arith.constant 0.000000e+00 : f32
      %209 = vector.broadcast %cst_117 : f32 to vector<8x2048xf32>
      %210 = arith.maximumf %208, %209 : vector<8x2048xf32>
      %c0_118 = arith.constant 0 : index
      %c0_119 = arith.constant 0 : index
      %211 = vector.load %arg26[%c0_118, %c0_119] : memref<2048x40xf32, #tpu.memory_space<vmem>>, vector<2048x40xf32>
      %cst_120 = arith.constant dense<0.000000e+00> : vector<8x40xf32>
      %212 = tpu.matmul %210, %211, %cst_120 {dimension_numbers = #tpu.dot_dimension_numbers<[1], [0], [0], [1], [0, 0, 1, 1], [], []>} : vector<8x2048xf32>, vector<2048x40xf32>, vector<8x40xf32> -> vector<8x40xf32>
      %c0_121 = arith.constant 0 : index
      %c0_122 = arith.constant 0 : index
      %213 = vector.load %arg27[%c0_121, %c0_122] : memref<1x40xf32, #tpu.memory_space<vmem>>, vector<1x40xf32>
      %214 = vector.broadcast %213 : vector<1x40xf32> to vector<8x40xf32>
      %215 = arith.addf %212, %214 : vector<8x40xf32>
      %216 = arith.addf %179, %215 : vector<8x40xf32>
      %c0_123 = arith.constant 0 : index
      %c0_124 = arith.constant 0 : index
      %217 = vector.load %arg35[%c0_123, %c0_124] : memref<8x40xf32, #tpu.memory_space<vmem>>, vector<8x40xf32>
      tpu.vector_store %arg35[%c0_123, %c0_124], %216 {strides = array<i32>} : memref<8x40xf32, #tpu.memory_space<vmem>>, vector<8x40xf32>,
    }
    %c3 = arith.constant 3 : index
    %c0_36 = arith.constant 0 : index
    %67 = vector.load %arg35[%c3, %c0_36] : memref<8x40xf32, #tpu.memory_space<vmem>>, vector<5x40xf32>
    %c0_37 = arith.constant 0 : index
    %c0_38 = arith.constant 0 : index
    %68 = vector.load %arg28[%c0_37, %c0_38] : memref<40x16xf32, #tpu.memory_space<vmem>>, vector<40x16xf32>
    %cst_39 = arith.constant dense<0.000000e+00> : vector<5x16xf32>
    %69 = tpu.matmul %67, %68, %cst_39 {dimension_numbers = #tpu.dot_dimension_numbers<[1], [0], [0], [1], [0, 0, 1, 1], [], []>} : vector<5x40xf32>, vector<40x16xf32>, vector<5x16xf32> -> vector<5x16xf32>
    %c0_40 = arith.constant 0 : index
    %c0_41 = arith.constant 0 : index
    %70 = vector.load %arg29[%c0_40, %c0_41] : memref<1x16xf32, #tpu.memory_space<vmem>>, vector<1x16xf32>
    %71 = vector.broadcast %70 : vector<1x16xf32> to vector<5x16xf32>
    %72 = arith.addf %69, %71 : vector<5x16xf32>
    %cst_42 = arith.constant 0.000000e+00 : f32
    %73 = vector.broadcast %cst_42 : f32 to vector<5x16xf32>
    %74 = arith.maximumf %72, %73 : vector<5x16xf32>
    %c0_43 = arith.constant 0 : index
    %c0_44 = arith.constant 0 : index
    %75 = vector.load %arg30[%c0_43, %c0_44] : memref<1x16xf32, #tpu.memory_space<vmem>>, vector<1x16xf32>
    %c0_45 = arith.constant 0 : index
    %c0_46 = arith.constant 0 : index
    %76 = vector.load %arg31[%c0_45, %c0_46] : memref<1x16xf32, #tpu.memory_space<vmem>>, vector<1x16xf32>
    %cst_47 = arith.constant dense<0.000000e+00> : vector<5xf32>
    %77 = vector.multi_reduction <add>, %74, %cst_47 [1] : vector<5x16xf32> to vector<5xf32>
    %78 = vector.shape_cast %77 : vector<5xf32> to vector<5x1xf32>
    %cst_48 = arith.constant 1.600000e+01 : f32
    %79 = vector.broadcast %cst_48 : f32 to vector<5x1xf32>
    %80 = arith.divf %78, %79 : vector<5x1xf32>
    %81 = vector.broadcast %80 : vector<5x1xf32> to vector<5x16xf32>
    %82 = arith.subf %74, %81 : vector<5x16xf32>
    %83 = arith.mulf %82, %82 : vector<5x16xf32>
    %cst_49 = arith.constant dense<0.000000e+00> : vector<5xf32>
    %84 = vector.multi_reduction <add>, %83, %cst_49 [1] : vector<5x16xf32> to vector<5xf32>
    %85 = vector.shape_cast %84 : vector<5xf32> to vector<5x1xf32>
    %cst_50 = arith.constant 1.600000e+01 : f32
    %86 = vector.broadcast %cst_50 : f32 to vector<5x1xf32>
    %87 = arith.divf %85, %86 : vector<5x1xf32>
    %88 = vector.broadcast %80 : vector<5x1xf32> to vector<5x16xf32>
    %89 = arith.subf %74, %88 : vector<5x16xf32>
    %cst_51 = arith.constant 9.99999974E-6 : f32
    %90 = vector.broadcast %cst_51 : f32 to vector<5x1xf32>
    %91 = arith.addf %87, %90 : vector<5x1xf32>
    %92 = math.rsqrt %91 : vector<5x1xf32>
    %93 = vector.broadcast %92 : vector<5x1xf32> to vector<5x16xf32>
    %94 = arith.mulf %89, %93 : vector<5x16xf32>
    %95 = vector.broadcast %75 : vector<1x16xf32> to vector<5x16xf32>
    %96 = arith.mulf %94, %95 : vector<5x16xf32>
    %97 = vector.broadcast %76 : vector<1x16xf32> to vector<5x16xf32>
    %98 = arith.addf %96, %97 : vector<5x16xf32>
    %c0_52 = arith.constant 0 : index
    %c0_53 = arith.constant 0 : index
    %99 = vector.load %arg32[%c0_52, %c0_53] : memref<16x1xf32, #tpu.memory_space<vmem>>, vector<16x1xf32>
    %cst_54 = arith.constant dense<0.000000e+00> : vector<5x1xf32>
    %100 = tpu.matmul %98, %99, %cst_54 {dimension_numbers = #tpu.dot_dimension_numbers<[1], [0], [0], [1], [0, 0, 1, 1], [], []>} : vector<5x16xf32>, vector<16x1xf32>, vector<5x1xf32> -> vector<5x1xf32>
    %c0_55 = arith.constant 0 : index
    %c0_56 = arith.constant 0 : index
    %101 = vector.load %arg33[%c0_55, %c0_56] : memref<1x1xf32, #tpu.memory_space<vmem>>, vector<1x1xf32>
    %102 = vector.broadcast %101 : vector<1x1xf32> to vector<5x1xf32>
    %103 = arith.addf %100, %102 : vector<5x1xf32>
    %c0_57 = arith.constant 0 : index
    %c0_58 = arith.constant 0 : index
    %c0_59 = arith.constant 0 : index
    %104 = vector.load %arg34[%c0_57, %c0_58, %c0_59] : memref<1x5x1xf32, #tpu.memory_space<vmem>>, vector<1x5x1xf32>
    %105 = vector.shape_cast %104 : vector<1x5x1xf32> to vector<5x1xf32>
    %106 = vector.shape_cast %103 : vector<5x1xf32> to vector<1x5x1xf32>
    tpu.vector_store %arg34[%c0_57, %c0_58, %c0_59], %106 {strides = array<i32>} : memref<1x5x1xf32, #tpu.memory_space<vmem>>, vector<1x5x1xf32>,
    return
  }
  func.func @transform_0(%arg0: i32) -> (i32, i32, i32) {
    %c0_i32 = arith.constant 0 : i32
    %c0_i32_0 = arith.constant 0 : i32
    %c0_i32_1 = arith.constant 0 : i32
    return %arg0, %c0_i32, %c0_i32_0 : i32, i32, i32
  }
  func.func @transform_1(%arg0: i32) -> (i32, i32, i32) {
    %c0_i32 = arith.constant 0 : i32
    %c0_i32_0 = arith.constant 0 : i32
    %c0_i32_1 = arith.constant 0 : i32
    return %arg0, %c0_i32, %c0_i32_0 : i32, i32, i32
  }
  func.func @transform_2(%arg0: i32) -> (i32, i32) {
    %c0_i32 = arith.constant 0 : i32
    %c0_i32_0 = arith.constant 0 : i32
    %c0_i32_1 = arith.constant 0 : i32
    return %c0_i32, %c0_i32_0 : i32, i32
  }
  func.func @transform_3(%arg0: i32) -> (i32, i32) {
    %c0_i32 = arith.constant 0 : i32
    %c0_i32_0 = arith.constant 0 : i32
    %c0_i32_1 = arith.constant 0 : i32
    return %c0_i32, %c0_i32_0 : i32, i32
  }
  func.func @transform_4(%arg0: i32) -> (i32, i32) {
    %c0_i32 = arith.constant 0 : i32
    %c0_i32_0 = arith.constant 0 : i32
    %c0_i32_1 = arith.constant 0 : i32
    return %c0_i32, %c0_i32_0 : i32, i32
  }
  func.func @transform_5(%arg0: i32) -> (i32, i32) {
    %c0_i32 = arith.constant 0 : i32
    %c0_i32_0 = arith.constant 0 : i32
    %c0_i32_1 = arith.constant 0 : i32
    return %c0_i32, %c0_i32_0 : i32, i32
  }
  func.func @transform_6(%arg0: i32) -> (i32, i32) {
    %c0_i32 = arith.constant 0 : i32
    %c0_i32_0 = arith.constant 0 : i32
    %c0_i32_1 = arith.constant 0 : i32
    return %c0_i32, %c0_i32_0 : i32, i32
  }
  func.func @transform_7(%arg0: i32) -> (i32, i32) {
    %c0_i32 = arith.constant 0 : i32
    %c0_i32_0 = arith.constant 0 : i32
    %c0_i32_1 = arith.constant 0 : i32
    return %c0_i32, %c0_i32_0 : i32, i32
  }
  func.func @transform_8(%arg0: i32) -> (i32, i32) {
    %c0_i32 = arith.constant 0 : i32
    %c0_i32_0 = arith.constant 0 : i32
    %c0_i32_1 = arith.constant 0 : i32
    return %c0_i32, %c0_i32_0 : i32, i32
  }
  func.func @transform_9(%arg0: i32) -> (i32, i32) {
    %c0_i32 = arith.constant 0 : i32
    %c0_i32_0 = arith.constant 0 : i32
    %c0_i32_1 = arith.constant 0 : i32
    return %c0_i32, %c0_i32_0 : i32, i32
  }
  func.func @transform_10(%arg0: i32) -> (i32, i32) {
    %c0_i32 = arith.constant 0 : i32
    %c0_i32_0 = arith.constant 0 : i32
    %c0_i32_1 = arith.constant 0 : i32
    return %c0_i32, %c0_i32_0 : i32, i32
  }
  func.func @transform_11(%arg0: i32) -> (i32, i32) {
    %c0_i32 = arith.constant 0 : i32
    %c0_i32_0 = arith.constant 0 : i32
    %c0_i32_1 = arith.constant 0 : i32
    return %c0_i32, %c0_i32_0 : i32, i32
  }
  func.func @transform_12(%arg0: i32) -> (i32, i32) {
    %c0_i32 = arith.constant 0 : i32
    %c0_i32_0 = arith.constant 0 : i32
    %c0_i32_1 = arith.constant 0 : i32
    return %c0_i32, %c0_i32_0 : i32, i32
  }
  func.func @transform_13(%arg0: i32) -> (i32, i32, i32) {
    %c0_i32 = arith.constant 0 : i32
    %c0_i32_0 = arith.constant 0 : i32
    %c0_i32_1 = arith.constant 0 : i32
    %c0_i32_2 = arith.constant 0 : i32
    return %c0_i32, %c0_i32_0, %c0_i32_1 : i32, i32, i32
  }
  func.func @transform_14(%arg0: i32) -> (i32, i32, i32) {
    %c0_i32 = arith.constant 0 : i32
    %c0_i32_0 = arith.constant 0 : i32
    %c0_i32_1 = arith.constant 0 : i32
    %c0_i32_2 = arith.constant 0 : i32
    return %c0_i32, %c0_i32_0, %c0_i32_1 : i32, i32, i32
  }
  func.func @transform_15(%arg0: i32) -> (i32, i32, i32) {
    %c0_i32 = arith.constant 0 : i32
    %c0_i32_0 = arith.constant 0 : i32
    %c0_i32_1 = arith.constant 0 : i32
    %c0_i32_2 = arith.constant 0 : i32
    return %c0_i32, %c0_i32_0, %c0_i32_1 : i32, i32, i32
  }
  func.func @transform_16(%arg0: i32) -> (i32, i32, i32) {
    %c0_i32 = arith.constant 0 : i32
    %c0_i32_0 = arith.constant 0 : i32
    %c0_i32_1 = arith.constant 0 : i32
    %c0_i32_2 = arith.constant 0 : i32
    return %c0_i32, %c0_i32_0, %c0_i32_1 : i32, i32, i32
  }
  func.func @transform_17(%arg0: i32) -> (i32, i32, i32) {
    %c0_i32 = arith.constant 0 : i32
    %c0_i32_0 = arith.constant 0 : i32
    %c0_i32_1 = arith.constant 0 : i32
    %c0_i32_2 = arith.constant 0 : i32
    return %c0_i32, %c0_i32_0, %c0_i32_1 : i32, i32, i32
  }
  func.func @transform_18(%arg0: i32) -> (i32, i32, i32) {
    %c0_i32 = arith.constant 0 : i32
    %c0_i32_0 = arith.constant 0 : i32
    %c0_i32_1 = arith.constant 0 : i32
    %c0_i32_2 = arith.constant 0 : i32
    return %c0_i32, %c0_i32_0, %c0_i32_1 : i32, i32, i32
  }
  func.func @transform_19(%arg0: i32) -> (i32, i32, i32) {
    %c0_i32 = arith.constant 0 : i32
    %c0_i32_0 = arith.constant 0 : i32
    %c0_i32_1 = arith.constant 0 : i32
    %c0_i32_2 = arith.constant 0 : i32
    return %c0_i32, %c0_i32_0, %c0_i32_1 : i32, i32, i32
  }
  func.func @transform_20(%arg0: i32) -> (i32, i32) {
    %c0_i32 = arith.constant 0 : i32
    %c0_i32_0 = arith.constant 0 : i32
    %c0_i32_1 = arith.constant 0 : i32
    return %c0_i32, %c0_i32_0 : i32, i32
  }
  func.func @transform_21(%arg0: i32) -> (i32, i32) {
    %c0_i32 = arith.constant 0 : i32
    %c0_i32_0 = arith.constant 0 : i32
    %c0_i32_1 = arith.constant 0 : i32
    return %c0_i32, %c0_i32_0 : i32, i32
  }
  func.func @transform_22(%arg0: i32) -> (i32, i32) {
    %c0_i32 = arith.constant 0 : i32
    %c0_i32_0 = arith.constant 0 : i32
    %c0_i32_1 = arith.constant 0 : i32
    return %c0_i32, %c0_i32_0 : i32, i32
  }
  func.func @transform_23(%arg0: i32) -> (i32, i32) {
    %c0_i32 = arith.constant 0 : i32
    %c0_i32_0 = arith.constant 0 : i32
    %c0_i32_1 = arith.constant 0 : i32
    return %c0_i32, %c0_i32_0 : i32, i32
  }
  func.func @transform_24(%arg0: i32) -> (i32, i32) {
    %c0_i32 = arith.constant 0 : i32
    %c0_i32_0 = arith.constant 0 : i32
    %c0_i32_1 = arith.constant 0 : i32
    return %c0_i32, %c0_i32_0 : i32, i32
  }
  func.func @transform_25(%arg0: i32) -> (i32, i32) {
    %c0_i32 = arith.constant 0 : i32
    %c0_i32_0 = arith.constant 0 : i32
    %c0_i32_1 = arith.constant 0 : i32
    return %c0_i32, %c0_i32_0 : i32, i32
  }
  func.func @transform_26(%arg0: i32) -> (i32, i32) {
    %c0_i32 = arith.constant 0 : i32
    %c0_i32_0 = arith.constant 0 : i32
    %c0_i32_1 = arith.constant 0 : i32
    return %c0_i32, %c0_i32_0 : i32, i32
  }
  func.func @transform_27(%arg0: i32) -> (i32, i32) {
    %c0_i32 = arith.constant 0 : i32
    %c0_i32_0 = arith.constant 0 : i32
    %c0_i32_1 = arith.constant 0 : i32
    return %c0_i32, %c0_i32_0 : i32, i32
  }
  func.func @transform_28(%arg0: i32) -> (i32, i32) {
    %c0_i32 = arith.constant 0 : i32
    %c0_i32_0 = arith.constant 0 : i32
    %c0_i32_1 = arith.constant 0 : i32
    return %c0_i32, %c0_i32_0 : i32, i32
  }
  func.func @transform_29(%arg0: i32) -> (i32, i32) {
    %c0_i32 = arith.constant 0 : i32
    %c0_i32_0 = arith.constant 0 : i32
    %c0_i32_1 = arith.constant 0 : i32
    return %c0_i32, %c0_i32_0 : i32, i32
  }
  func.func @transform_30(%arg0: i32) -> (i32, i32) {
    %c0_i32 = arith.constant 0 : i32
    %c0_i32_0 = arith.constant 0 : i32
    %c0_i32_1 = arith.constant 0 : i32
    return %c0_i32, %c0_i32_0 : i32, i32
  }
  func.func @transform_31(%arg0: i32) -> (i32, i32) {
    %c0_i32 = arith.constant 0 : i32
    %c0_i32_0 = arith.constant 0 : i32
    %c0_i32_1 = arith.constant 0 : i32
    return %c0_i32, %c0_i32_0 : i32, i32
  }
  func.func @transform_32(%arg0: i32) -> (i32, i32) {
    %c0_i32 = arith.constant 0 : i32
    %c0_i32_0 = arith.constant 0 : i32
    %c0_i32_1 = arith.constant 0 : i32
    return %c0_i32, %c0_i32_0 : i32, i32
  }
  func.func @transform_33(%arg0: i32) -> (i32, i32, i32) {
    %c0_i32 = arith.constant 0 : i32
    %c0_i32_0 = arith.constant 0 : i32
    %c0_i32_1 = arith.constant 0 : i32
    return %arg0, %c0_i32, %c0_i32_0 : i32, i32, i32
  }
}

</mosaic_0001>

<bundles_post_ra>
// kernel: spatio_temporal_transformer.1
= control target key start
LH: loop header
LB: loop body
LE: loop exit
PB: predicated region body
PF: predicated region fallthrough
CT: control target
= control target key end

     0   :  { %s6424_s6 = smov 1   ;;  %s6425_s10 = smov 2   ;;  %s7417_s0 = inlined_call_operand.smem [shape: u32[34], index: -1, kind: input, shape index: {}] }
   0x1   :  { %s6473_s5 = sld [smem:[%s7417_s0]]   ;;  %s6426_s14 = smov 3  }
   0x2   :  { %s6478_s9 = sld [smem:[%s7417_s0 + %s6424_s6]]   ;;  %s6427_s18 = smov 4  }
   0x3   :  { %s6483_s13 = sld [smem:[%s7417_s0 + %s6425_s10]]   ;;  %s6428_s22 = smov 5  }
   0x4   :  { %s6488_s17 = sld [smem:[%s7417_s0 + %s6426_s14]]   ;;  %s6429_s26 = smov 6  }
   0x5   :  { %s6493_s21 = sld [smem:[%s7417_s0 + %s6427_s18]]   ;;  %s6430_s30 = smov 7  }
   0x6   :  { %s6498_s25 = sld [smem:[%s7417_s0 + %s6428_s22]]   ;;  %s6431_s4 = smov 8  }
   0x7   :  { %s6503_s29 = sld [smem:[%s7417_s0 + %s6429_s26]]   ;;  %s6432_s10 = smov 9  }
   0x8   :  { %s6508_s3 = sld [smem:[%s7417_s0 + %s6430_s30]]   ;;  %s6433_s15 = smov 10  }
   0x9   :  { %s6513_s8 = sld [smem:[%s7417_s0 + %s6431_s4]]   ;;  %s6434_s20 = smov 11  }
   0xa   :  { %s6518_s14 = sld [smem:[%s7417_s0 + %s6432_s10]]   ;;  %s6435_s26 = smov 12  }
   0xb   :  { %s6523_s19 = sld [smem:[%s7417_s0 + %s6433_s15]]   ;;  %s6436_s1 = smov 13  }
   0xc   :  { %s6528_s24 = sld [smem:[%s7417_s0 + %s6434_s20]]   ;;  %s6437_s7 = smov 14  }
   0xd   :  { %s6533_s30 = sld [smem:[%s7417_s0 + %s6435_s26]]   ;;  %s6438_s15 = smov 15  }
   0xe   :  { %s6538_s6 = sld [smem:[%s7417_s0 + %s6436_s1]]   ;;  %s6439_s22 = smov 16  }
   0xf   :  { %s6543_s12 = sld [smem:[%s7417_s0 + %s6437_s7]]   ;;  %s6440_s28 = smov 17  }
  0x10   :  { %s6548_s20 = sld [smem:[%s7417_s0 + %s6438_s15]]   ;;  %s6441_s7 = smov 18  }
  0x11   :  { %s6553_s27 = sld [smem:[%s7417_s0 + %s6439_s22]]   ;;  %s6442_s15 = smov 19  }
  0x12   :  { %s6558_s4 = sld [smem:[%s7417_s0 + %s6440_s28]]   ;;  %s6443_s22 = smov 20  }
  0x13   :  { %s6444_s28 = smov 21   ;;  %s6456_s1 = smov 33  }
  0x15   :  { %7428 = sst [smem:[#allocation4_spill]] %s6543_s12 }
  0x16   :  { %7429 = sst [smem:[#allocation5_spill]] %s6548_s20 }
  0x17   :  { %7430 = sst [smem:[#allocation6_spill]] %s6553_s27 }
  0x18   :  { %7431 = sst [smem:[#allocation7_spill]] %s6558_s4 }
  0x19   :  { %s6563_s12 = sld [smem:[%s7417_s0 + %s6441_s7]]   ;;  %s6445_s7 = smov 22  }
  0x1a   :  { %s6568_s20 = sld [smem:[%s7417_s0 + %s6442_s15]]   ;;  %s6446_s15 = smov 23  }
  0x1b   :  { %s6573_s27 = sld [smem:[%s7417_s0 + %s6443_s22]]   ;;  %s6447_s22 = smov 24  }
  0x1c   :  { %s6578_s4 = sld [smem:[%s7417_s0 + %s6444_s28]]   ;;  %s6448_s28 = smov 25  }
  0x1f   :  { %7432 = sst [smem:[#allocation8_spill]] %s6563_s12 }
  0x20   :  { %7433 = sst [smem:[#allocation9_spill]] %s6568_s20 }
  0x21   :  { %7434 = sst [smem:[#allocation10_spill]] %s6573_s27 }
  0x22   :  { %7435 = sst [smem:[#allocation11_spill]] %s6578_s4 }
  0x23   :  { %s6583_s12 = sld [smem:[%s7417_s0 + %s6445_s7]]   ;;  %s6449_s7 = smov 26  }
  0x24   :  { %s6588_s20 = sld [smem:[%s7417_s0 + %s6446_s15]]   ;;  %s6450_s15 = smov 27  }
  0x25   :  { %s6593_s27 = sld [smem:[%s7417_s0 + %s6447_s22]]   ;;  %s6451_s22 = smov 28  }
  0x26   :  { %s6598_s4 = sld [smem:[%s7417_s0 + %s6448_s28]]   ;;  %s6452_s28 = smov 29  }
  0x29   :  { %7436 = sst [smem:[#allocation12_spill]] %s6583_s12 }
  0x2a   :  { %7437 = sst [smem:[#allocation13_spill]] %s6588_s20 }
  0x2b   :  { %7438 = sst [smem:[#allocation14_spill]] %s6593_s27 }
  0x2c   :  { %7439 = sst [smem:[#allocation15_spill]] %s6598_s4 }
  0x2d   :  { %s6603_s12 = sld [smem:[%s7417_s0 + %s6449_s7]]   ;;  %s6453_s7 = smov 30  }
  0x2e   :  { %s6608_s20 = sld [smem:[%s7417_s0 + %s6450_s15]]   ;;  %s6454_s15 = smov 31  }
  0x2f   :  { %s6613_s27 = sld [smem:[%s7417_s0 + %s6451_s22]]   ;;  %s6455_s22 = smov 32  }
  0x30   :  { %s6618_s4 = sld [smem:[%s7417_s0 + %s6452_s28]]  }
  0x33   :  { %7440 = sst [smem:[#allocation16_spill]] %s6603_s12 }
  0x34   :  { %7441 = sst [smem:[#allocation17_spill]] %s6608_s20 }
  0x35   :  { %7442 = sst [smem:[#allocation18_spill]] %s6613_s27 }
  0x36   :  { %7443 = sst [smem:[#allocation19_spill]] %s6618_s4 }
  0x37   :  { %s6623_s12 = sld [smem:[%s7417_s0 + %s6453_s7]]   ;;  %s6638_s7 = smov 0  }
  0x38   :  { %s6628_s20 = sld [smem:[%s7417_s0 + %s6454_s15]]  }
  0x39   :  { %s5175_s27 = sld [smem:[%s7417_s0 + %s6455_s22]]  }
  0x3a   :  { %s6636_s4 = sld [smem:[%s7417_s0 + %s6456_s1]]  }
  0x3f   :  { %v72_v0 = vstv %s5175_s27 }
  0x40   :  { %73 = vst [vmem:[#allocation3] sm:$0x1] %v72_v0 }
  0x41 LB: > { %s5177_s10 = sadd.s32 4294967295, %s6418_s7   ;;  %p5181_p0 = scmp.ge.s32.totalorder %s6418_s7, 1  ;;  %s6418_s7 = sphi %s6638_s7, %s79_s7  }
  0x42   : > { %p931_p1 = scmp.lt.s32.totalorder %s6418_s7, 3 }
  0x44   : > { %p932_p2 = pnand %p5181_p0, %p931_p1 }
  0x45   : > { %v1031_v1 = vld [vmem:[%s6488_s17] sm:$0x1f] (!%p932_p2)  ;;  %vm1043_vm0 = vcmask (!%p932_p2), 1044480   ;;  %p1017_p3 = scmp.lt.s32.totalorder (!%p932_p2), %s5177_s10, 1  ;;  %v6457_v2 = vmov (!%p932_p2), 0.0   ;;  %vm6458_vm1 = vmmov (!%p932_p2), 0  }
  0x46   : > { %935 = sbr.rel (%p932_p2) target bundleno = 4054 (0xfd6), region = 152  ;;  %5654 = vmatprep.subr.mxu0 (!%p932_p2), %v6457_v2  ;;  %5656 = vmatprep.mubr.msk.f32.mxu0 (!%p932_p2), %vm6458_vm1, %v6457_v2  ;;  %v1148_v3 = vld [vmem:[%s6508_s3] sm:$0x3] (!%p932_p2)  ;;  %vm1160_vm2 = vcmask (!%p932_p2), 1041408   ;;  %vm1039_vm3 = vcmask (!%p932_p2), 39936   ;;  %vm1156_vm4 = vcmask (!%p932_p2), 15360  }
  0x47   : > { %5655 = vmatpush3.msk.msra.mxu0 (!%p932_p2), %vm1043_vm0, %v1031_v1  ;;  %5659 = vmatprep.subr.mxu1 (!%p932_p2), %v6457_v2  ;;  %v5185_v6 = vld [vmem:[%s6493_s21] ss:$0 sm:$0xff] (!%p932_p2)  ;;  %vm1119_vm5 = vcmask (!%p932_p2), 261120   ;;  %s6459_s16 = smov (!%p932_p2), 32   ;;  %vm1243_vm6 = vcmask (!%p932_p2), 326656   ;;  %s6676_s18 = smov (!%p932_p2), 0  }
  0x48   : > { %5660 = vmatpush3.msk.msra.mxu1 (!%p932_p2), %vm1160_vm2, %v1148_v3  ;;  %5661 = vmatprep.mubr.msk.f32.mxu1 (!%p932_p2), %vm6458_vm1, %v6457_v2  ;;  %v5190_v11 = vld [vmem:[%s6513_s8] ss:$0 sm:$0xff] (!%p932_p2) }
  0x49   : > { %v5188_v24 = vld [vmem:[%s6498_s25] ss:$0 sm:$0xff] (!%p932_p2) }
  0x4a   : > { %v5189_v26 = vld [vmem:[%s6503_s29] ss:$0 sm:$0xff] (!%p932_p2) }
  0x4b   : > { %v1239_v30 = vld [vmem:[%s6483_s13] sm:$0xff] (!%p932_p2) }
  0x4c   : > { %v5193_v43 = vld [vmem:[%s6518_s14] ss:$0 sm:$0xff] (!%p932_p2) }
  0x4d   : > { %s7464_s10 = smov (!%p1017_p3, %s5177_s10), 1  ;;  %v5194_v45 = vld [vmem:[%s6523_s19] ss:$0 sm:$0xff] }
  0x4e   : > { %s6655_s0 = sshll.u32 %s7464_s10, 3 }
  0x4f   : > { %s1020_s27 = scalar_lea.vmem %s6473_s5, %s6655_s0  ;;  %s1024_s15 = scalar_lea.vmem %s6478_s9, %s6655_s0 }
  0x50   : > { %v1029_v4 = vld [vmem:[%s1020_s27] sm:$0xff] }
  0x51   : > { %5657 = vmatmul.mubr.msk.f32.vlgmr.msra.gmra.mrb[0].mxu0 %vm1039_vm3, %v1029_v4  ;;  %v1030_v5 = vld [vmem:[%s1024_s15] sm:$0xff] }
  0x52   : > { %5662 = vmatmul.mubr.msk.f32.vlgmr.msra.gmra.mrb[0].mxu1 %vm1156_vm4, %v1030_v5 }
 0x124   : > { %v1113_v7 = vpop.f32.mrb[0].mxu0 }
 0x125   : > { %v1114_v8 = vadd.f32 %v5185_v6, %v1113_v7  ;;  %v5658_v9 = vpop.f32.mrb[1].mxu0  ;;  %v1230_v12 = vpop.f32.mrb[0].mxu1 }
 0x126   : > { %v1231_v13 = vadd.f32 %v5190_v11, %v1230_v12  ;;  %v5663_v14 = vpop.f32.mrb[1].mxu1 }
 0x127   : > { %v1120_v10 = vsel %vm1119_vm5, %v1114_v8, 0.0 }
 0x128   : > { %1121 = vadd.xlane.f32.xlu0 %v1120_v10  ;;  %1235 = vrot.lane.b32.xlu1 %v1231_v13, %s6459_s16 }
 0x19a   : > { %v1236_v28 = vpop.permute.xlu1 %1235 }
 0x1b5   : > { %v1122_v15 = vpop.xlane.xlu0 %1121 }
 0x1b6   : > { %v1124_v16 = vmul.f32 0.03125, %v1122_v15 }
 0x1b8   : > { %v1125_v17 = vsub.f32 %v1114_v8, %v1124_v16 }
 0x1ba   : > { %v1126_v18 = vmul.f32 %v1125_v17, %v1125_v17 }
 0x1bc   : > { %v1127_v19 = vsel %vm1119_vm5, %v1126_v18, 0.0 }
 0x1bd   : > { %1128 = vadd.xlane.f32.xlu0 %v1127_v19 }
 0x24a   : > { %v1129_v20 = vpop.xlane.xlu0 %1128 }
 0x24b   : > { %v1130_v21 = vmul.f32 0.03125, %v1129_v20 }
 0x24d   : > { %v1131_v22 = vadd.f32 1e-05, %v1130_v21 }
 0x24f   : > { %6382 = vrsqrt.f32 %v1131_v22 }
 0x259   : > { %v6383_v23 = vpop.eup %6382 }
 0x25a   : > { %v1133_v25 = vmul.f32 %v6383_v23, %v1125_v17 }
 0x25c   : > { %v1140_v27 = vmul.f32 %v5188_v24, %v1133_v25 }
 0x25e   : > { %v1147_v29 = vadd.f32 %v5189_v26, %v1140_v27 }
 0x260   : > { %v1238_v31 = vsel %vm1119_vm5, %v1147_v29, %v1236_v28 }
 0x261   : > { %v1240_v32 = vadd.f32 %v1239_v30, %v1238_v31 }
 0x263   : > { %v1244_v33 = vsel %vm1243_vm6, %v1240_v32, 0.0 }
 0x264   : > { %1245 = vadd.xlane.f32.xlu1 %v1244_v33 }
 0x2f1   : > { %v1246_v34 = vpop.xlane.xlu1 %1245 }
 0x2f2   : > { %v1248_v35 = vmul.f32 0.025, %v1246_v34 }
 0x2f4   : > { %v1249_v36 = vsub.f32 %v1240_v32, %v1248_v35 }
 0x2f6   : > { %v1250_v37 = vmul.f32 %v1249_v36, %v1249_v36 }
 0x2f8   : > { %v1251_v38 = vsel %vm1243_vm6, %v1250_v37, 0.0 }
 0x2f9   : > { %1252 = vadd.xlane.f32.xlu0 %v1251_v38 }
 0x386   : > { %v1253_v39 = vpop.xlane.xlu0 %1252 }
 0x387   : > { %v1254_v40 = vmul.f32 0.025, %v1253_v39 }
 0x389   : > { %v1255_v41 = vadd.f32 1e-05, %v1254_v40 }
 0x38b   : > { %6384 = vrsqrt.f32 %v1255_v41 }
 0x395   : > { %v6385_v42 = vpop.eup %6384 }
 0x396   : > { %v1257_v44 = vmul.f32 %v6385_v42, %v1249_v36 }
 0x398   : > { %v1264_v46 = vmul.f32 %v5193_v43, %v1257_v44 }
 0x39a   : > { %v1271_v47 = vadd.f32 %v5194_v45, %v1264_v46 }
 0x39c   : > { %1272 = vst.msk [vmem:[#allocation2] sm:$0xff] %vm1243_vm6, %v1271_v47 }
 0x39d LB: >> { %v1309_v55 = vld [vmem:[%s6538_s6] sm:$0xff]  ;;  %v1310_v56 = vld [vmem:[%s6538_s6 + $0x8] sm:$0xff]  ;;  %v1315_v59 = vld [vmem:[%s6538_s6 + $0x30] sm:$0xff]  ;;  %v6460_v60 = vmov 0.0|0.0   ;;  %v6461_v5 = vmov 0.0   ;;  %vm6462_vm7 = vmmov 0   ;;  %s6422_s18 = sphi %s6676_s18, %s1278_s18  }
 0x39e   : >> { %v1314_v57 = vld [vmem:[%s6538_s6 + $0x28] sm:$0xff]  ;;  %v5909_v58 = vpack.c.bf16 %v1310_v56, %v1309_v55  ;;  %5908 = vmatprep.subr.bf16.mxu0 %v6460_v60  ;;  %5914 = vmatprep.subr.bf16.mxu1 %v6460_v60  ;;  %v1311_v62 = vld [vmem:[%s6538_s6 + $0x10] sm:$0xff]  ;;  %v1312_v63 = vld [vmem:[%s6538_s6 + $0x18] sm:$0xff]  ;;  %s7444_s22 = sld [smem:[#allocation5_spill]]  ;;  %s7445_s23 = sld [smem:[#allocation7_spill]]  ;;  %vm2300_vm8 = vcmask 80896  }
 0x39f   : >> { %v5915_v61 = vpack.c.bf16 %v1315_v59, %v1314_v57  ;;  %v1316_v0 = vld [vmem:[%s6538_s6 + $0x38] sm:$0xff]  ;;  %v5912_v1 = vpack.c.bf16 %v1312_v63, %v1311_v62  ;;  %v1317_v3 = vld [vmem:[%s6538_s6 + $0x40] sm:$0xff]  ;;  %v1318_v7 = vld [vmem:[%s6538_s6 + $0x48] sm:$0xff]  ;;  %5674 = vmatprep.mubr.msk.f32.mxu0 %vm6462_vm7, %v6461_v5  ;;  %5687 = vmatprep.mubr.msk.f32.mxu1 %vm6462_vm7, %v6461_v5  ;;  %s7446_s26 = sld [smem:[#allocation4_spill]]  ;;  %s7447_s1 = sld [smem:[#allocation6_spill]]  ;;  %vm2605_vm9 = vcmask 64512  }
 0x3a0   : >> { %5910 = vmatpush3.bf16.msra.mxu0 %v5909_v58  ;;  %v5918_v4 = vpack.c.bf16 %v1317_v3, %v1316_v0  ;;  %v1313_v6 = vld [vmem:[%s6538_s6 + $0x20] sm:$0xff]  ;;  %v1319_v13 = vld [vmem:[%s6538_s6 + $0x50] sm:$0xff]  ;;  %v1320_v15 = vld [vmem:[%s6538_s6 + $0x58] sm:$0xff]  ;;  %s7448_s28 = sld [smem:[#allocation8_spill]]  ;;  %s7449_s2 = sld [smem:[#allocation9_spill]]  ;;  %vm6463_vm10 = vmmov 1  }
 0x3a1   : >> { %5916 = vmatpush3.bf16.msra.mxu1 %v5915_v61  ;;  %5911 = vmatprep.subr.bf16.mxu0 %v6460_v60  ;;  %v5195_v12 = vld [vmem:[%s6528_s24] ss:$0 sm:$0xff]  ;;  %v1324_v16 = vld [vmem:[%s6538_s6 + $0x78] sm:$0xff]  ;;  %v5921_v20 = vpack.c.bf16 %v1320_v15, %v1319_v13  ;;  %v1322_v24 = vld [vmem:[%s6538_s6 + $0x68] sm:$0xff]  ;;  %s7452_s10 = sld [smem:[#allocation10_spill]]  ;;  %s7453_s27 = sld [smem:[#allocation13_spill]] }
 0x3a2   : >> { %5917 = vmatprep.subr.bf16.mxu1 %v6460_v60  ;;  %v1325_v17 = vld [vmem:[%s6538_s6 + $0x80] sm:$0xff]  ;;  %v1326_v25 = vld [vmem:[%s6538_s6 + $0x88] sm:$0xff]  ;;  %v1327_v26 = vld [vmem:[%s6538_s6 + $0x90] sm:$0xff]  ;;  %s7454_s15 = sld [smem:[#allocation11_spill]]  ;;  %s7455_s16 = sld [smem:[#allocation12_spill]] }
 0x3a3   : >> { %v6681_v48 = vld [vmem:[#allocation2] sm:$0xff]  ;;  %v5927_v21 = vpack.c.bf16 %v1325_v17, %v1324_v16  ;;  %v5930_v28 = vpack.c.bf16 %v1327_v26, %v1326_v25  ;;  %v1323_v33 = vld [vmem:[%s6538_s6 + $0x70] sm:$0xff]  ;;  %v1328_v34 = vld [vmem:[%s6538_s6 + $0x98] sm:$0xff]  ;;  %s1278_s18 = sadd.s32 1, %s6422_s18  }
 0x3a4   : >> { %v1282_v49 = vsel %vm1243_vm6, %v6681_v48, 0.0  ;;  %5913 = vmatpush3.bf16.msra.mxu0 %v5912_v1  ;;  %v5196_v18 = vld [vmem:[%s6533_s30] ss:$0 sm:$0xff]  ;;  %v1645_v30 = vld [vmem:[%s7444_s22 + $0x8] sm:$0xff]  ;;  %v1650_v32 = vld [vmem:[%s7444_s22 + $0x30] sm:$0xff]  ;;  %p1275_p4 = scmp.ge.s32.totalorder %s1278_s18, 2  }
 0x3a5   : >> { %1283 = vadd.xlane.f32.xlu0 %v1282_v49  ;;  %5919 = vmatpush3.bf16.msra.mxu1 %v5918_v4  ;;  %v1321_v22 = vld [vmem:[%s6538_s6 + $0x60] sm:$0xff]  ;;  %v1649_v31 = vld [vmem:[%s7444_s22 + $0x28] sm:$0xff]  ;;  %v1646_v37 = vld [vmem:[%s7444_s22 + $0x10] sm:$0xff]  ;;  %s7460_s11 = sld [smem:[#allocation18_spill]] (%p1275_p4)  ;;  %vm4960_vm12 = vcmask (%p1275_p4), 126976   ;;  %s7461_s18 = sld [smem:[#allocation19_spill]] (%p1275_p4) }
 0x3a6   : >> { %5672 = vmatprep.subr.mxu0 %v6461_v5  ;;  %5685 = vmatprep.subr.mxu1 %v6461_v5  ;;  %v5924_v27 = vpack.c.bf16 %v1322_v24, %v1321_v22  ;;  %v1644_v29 = vld [vmem:[%s7444_s22] sm:$0xff]  ;;  %v5939_v36 = vpack.c.bf16 %v1650_v32, %v1649_v31  ;;  %v1647_v38 = vld [vmem:[%s7444_s22 + $0x18] sm:$0xff]  ;;  %v1654_v43 = vld [vmem:[%s7444_s22 + $0x50] sm:$0xff]  ;;  %vm4998_vm13 = vcmask (%p1275_p4), 130048   ;;  %vm5072_vm14 = vcmask (%p1275_p4), 4096  }
 0x3a7   : >> { %v5933_v35 = vpack.c.bf16 %v1645_v30, %v1644_v29  ;;  %v1651_v39 = vld [vmem:[%s7444_s22 + $0x38] sm:$0xff]  ;;  %v1652_v40 = vld [vmem:[%s7444_s22 + $0x40] sm:$0xff]  ;;  %v5936_v41 = vpack.c.bf16 %v1647_v38, %v1646_v37  ;;  %v1653_v49 = vld [vmem:[%s7444_s22 + $0x48] sm:$0xff] }
 0x3a8   : >> { %5673 = vmatpush3.msra.mxu0 %v1313_v6  ;;  %v5942_v42 = vpack.c.bf16 %v1652_v40, %v1651_v39  ;;  %v1655_v44 = vld [vmem:[%s7444_s22 + $0x58] sm:$0xff]  ;;  %v1660_v46 = vld [vmem:[%s7444_s22 + $0x80] sm:$0xff]  ;;  %v1662_v55 = vld [vmem:[%s7444_s22 + $0x90] sm:$0xff] }
 0x3a9   : >> { %5686 = vmatpush3.msra.mxu1 %v1318_v7  ;;  %5920 = vmatprep.subr.bf16.mxu0 %v6460_v60  ;;  %v1659_v45 = vld [vmem:[%s7444_s22 + $0x78] sm:$0xff]  ;;  %v1648_v47 = vld [vmem:[%s7444_s22 + $0x20] sm:$0xff]  ;;  %v1973_v59 = vld [vmem:[%s7445_s23 + $0x8] sm:$0xff] }
 0x3aa   : >> { %5926 = vmatprep.subr.bf16.mxu1 %v6460_v60  ;;  %v1972_v58 = vld [vmem:[%s7445_s23] sm:$0xff]  ;;  %v1977_v61 = vld [vmem:[%s7445_s23 + $0x28] sm:$0xff]  ;;  %v1978_v62 = vld [vmem:[%s7445_s23 + $0x30] sm:$0xff] }
 0x3ab   : >> { %v1658_v63 = vld [vmem:[%s7444_s22 + $0x70] sm:$0xff]  ;;  %v1663_v0 = vld [vmem:[%s7444_s22 + $0x98] sm:$0xff]  ;;  %v5957_v1 = vpack.c.bf16 %v1973_v59, %v1972_v58  ;;  %v5963_v3 = vpack.c.bf16 %v1978_v62, %v1977_v61  ;;  %v1976_v15 = vld [vmem:[%s7445_s23 + $0x20] sm:$0xff] }
 0x3ac   : >> { %v1974_v4 = vld [vmem:[%s7445_s23 + $0x10] sm:$0xff]  ;;  %v1975_v6 = vld [vmem:[%s7445_s23 + $0x18] sm:$0xff]  ;;  %v1981_v16 = vld [vmem:[%s7445_s23 + $0x48] sm:$0xff] }
 0x3ad   : >> { %v1979_v7 = vld [vmem:[%s7445_s23 + $0x38] sm:$0xff]  ;;  %v1990_v22 = vld [vmem:[%s7445_s23 + $0x90] sm:$0xff]  ;;  %v5205_v37 = vld [vmem:[%s7447_s1] ss:$0 sm:$0xff] }
 0x3ae   : >> { %v1987_v13 = vld [vmem:[%s7445_s23 + $0x78] sm:$0xff]  ;;  %v1986_v26 = vld [vmem:[%s7445_s23 + $0x70] sm:$0xff]  ;;  %v5206_v38 = vld [vmem:[%s7447_s1 + $0x1] ss:$0 sm:$0xff] }
 0x3af   : >> { %vm6897_vm11 = vmpackc.low %vm1160_vm2, %vm6463_vm10 }
 0x432   : >> { %v1284_v50 = vpop.xlane.xlu0 %1283 }
 0x433   : >> { %v1285_v51 = vmul.f32 0.025, %v1284_v50  ;;  %v5945_v50 = vpack.c.bf16 %v1655_v44, %v1654_v43 }
 0x435   : >> { %v1286_v52 = vsub.f32 %v6681_v48, %v1285_v51  ;;  %v5951_v51 = vpack.c.bf16 %v1660_v46, %v1659_v45 }
 0x437   : >> { %v1287_v53 = vmul.f32 %v1286_v52, %v1286_v52 }
 0x439   : >> { %v1288_v54 = vsel %vm1243_vm6, %v1287_v53, 0.0  ;;  %v1657_v53 = vld [vmem:[%s7444_s22 + $0x68] sm:$0xff] }
 0x43a   : >> { %1289 = vadd.xlane.f32.xlu0 %v1288_v54  ;;  %v1661_v54 = vld [vmem:[%s7444_s22 + $0x88] sm:$0xff] }
 0x43b   : >> { %v5954_v57 = vpack.c.bf16 %v1662_v55, %v1661_v54 }
 0x4c7   : >> { %v1290_v8 = vpop.xlane.xlu0 %1289 }
 0x4c8   : >> { %v1291_v9 = vmul.f32 0.025, %v1290_v8  ;;  %v1980_v8 = vld [vmem:[%s7445_s23 + $0x40] sm:$0xff] }
 0x4ca   : >> { %v1292_v10 = vadd.f32 1e-05, %v1291_v9  ;;  %v5960_v9 = vpack.c.bf16 %v1975_v6, %v1974_v4 }
 0x4cc   : >> { %6386 = vrsqrt.f32 %v1292_v10  ;;  %v5966_v10 = vpack.c.bf16 %v1980_v8, %v1979_v7 }
 0x4d6   : >> { %v6387_v11 = vpop.eup %6386 }
 0x4d7   : >> { %v1294_v14 = vmul.f32 %v6387_v11, %v1286_v52  ;;  %v1656_v52 = vld [vmem:[%s7444_s22 + $0x60] sm:$0xff]  ;;  %v1982_v11 = vld [vmem:[%s7445_s23 + $0x50] sm:$0xff] }
 0x4d8   : >> { %v5948_v56 = vpack.c.bf16 %v1657_v53, %v1656_v52  ;;  %v5207_v52 = vld [vmem:[%s7447_s1 + $0x2] ss:$0 sm:$0xff]  ;;  %v5208_v53 = vld [vmem:[%s7447_s1 + $0x3] ss:$0 sm:$0xff] }
 0x4d9   : >> { %v1301_v19 = vmul.f32 %v5195_v12, %v1294_v14  ;;  %v1983_v12 = vld [vmem:[%s7445_s23 + $0x58] sm:$0xff]  ;;  %v1988_v14 = vld [vmem:[%s7445_s23 + $0x80] sm:$0xff] }
 0x4da   : >> { %v5969_v17 = vpack.c.bf16 %v1983_v12, %v1982_v11 }
 0x4db   : >> { %v6716_v23 = vadd.f32 %v5196_v18, %v1301_v19  ;;  %v5975_v18 = vpack.c.bf16 %v1988_v14, %v1987_v13  ;;  %v1984_v19 = vld [vmem:[%s7445_s23 + $0x60] sm:$0xff] }
 0x4dd   : >> { %5675 = vmatmul.mubr.msk.f32.vlgmr.msra.gmra.mrb[0].mxu0 %vm1243_vm6, %v6716_v23  ;;  %5688 = vmatmul.mubr.msk.f32.vlgmr.msra.gmra.mrb[0].mxu1 %vm1243_vm6, %v6716_v23 }
 0x4de   : >> { %5922 = vmatpush3.bf16.msra.mxu0 %v5921_v20  ;;  %5928 = vmatpush3.bf16.msra.mxu1 %v5927_v21  ;;  %v1985_v20 = vld [vmem:[%s7445_s23 + $0x68] sm:$0xff] }
 0x4df   : >> { %5923 = vmatprep.subr.bf16.mxu0 %v6460_v60  ;;  %5929 = vmatprep.subr.bf16.mxu1 %v6460_v60  ;;  %v1989_v21 = vld [vmem:[%s7445_s23 + $0x88] sm:$0xff]  ;;  %v5972_v24 = vpack.c.bf16 %v1985_v20, %v1984_v19 }
 0x4e0   : >> { %5700 = vmatprep.mubr.msk.f32.mxu0 %vm6462_vm7, %v6461_v5  ;;  %5713 = vmatprep.mubr.msk.f32.mxu1 %vm6462_vm7, %v6461_v5  ;;  %v5978_v25 = vpack.c.bf16 %v1990_v22, %v1989_v21 }
 0x4e2   : >> { %5925 = vmatpush3.bf16.msra.mxu0 %v5924_v27  ;;  %5931 = vmatpush3.bf16.msra.mxu1 %v5930_v28  ;;  %v1991_v27 = vld [vmem:[%s7445_s23 + $0x98] sm:$0xff] }
 0x4e3   : >> { %5698 = vmatprep.subr.mxu0 %v6461_v5  ;;  %5711 = vmatprep.subr.mxu1 %v6461_v5 }
 0x4e6   : >> { %5699 = vmatpush3.msra.mxu0 %v1323_v33  ;;  %5712 = vmatpush3.msra.mxu1 %v1328_v34 }
 0x4e7   : >> { %5701 = vmatmul.mubr.msk.f32.vlgmr.msra.gmra.mrb[2].mxu0 %vm1243_vm6, %v6716_v23  ;;  %5714 = vmatmul.mubr.msk.f32.vlgmr.msra.gmra.mrb[2].mxu1 %vm1243_vm6, %v6716_v23 }
 0x4e8   : >> { %5932 = vmatprep.subr.bf16.mxu0 %v6460_v60  ;;  %5938 = vmatprep.subr.bf16.mxu1 %v6460_v60 }
 0x4e9   : >> { %5934 = vmatpush3.bf16.msra.mxu0 %v5933_v35  ;;  %5940 = vmatpush3.bf16.msra.mxu1 %v5939_v36  ;;  %v5198_v36 = vld [vmem:[%s7446_s26 + $0x1] ss:$0 sm:$0xff] }
 0x4ea   : >> { %5935 = vmatprep.subr.bf16.mxu0 %v6460_v60  ;;  %5941 = vmatprep.subr.bf16.mxu1 %v6460_v60 }
 0x4eb   : >> { %5726 = vmatprep.mubr.msk.f32.mxu0 %vm6462_vm7, %v6461_v5  ;;  %5739 = vmatprep.mubr.msk.f32.mxu1 %vm6462_vm7, %v6461_v5 }
 0x4ed   : >> { %5937 = vmatpush3.bf16.msra.mxu0 %v5936_v41  ;;  %5943 = vmatpush3.bf16.msra.mxu1 %v5942_v42 }
 0x4ee   : >> { %5724 = vmatprep.subr.mxu0 %v6461_v5  ;;  %5737 = vmatprep.subr.mxu1 %v6461_v5 }
 0x4f1   : >> { %5725 = vmatpush3.msra.mxu0 %v1648_v47  ;;  %5738 = vmatpush3.msra.mxu1 %v1653_v49 }
 0x4f2   : >> { %5727 = vmatmul.mubr.msk.f32.vlgmr.msra.gmra.mrb[4].mxu0 %vm1243_vm6, %v6716_v23  ;;  %5740 = vmatmul.mubr.msk.f32.vlgmr.msra.gmra.mrb[4].mxu1 %vm1243_vm6, %v6716_v23 }
 0x4f3   : >> { %5944 = vmatprep.subr.bf16.mxu0 %v6460_v60  ;;  %5950 = vmatprep.subr.bf16.mxu1 %v6460_v60 }
 0x4f4   : >> { %5946 = vmatpush3.bf16.msra.mxu0 %v5945_v50  ;;  %5952 = vmatpush3.bf16.msra.mxu1 %v5951_v51  ;;  %v5199_v50 = vld [vmem:[%s7446_s26 + $0x2] ss:$0 sm:$0xff]  ;;  %v5200_v51 = vld [vmem:[%s7446_s26 + $0x3] ss:$0 sm:$0xff] }
 0x4f5   : >> { %5947 = vmatprep.subr.bf16.mxu0 %v6460_v60  ;;  %5953 = vmatprep.subr.bf16.mxu1 %v6460_v60 }
 0x4f6   : >> { %5752 = vmatprep.mubr.msk.f32.mxu0 %vm6462_vm7, %v6461_v5  ;;  %5765 = vmatprep.mubr.msk.f32.mxu1 %vm6462_vm7, %v6461_v5 }
 0x4f8   : >> { %5949 = vmatpush3.bf16.msra.mxu0 %v5948_v56  ;;  %5955 = vmatpush3.bf16.msra.mxu1 %v5954_v57 }
 0x4f9   : >> { %5750 = vmatprep.subr.mxu0 %v6461_v5  ;;  %5763 = vmatprep.subr.mxu1 %v6461_v5 }
 0x4fc   : >> { %5751 = vmatpush3.msra.mxu0 %v1658_v63  ;;  %5764 = vmatpush3.msra.mxu1 %v1663_v0 }
 0x4fd   : >> { %5753 = vmatmul.mubr.msk.f32.vlgmr.msra.gmra.mrb[6].mxu0 %vm1243_vm6, %v6716_v23  ;;  %5766 = vmatmul.mubr.msk.f32.vlgmr.msra.gmra.mrb[6].mxu1 %vm1243_vm6, %v6716_v23 }
 0x4fe   : >> { %5956 = vmatprep.subr.bf16.mxu0 %v6460_v60  ;;  %5962 = vmatprep.subr.bf16.mxu1 %v6460_v60 }
 0x4ff   : >> { %5958 = vmatpush3.bf16.msra.mxu0 %v5957_v1  ;;  %5964 = vmatpush3.bf16.msra.mxu1 %v5963_v3  ;;  %v5213_v1 = vld [vmem:[%s7448_s28] ss:$0 sm:$0xff]  ;;  %v5214_v3 = vld [vmem:[%s7448_s28 + $0x1] ss:$0 sm:$0xff] }
 0x500   : >> { %5959 = vmatprep.subr.bf16.mxu0 %v6460_v60  ;;  %5965 = vmatprep.subr.bf16.mxu1 %v6460_v60 }
 0x501   : >> { %5778 = vmatprep.mubr.msk.f32.mxu0 %vm6462_vm7, %v6461_v5  ;;  %5791 = vmatprep.mubr.msk.f32.mxu1 %vm6462_vm7, %v6461_v5 }
 0x503   : >> { %5961 = vmatpush3.bf16.msra.mxu0 %v5960_v9  ;;  %5967 = vmatpush3.bf16.msra.mxu1 %v5966_v10 }
 0x504   : >> { %5776 = vmatprep.subr.mxu0 %v6461_v5  ;;  %5789 = vmatprep.subr.mxu1 %v6461_v5 }
 0x507   : >> { %5777 = vmatpush3.msra.mxu0 %v1976_v15  ;;  %5790 = vmatpush3.msra.mxu1 %v1981_v16 }
 0x508   : >> { %5779 = vmatmul.mubr.msk.f32.vlgmr.msra.gmra.mrb[8].mxu0 %vm1243_vm6, %v6716_v23  ;;  %5792 = vmatmul.mubr.msk.f32.vlgmr.msra.gmra.mrb[8].mxu1 %vm1243_vm6, %v6716_v23 }
 0x509   : >> { %5968 = vmatprep.subr.bf16.mxu0 %v6460_v60  ;;  %5974 = vmatprep.subr.bf16.mxu1 %v6460_v60 }
 0x50a   : >> { %5970 = vmatpush3.bf16.msra.mxu0 %v5969_v17  ;;  %5976 = vmatpush3.bf16.msra.mxu1 %v5975_v18 }
 0x50b   : >> { %5971 = vmatprep.subr.bf16.mxu0 %v6460_v60  ;;  %5977 = vmatprep.subr.bf16.mxu1 %v6460_v60 }
 0x50c   : >> { %5804 = vmatprep.mubr.msk.f32.mxu0 %vm6462_vm7, %v6461_v5  ;;  %5817 = vmatprep.mubr.msk.f32.mxu1 %vm6462_vm7, %v6461_v5 }
 0x50e   : >> { %5973 = vmatpush3.bf16.msra.mxu0 %v5972_v24  ;;  %5979 = vmatpush3.bf16.msra.mxu1 %v5978_v25 }
 0x50f   : >> { %5802 = vmatprep.subr.mxu0 %v6461_v5  ;;  %5815 = vmatprep.subr.mxu1 %v6461_v5 }
 0x512   : >> { %5803 = vmatpush3.msra.mxu0 %v1986_v26  ;;  %5816 = vmatpush3.msra.mxu1 %v1991_v27 }
 0x513   : >> { %5805 = vmatmul.mubr.msk.f32.vlgmr.msra.gmra.mrb[10].mxu0 %vm1243_vm6, %v6716_v23  ;;  %5818 = vmatmul.mubr.msk.f32.vlgmr.msra.gmra.mrb[10].mxu1 %vm1243_vm6, %v6716_v23  ;;  %v5197_v23 = vld [vmem:[%s7446_s26] ss:$0 sm:$0xff] }
 0x514   : >> { %5820 = vmatprep.subr.mxu0 %v6461_v5  ;;  %5825 = vmatprep.subr.mxu1 %v6461_v5 }
 0x515   : >> { %5822 = vmatprep.mubr.msk.f32.mxu0 %vm6462_vm7, %v6461_v5  ;;  %5827 = vmatprep.mubr.msk.f32.mxu1 %vm6462_vm7, %v6461_v5 }
 0x5b0   : >> { %v1426_v28 = vpop.f32.mrb[0].mxu0  ;;  %v1496_v29 = vpop.f32.mrb[0].mxu1 }
 0x5b1   : >> { %v5676_v30 = vpop.f32.mrb[1].mxu0  ;;  %v5689_v31 = vpop.f32.mrb[1].mxu1  ;;  %v1427_v39 = vadd.f32 %v5197_v23, %v1426_v28  ;;  %v1497_v40 = vadd.f32 %v5198_v36, %v1496_v29 }
 0x5b3   : >> { %v1640_v47 = vmul.f32 0.31622776, %v1427_v39  ;;  %v1641_v49 = vmul.f32 0.31622776, %v1497_v40 }
 0x5ba   : >> { %v1566_v32 = vpop.f32.mrb[2].mxu0  ;;  %v1636_v33 = vpop.f32.mrb[2].mxu1 }
 0x5bb   : >> { %v5702_v34 = vpop.f32.mrb[3].mxu0  ;;  %v5715_v35 = vpop.f32.mrb[3].mxu1  ;;  %v1567_v54 = vadd.f32 %v5199_v50, %v1566_v32  ;;  %v1637_v55 = vadd.f32 %v5200_v51, %v1636_v33  ;;  %v5215_v50 = vld [vmem:[%s7448_s28 + $0x2] ss:$0 sm:$0xff] }
 0x5bd   : >> { %v1642_v63 = vmul.f32 0.31622776, %v1567_v54  ;;  %v1643_v0 = vmul.f32 0.31622776, %v1637_v55 }
 0x5c5   : >> { %v1758_v41 = vpop.f32.mrb[4].mxu0  ;;  %v1828_v42 = vpop.f32.mrb[4].mxu1 }
 0x5c6   : >> { %v1759_v43 = vadd.f32 %v5205_v37, %v1758_v41  ;;  %v1829_v44 = vadd.f32 %v5206_v38, %v1828_v42  ;;  %v5728_v45 = vpop.f32.mrb[5].mxu0  ;;  %v5741_v46 = vpop.f32.mrb[5].mxu1 }
 0x5c8   : >> { %5821 = vmatpush3.xpose.msk.msra.mxu0 %vm2300_vm8, %v1759_v43  ;;  %5826 = vmatpush3.xpose.msk.msra.mxu1 %vm2300_vm8, %v1829_v44 }
 0x5c9   : >> { %5830 = vmatprep.subr.mxu0 %v6461_v5  ;;  %5835 = vmatprep.subr.mxu1 %v6461_v5 }
 0x5cb   : >> { %5823 = vmatmul.mubr.msk.f32.vlgmr.msra.gmra.mrb[12].mxu0 %vm2300_vm8, %v1640_v47  ;;  %5828 = vmatmul.mubr.msk.f32.vlgmr.msra.gmra.mrb[12].mxu1 %vm2300_vm8, %v1641_v49 }
 0x5cc   : >> { %5832 = vmatprep.mubr.msk.f32.mxu0 %vm6462_vm7, %v6461_v5  ;;  %5837 = vmatprep.mubr.msk.f32.mxu1 %vm6462_vm7, %v6461_v5 }
 0x5d0   : >> { %v1898_v56 = vpop.f32.mrb[6].mxu0  ;;  %v1968_v57 = vpop.f32.mrb[6].mxu1 }
 0x5d1   : >> { %v1899_v58 = vadd.f32 %v5207_v52, %v1898_v56  ;;  %v1969_v59 = vadd.f32 %v5208_v53, %v1968_v57  ;;  %v5754_v61 = vpop.f32.mrb[7].mxu0  ;;  %v5767_v62 = vpop.f32.mrb[7].mxu1  ;;  %v5216_v56 = vld [vmem:[%s7448_s28 + $0x3] ss:$0 sm:$0xff] }
 0x5d2   : >> { %v2942_v61 = vld [vmem:[%s7449_s2] sm:$0xff]  ;;  %v2943_v62 = vld [vmem:[%s7449_s2 + $0x8] sm:$0x3] }
 0x5d3   : >> { %5831 = vmatpush3.xpose.msk.msra.mxu0 %vm2300_vm8, %v1899_v58  ;;  %5836 = vmatpush3.xpose.msk.msra.mxu1 %vm2300_vm8, %v1969_v59 }
 0x5d4   : >> { %5840 = vmatprep.subr.mxu0 %v6461_v5  ;;  %5845 = vmatprep.subr.mxu1 %v6461_v5 }
 0x5d6   : >> { %5833 = vmatmul.mubr.msk.f32.vlgmr.msra.gmra.mrb[14].mxu0 %vm2300_vm8, %v1642_v63  ;;  %5838 = vmatmul.mubr.msk.f32.vlgmr.msra.gmra.mrb[14].mxu1 %vm2300_vm8, %v1643_v0 }
 0x5d7   : >> { %5842 = vmatprep.mubr.msk.f32.mxu0 %vm6462_vm7, %v6461_v5  ;;  %5847 = vmatprep.mubr.msk.f32.mxu1 %vm6462_vm7, %v6461_v5 }
 0x5db   : >> { %v2086_v4 = vpop.f32.mrb[8].mxu0  ;;  %v2156_v6 = vpop.f32.mrb[8].mxu1 }
 0x5dc   : >> { %v2087_v7 = vadd.f32 %v5213_v1, %v2086_v4  ;;  %v2157_v8 = vadd.f32 %v5214_v3, %v2156_v6  ;;  %v5780_v9 = vpop.f32.mrb[9].mxu0  ;;  %v5793_v10 = vpop.f32.mrb[9].mxu1  ;;  %v5981_v3 = vpack.c.bf16 %v2943_v62, %v2942_v61  ;;  %v3327_v61 = vld [vmem:[%s7453_s27 + $0x100] sm:$0xff]  ;;  %v3360_v6 = vld [vmem:[%s7453_s27 + $0x208] sm:$0xff] }
 0x5dd   : >> { %v2946_v10 = vld [vmem:[%s7449_s2 + $0x20] sm:$0xff] }
 0x5de   : >> { %5841 = vmatpush3.msra.mxu0 %v2087_v7  ;;  %5846 = vmatpush3.msra.mxu1 %v2157_v8  ;;  %v2944_v7 = vld [vmem:[%s7449_s2 + $0x10] sm:$0xff]  ;;  %v2945_v8 = vld [vmem:[%s7449_s2 + $0x18] sm:$0x3]  ;;  %v3343_v62 = vld [vmem:[%s7453_s27 + $0x180] sm:$0xff] }
 0x5df   : >> { %5850 = vmatprep.subr.mxu0 %v6461_v5  ;;  %5855 = vmatprep.subr.mxu1 %v6461_v5  ;;  %v5985_v9 = vpack.c.bf16 %v2945_v8, %v2944_v7  ;;  %v3362_v7 = vld [vmem:[%s7453_s27 + $0x218] sm:$0xff]  ;;  %v3300_v8 = vld [vmem:[%s7453_s27 + $0x28] sm:$0xff] }
 0x5e6   : >> { %v2226_v11 = vpop.f32.mrb[10].mxu0  ;;  %v6873_v12 = vpop.f32.mrb[10].mxu1 }
 0x5e7   : >> { %v5806_v13 = vpop.f32.mrb[11].mxu0  ;;  %v5819_v14 = vpop.f32.mrb[11].mxu1  ;;  %v2227_v55 = vadd.f32 %v5215_v50, %v2226_v11  ;;  %v2297_v59 = vadd.f32 %v5216_v56, %v6873_v12  ;;  %v2947_v11 = vld [vmem:[%s7449_s2 + $0x28] sm:$0x3] }
 0x5e8   : >> { %v5989_v12 = vpack.c.bf16 %v2947_v11, %v2946_v10  ;;  %v2948_v13 = vld [vmem:[%s7449_s2 + $0x30] sm:$0xff]  ;;  %v2949_v14 = vld [vmem:[%s7449_s2 + $0x38] sm:$0x3]  ;;  %v3344_v56 = vld [vmem:[%s7453_s27 + $0x188] sm:$0xff] }
 0x5e9   : >> { %v3361_v10 = vld [vmem:[%s7453_s27 + $0x210] sm:$0xff]  ;;  %v3316_v11 = vld [vmem:[%s7453_s27 + $0xa8] sm:$0xff] }
 0x69e   : >> { %v2373_v15 = vpop.f32.mrb[12].mxu0  ;;  %v2449_v16 = vpop.f32.mrb[12].mxu1 }
 0x69f   : >> { %v5824_v17 = vpop.f32.mrb[13].mxu0  ;;  %v5829_v18 = vpop.f32.mrb[13].mxu1  ;;  %v2606_v19 = vsel %vm2605_vm9, %v2373_v15, -inf  ;;  %v2609_v20 = vsel %vm2605_vm9, %v2449_v16, -inf }
 0x6a0   : >> { %2607 = vmax.xlane.f32.xlu1 %v2606_v19  ;;  %v5993_v17 = vpack.c.bf16 %v2949_v14, %v2948_v13  ;;  %v3302_v13 = vld [vmem:[%s7453_s27 + $0x38] sm:$0xff] }
 0x6a1   : >> { %v3318_v14 = vld [vmem:[%s7453_s27 + $0xb8] sm:$0xff] }
 0x6a4   : >> { %2610 = vmax.xlane.f32.xlu1 %v2609_v20 }
 0x6a9   : >> { %v2525_v21 = vpop.f32.mrb[14].mxu0  ;;  %v2601_v22 = vpop.f32.mrb[14].mxu1 }
 0x6aa   : >> { %v5834_v24 = vpop.f32.mrb[15].mxu0  ;;  %v5839_v25 = vpop.f32.mrb[15].mxu1  ;;  %v2615_v26 = vsel %vm2605_vm9, %v2601_v22, -inf  ;;  %v2612_v27 = vsel %vm2605_vm9, %v2525_v21, -inf }
 0x6ab   : >> { %2616 = vmax.xlane.f32.xlu1 %v2615_v26  ;;  %2613 = vmax.xlane.f32.xlu0 %v2612_v27 }
 0x72d   : >> { %v2608_v28 = vpop.xlane.xlu1 %2607 }
 0x72e   : >> { %v2618_v29 = vsub.f32 %v2373_v15, %v2608_v28 }
 0x730   : >> { %v2622_v30 = vmul.f32 1.442695, %v2618_v29 }
 0x731   : >> { %v2611_v31 = vpop.xlane.xlu1 %2610 }
 0x732   : >> { %6388 = vpow2.f32 %v2622_v30  ;;  %v2619_v32 = vsub.f32 %v2449_v16, %v2611_v31 }
 0x734   : >> { %v2624_v33 = vmul.f32 1.442695, %v2619_v32 }
 0x736   : >> { %6390 = vpow2.f32 %v2624_v33 }
 0x738   : >> { %v2617_v34 = vpop.xlane.xlu1 %2616  ;;  %v2614_v35 = vpop.xlane.xlu0 %2613 }
 0x739   : >> { %v2621_v23 = vsub.f32 %v2601_v22, %v2617_v34  ;;  %v2620_v36 = vsub.f32 %v2525_v21, %v2614_v35  ;;  %v5241_v34 = vld [vmem:[%s7452_s10] ss:$0 sm:$0xff]  ;;  %s7456_s10 = sld [smem:[#allocation15_spill]] }
 0x73b   : >> { %v2628_v37 = vmul.f32 1.442695, %v2621_v23  ;;  %v2626_v38 = vmul.f32 1.442695, %v2620_v36 }
 0x73c   : >> { %v6389_v39 = vpop.eup %6388 }
 0x73d   : >> { %6392 = vpow2.f32 %v2628_v37  ;;  %v2630_v40 = vsel %vm2605_vm9, %v6389_v39, 0.0 }
 0x73e   : >> { %6394 = vpow2.f32 %v2626_v38  ;;  %2631 = vadd.xlane.f32.xlu0 %v2630_v40 }
 0x740   : >> { %v6391_v41 = vpop.eup %6390 }
 0x741   : >> { %v2633_v42 = vsel %vm2605_vm9, %v6391_v41, 0.0 }
 0x742   : >> { %2634 = vadd.xlane.f32.xlu1 %v2633_v42 }
 0x747   : >> { %v6393_v43 = vpop.eup %6392 }
 0x748   : >> { %v6395_v44 = vpop.eup %6394  ;;  %v2639_v45 = vsel %vm2605_vm9, %v6393_v43, 0.0 }
 0x749   : >> { %2640 = vadd.xlane.f32.xlu1 %v2639_v45  ;;  %v2636_v46 = vsel %vm2605_vm9, %v6395_v44, 0.0 }
 0x74a   : >> { %2637 = vadd.xlane.f32.xlu0 %v2636_v46  ;;  %v3314_v46 = vld [vmem:[%s7453_s27 + $0x98] sm:$0xff] }
 0x7cb   : >> { %v2632_v47 = vpop.xlane.xlu0 %2631 }
 0x7cc   : >> { %6396 = vrcp.f32 %v2632_v47  ;;  %v3295_v47 = vld [vmem:[%s7453_s27] sm:$0xff] }
 0x7cf   : >> { %v2635_v49 = vpop.xlane.xlu1 %2634 }
 0x7d0   : >> { %6398 = vrcp.f32 %v2635_v49  ;;  %v3311_v49 = vld [vmem:[%s7453_s27 + $0x80] sm:$0xff] }
 0x7d6   : >> { %v6397_v51 = vpop.eup %6396  ;;  %v2641_v52 = vpop.xlane.xlu1 %2640 }
 0x7d7   : >> { %v2646_v53 = vmul.f32 %v6397_v51, %v6389_v39  ;;  %6400 = vrcp.f32 %v2641_v52  ;;  %v2638_v54 = vpop.xlane.xlu0 %2637  ;;  %v5998_v51 = vpack.c.bf16 %v3311_v49, %v3295_v47  ;;  %v3297_v52 = vld [vmem:[%s7453_s27 + $0x10] sm:$0xff]  ;;  %v3363_v47 = vld [vmem:[%s7453_s27 + $0x220] sm:$0xff] }
 0x7d8   : >> { %6402 = vrcp.f32 %v2638_v54  ;;  %v3365_v49 = vld [vmem:[%s7453_s27 + $0x230] sm:$0xff] }
 0x7d9   : >> { %5843 = vmatmul.mubr.msk.f32.vlgmr.msra.gmra.mrb[16].mxu0 %vm2605_vm9, %v2646_v53  ;;  %v3313_v53 = vld [vmem:[%s7453_s27 + $0x90] sm:$0xff] }
 0x7da   : >> { %v6399_v57 = vpop.eup %6398  ;;  %5851 = vmatpush3.msra.mxu0 %v2227_v55  ;;  %5852 = vmatprep.mubr.msk.f32.mxu0 %vm6462_vm7, %v6461_v5  ;;  %v6006_v54 = vpack.c.bf16 %v3313_v53, %v3297_v52  ;;  %v3328_v55 = vld [vmem:[%s7453_s27 + $0x108] sm:$0xff]  ;;  %v3319_v52 = vld [vmem:[%s7453_s27 + $0xc0] sm:$0xff]  ;;  %v3305_v53 = vld [vmem:[%s7453_s27 + $0x50] sm:$0xff] }
 0x7db   : >> { %v2647_v58 = vmul.f32 %v6399_v57, %v6391_v41  ;;  %5980 = vmatprep.subr.bf16.mxu0 %v6460_v60  ;;  %v3330_v57 = vld [vmem:[%s7453_s27 + $0x118] sm:$0xff] }
 0x7dd   : >> { %5848 = vmatmul.mubr.msk.f32.vlgmr.msra.gmra.mrb[16].mxu1 %vm2605_vm9, %v2647_v58  ;;  %v6000_v58 = vpack.c.bf16 %v3344_v56, %v3328_v55  ;;  %v3336_v55 = vld [vmem:[%s7453_s27 + $0x148] sm:$0xff] }
 0x7de   : >> { %5856 = vmatpush3.msra.mxu1 %v2297_v59  ;;  %5857 = vmatprep.mubr.msk.f32.mxu1 %vm6462_vm7, %v6461_v5  ;;  %v3346_v59 = vld [vmem:[%s7453_s27 + $0x198] sm:$0xff]  ;;  %v3352_v56 = vld [vmem:[%s7453_s27 + $0x1c8] sm:$0xff] }
 0x7df   : >> { %5984 = vmatprep.subr.bf16.mxu1 %v6460_v60 }
 0x7e1   : >> { %v6401_v63 = vpop.eup %6400 }
 0x7e2   : >> { %v6403_v0 = vpop.eup %6402  ;;  %v2649_v1 = vmul.f32 %v6401_v63, %v6393_v43  ;;  %v3296_v43 = vld [vmem:[%s7453_s27 + $0x8] sm:$0xff]  ;;  %v6008_v63 = vpack.c.bf16 %v3346_v59, %v3330_v57  ;;  %v3338_v57 = vld [vmem:[%s7453_s27 + $0x158] sm:$0xff] }
 0x7e3   : >> { %v2648_v4 = vmul.f32 %v6403_v0, %v6395_v44  ;;  %v3312_v44 = vld [vmem:[%s7453_s27 + $0x88] sm:$0xff]  ;;  %v6002_v0 = vpack.c.bf16 %v3343_v62, %v3327_v61 }
 0x7e4   : >> { %5858 = vmatmul.mubr.msk.f32.vlgmr.msra.gmra.mrb[18].mxu1 %vm2605_vm9, %v2649_v1  ;;  %v5996_v45 = vpack.c.bf16 %v3312_v44, %v3296_v43  ;;  %v3329_v1 = vld [vmem:[%s7453_s27 + $0x110] sm:$0xff]  ;;  %v3364_v43 = vld [vmem:[%s7453_s27 + $0x228] sm:$0xff]  ;;  %v3366_v44 = vld [vmem:[%s7453_s27 + $0x238] sm:$0xff] }
 0x7e5   : >> { %5853 = vmatmul.mubr.msk.f32.vlgmr.msra.gmra.mrb[18].mxu0 %vm2605_vm9, %v2648_v4  ;;  %5871 = vmatprep.mubr.msk.f32.mxu1 %vm6462_vm7, %v6461_v5 }
 0x7e6   : >> { %5983 = vmatpush3.bf16.msk.msra.mxu0 %vm6897_vm11, %v5981_v3  ;;  %5864 = vmatprep.mubr.msk.f32.mxu0 %vm6462_vm7, %v6461_v5  ;;  %v3345_v3 = vld [vmem:[%s7453_s27 + $0x190] sm:$0xff] }
 0x7e7   : >> { %5988 = vmatprep.subr.bf16.mxu0 %v6460_v60  ;;  %5987 = vmatpush3.bf16.msk.msra.mxu1 %vm6897_vm11, %v5985_v9  ;;  %v6010_v4 = vpack.c.bf16 %v3345_v3, %v3329_v1  ;;  %v3359_v9 = vld [vmem:[%s7453_s27 + $0x200] sm:$0xff]  ;;  %v6032_v1 = vpack.c.bf16 %v3352_v56, %v3336_v55 }
 0x7e8   : >> { %5992 = vmatprep.subr.bf16.mxu1 %v6460_v60 }
 0x8ac   : >> { %v2719_v15 = vpop.f32.mrb[16].mxu0 }
 0x8ad   : >> { %v5844_v16 = vpop.f32.mrb[17].mxu0  ;;  %5865 = vmatmul.mubr.msk.f32.vlgmr.msra.gmra.mrb[20].mxu0 %vm2300_vm8, %v2719_v15  ;;  %v6020_v15 = vpack.c.bf16 %v3318_v14, %v3302_v13  ;;  %v3324_v13 = vld [vmem:[%s7453_s27 + $0xe8] sm:$0xff]  ;;  %v3310_v14 = vld [vmem:[%s7453_s27 + $0x78] sm:$0xff] }
 0x8ae   : >> { %5991 = vmatpush3.bf16.msk.msra.mxu0 %vm6897_vm11, %v5989_v12  ;;  %5878 = vmatprep.mubr.msk.f32.mxu0 %vm6462_vm7, %v6461_v5  ;;  %v6012_v12 = vpack.c.bf16 %v3316_v11, %v3300_v8  ;;  %v3370_v11 = vld [vmem:[%s7453_s27 + $0x258] sm:$0xff] }
 0x8af   : >> { %5997 = vmatprep.subr.bf16.mxu0 %v5996_v45  ;;  %v3320_v45 = vld [vmem:[%s7453_s27 + $0xc8] sm:$0xff] }
 0x8b0   : >> { %v2792_v18 = vpop.f32.mrb[16].mxu1 }
 0x8b1   : >> { %v5849_v19 = vpop.f32.mrb[17].mxu1  ;;  %5872 = vmatmul.mubr.msk.f32.vlgmr.msra.gmra.mrb[20].mxu1 %vm2300_vm8, %v2792_v18 }
 0x8b2   : >> { %5995 = vmatpush3.bf16.msk.msra.mxu1 %vm6897_vm11, %v5993_v17  ;;  %5885 = vmatprep.mubr.msk.f32.mxu1 %vm6462_vm7, %v6461_v5  ;;  %v5242_v19 = vld [vmem:[%s7454_s15] ss:$0 sm:$0xff]  ;;  %s7457_s15 = sld [smem:[#allocation14_spill]] }
 0x8b7   : >> { %v2938_v60 = vpop.f32.mrb[18].mxu1 }
 0x8b8   : >> { %v2865_v20 = vpop.f32.mrb[18].mxu0  ;;  %v5859_v21 = vpop.f32.mrb[19].mxu1  ;;  %5886 = vmatmul.mubr.msk.f32.vlgmr.msra.gmra.mrb[22].mxu1 %vm2300_vm8, %v2938_v60 }
 0x8b9   : >> { %v5854_v22 = vpop.f32.mrb[19].mxu0  ;;  %5879 = vmatmul.mubr.msk.f32.vlgmr.msra.gmra.mrb[22].mxu0 %vm2300_vm8, %v2865_v20  ;;  %3597 = vmatprep.mubr.f32.mxu1 %v6461_v5  ;;  %v5243_v20 = vld [vmem:[%s7455_s16] ss:$0 sm:$0xff]  ;;  %s7458_s16 = sld [smem:[#allocation16_spill]] }
 0x8ba   : >> { %3526 = vmatprep.mubr.f32.mxu0 %v6461_v5  ;;  %5999 = vmatpush1.bf16.msra.mxu0 %v5998_v51  ;;  %v3299_v21 = vld [vmem:[%s7453_s27 + $0x20] sm:$0xff] }
 0x8bb   : >> { %6001 = vmatprep.subr.bf16.mxu0 %v6000_v58  ;;  %v3315_v22 = vld [vmem:[%s7453_s27 + $0xa0] sm:$0xff]  ;;  %v3354_v58 = vld [vmem:[%s7453_s27 + $0x1d8] sm:$0xff] }
 0x8bc   : >> { %v3303_v51 = vld [vmem:[%s7453_s27 + $0x40] sm:$0xff]  ;;  %v6040_v3 = vpack.c.bf16 %v3354_v58, %v3338_v57  ;;  %v4048_v58 = vld [vmem:[%s7456_s10 + $0x10] sm:$0xff] }
 0x8bd   : >> { %v6030_v62 = vpack.c.bf16 %v3319_v52, %v3303_v51  ;;  %v4064_v51 = vld [vmem:[%s7456_s10 + $0x90] sm:$0xff] }
 0x8be   : >> { %6003 = vmatpush1.bf16.msra.mxu0 %v6002_v0  ;;  %v3335_v0 = vld [vmem:[%s7453_s27 + $0x140] sm:$0xff]  ;;  %v4096_v52 = vld [vmem:[%s7456_s10 + $0x190] sm:$0xff] }
 0x8bf   : >> { %3470 = vmatprep.subr.mxu0 %v3360_v6  ;;  %v3337_v6 = vld [vmem:[%s7453_s27 + $0x150] sm:$0xff] }
 0x8c2   : >> { %3471 = vmatpush1.msra.mxu0 %v3359_v9 }
 0x8c3   : >> { %6013 = vmatprep.subr.bf16.mxu0 %v6012_v12  ;;  %v3308_v12 = vld [vmem:[%s7453_s27 + $0x68] sm:$0xff] }
 0x980   : >> { %v3022_v24 = vpop.f32.mrb[20].mxu0 }
 0x981   : >> { %v5866_v25 = vpop.f32.mrb[21].mxu0 }
 0x982   : >> { %v3301_v25 = vld [vmem:[%s7453_s27 + $0x30] sm:$0xff] }
 0x984   : >> { %v3098_v26 = vpop.f32.mrb[20].mxu1 }
 0x985   : >> { %v3254_v27 = vadd.f32 %v3098_v26, %v3022_v24  ;;  %v5873_v28 = vpop.f32.mrb[21].mxu1  ;;  %v3317_v26 = vld [vmem:[%s7453_s27 + $0xb0] sm:$0xff] }
 0x986   : >> { %v3348_v28 = vld [vmem:[%s7453_s27 + $0x1a8] sm:$0xff] }
 0x98b   : >> { %v3250_v29 = vpop.f32.mrb[22].mxu1 }
 0x98c   : >> { %v3174_v30 = vpop.f32.mrb[22].mxu0  ;;  %v5887_v31 = vpop.f32.mrb[23].mxu1 }
 0x98d   : >> { %v3255_v32 = vadd.f32 %v3254_v27, %v3174_v30  ;;  %v5880_v33 = vpop.f32.mrb[23].mxu0  ;;  %v3332_v27 = vld [vmem:[%s7453_s27 + $0x128] sm:$0xff]  ;;  %v3350_v30 = vld [vmem:[%s7453_s27 + $0x1b8] sm:$0xff] }
 0x98e   : >> { %v6022_v33 = vpack.c.bf16 %v3317_v26, %v3301_v25  ;;  %v3358_v25 = vld [vmem:[%s7453_s27 + $0x1f8] sm:$0xff]  ;;  %v6044_v26 = vpack.c.bf16 %v3324_v13, %v3308_v12  ;;  %v4082_v12 = vld [vmem:[%s7456_s10 + $0x120] sm:$0xff]  ;;  %v4083_v13 = vld [vmem:[%s7456_s10 + $0x128] sm:$0xff] }
 0x98f   : >> { %v3256_v35 = vadd.f32 %v3255_v32, %v3250_v29  ;;  %v3334_v29 = vld [vmem:[%s7453_s27 + $0x138] sm:$0xff]  ;;  %v6014_v32 = vpack.c.bf16 %v3315_v22, %v3299_v21  ;;  %v3340_v21 = vld [vmem:[%s7453_s27 + $0x168] sm:$0xff] }
 0x990   : >> { %v3356_v22 = vld [vmem:[%s7453_s27 + $0x1e8] sm:$0xff] }
 0x991   : >> { %v3264_v23 = vadd.f32 %v5241_v34, %v3256_v35  ;;  %v3331_v34 = vld [vmem:[%s7453_s27 + $0x120] sm:$0xff] }
 0x993   : >> { %v6935_v36 = vadd.f32 %v3264_v23, %v6681_v48  ;;  %v3298_v48 = vld [vmem:[%s7453_s27 + $0x18] sm:$0xff]  ;;  %v6016_v23 = vpack.c.bf16 %v3348_v28, %v3332_v27 }
 0x994   : >> { %v6004_v50 = vpack.c.bf16 %v3314_v46, %v3298_v48  ;;  %v3304_v48 = vld [vmem:[%s7453_s27 + $0x48] sm:$0xff]  ;;  %v3306_v46 = vld [vmem:[%s7453_s27 + $0x58] sm:$0xff] }
 0x995   : >> { %v3268_v37 = vsel %vm1243_vm6, %v6935_v36, 0.0  ;;  %v6028_v59 = vpack.c.bf16 %v3320_v45, %v3304_v48  ;;  %v3373_v48 = vld [vmem:[%s7453_s27 + $0x270] sm:$0xff]  ;;  %v4095_v45 = vld [vmem:[%s7456_s10 + $0x188] sm:$0xff] }
 0x996   : >> { %3269 = vadd.xlane.f32.xlu0 %v3268_v37  ;;  %6005 = vmatprep.subr.bf16.mxu1 %v6004_v50  ;;  %v6024_v37 = vpack.c.bf16 %v3350_v30, %v3334_v29  ;;  %v3322_v50 = vld [vmem:[%s7453_s27 + $0xd8] sm:$0xff]  ;;  %v3339_v30 = vld [vmem:[%s7453_s27 + $0x160] sm:$0xff] }
 0x997   : >> { %6007 = vmatpush1.bf16.msra.mxu1 %v6006_v54  ;;  %v3321_v54 = vld [vmem:[%s7453_s27 + $0xd0] sm:$0xff]  ;;  %v6036_v61 = vpack.c.bf16 %v3322_v50, %v3306_v46  ;;  %v4046_v46 = vld [vmem:[%s7456_s10] sm:$0xff]  ;;  %v4079_v50 = vld [vmem:[%s7456_s10 + $0x108] sm:$0xff] }
 0x998   : >> { %6009 = vmatprep.subr.bf16.mxu1 %v6008_v63  ;;  %v6038_v63 = vpack.c.bf16 %v3321_v54, %v3305_v53  ;;  %v4097_v53 = vld [vmem:[%s7456_s10 + $0x198] sm:$0xff] }
 0x99b   : >> { %6011 = vmatpush1.bf16.msra.mxu1 %v6010_v4  ;;  %v3351_v4 = vld [vmem:[%s7453_s27 + $0x1c0] sm:$0xff] }
 0x99c   : >> { %3541 = vmatprep.subr.mxu1 %v3362_v7  ;;  %v3353_v7 = vld [vmem:[%s7453_s27 + $0x1d0] sm:$0xff]  ;;  %v6034_v8 = vpack.c.bf16 %v3351_v4, %v3335_v0  ;;  %v4081_v0 = vld [vmem:[%s7456_s10 + $0x118] sm:$0xff]  ;;  %v4098_v4 = vld [vmem:[%s7456_s10 + $0x1a0] sm:$0xff] }
 0x99d   : >> { %v6042_v9 = vpack.c.bf16 %v3353_v7, %v3337_v6  ;;  %v4099_v6 = vld [vmem:[%s7456_s10 + $0x1a8] sm:$0xff] }
 0x99f   : >> { %3542 = vmatpush1.msra.mxu1 %v3361_v10  ;;  %v3368_v10 = vld [vmem:[%s7453_s27 + $0x248] sm:$0xff] }
 0x9a0   : >> { %6021 = vmatprep.subr.bf16.mxu1 %v6020_v15  ;;  %v3367_v15 = vld [vmem:[%s7453_s27 + $0x240] sm:$0xff] }
 0xa23   : >> { %v3270_v38 = vpop.xlane.xlu0 %3269 }
 0xa24   : >> { %v3271_v39 = vmul.f32 0.025, %v3270_v38  ;;  %v3347_v38 = vld [vmem:[%s7453_s27 + $0x1a0] sm:$0xff] }
 0xa26   : >> { %v3272_v40 = vsub.f32 %v6935_v36, %v3271_v39  ;;  %v3333_v39 = vld [vmem:[%s7453_s27 + $0x130] sm:$0xff] }
 0xa28   : >> { %v3273_v41 = vmul.f32 %v3272_v40, %v3272_v40 }
 0xa2a   : >> { %v3274_v42 = vsel %vm1243_vm6, %v3273_v41, 0.0  ;;  %v6018_v41 = vpack.c.bf16 %v3347_v38, %v3331_v34  ;;  %v3341_v34 = vld [vmem:[%s7453_s27 + $0x170] sm:$0xff] }
 0xa2b   : >> { %3275 = vadd.xlane.f32.xlu1 %v3274_v42 }
 0xab8   : >> { %v3276_v16 = vpop.xlane.xlu1 %3275 }
 0xab9   : >> { %v3277_v17 = vmul.f32 0.025, %v3276_v16  ;;  %v3369_v16 = vld [vmem:[%s7453_s27 + $0x250] sm:$0xff] }
 0xabb   : >> { %v3278_v18 = vadd.f32 1e-05, %v3277_v17  ;;  %v3326_v17 = vld [vmem:[%s7453_s27 + $0xf8] sm:$0xff] }
 0xabc   : >> { %v6052_v27 = vpack.c.bf16 %v3326_v17, %v3310_v14  ;;  %v4068_v14 = vld [vmem:[%s7456_s10 + $0xb0] sm:$0xff]  ;;  %v4101_v17 = vld [vmem:[%s7456_s10 + $0x1b8] sm:$0xff] }
 0xabd   : >> { %6404 = vrsqrt.f32 %v3278_v18  ;;  %v3307_v18 = vld [vmem:[%s7453_s27 + $0x60] sm:$0xff] }
 0xac7   : >> { %v6405_v60 = vpop.eup %6404 }
 0xac8   : >> { %v3280_v24 = vmul.f32 %v6405_v60, %v3272_v40  ;;  %v3349_v40 = vld [vmem:[%s7453_s27 + $0x1b0] sm:$0xff] }
 0xac9   : >> { %v6026_v42 = vpack.c.bf16 %v3349_v40, %v3333_v39  ;;  %v3309_v60 = vld [vmem:[%s7453_s27 + $0x70] sm:$0xff]  ;;  %v3372_v39 = vld [vmem:[%s7453_s27 + $0x268] sm:$0xff]  ;;  %v3374_v40 = vld [vmem:[%s7453_s27 + $0x278] sm:$0xff] }
 0xaca   : >> { %v3287_v31 = vmul.f32 %v5242_v19, %v3280_v24  ;;  %v3323_v19 = vld [vmem:[%s7453_s27 + $0xe0] sm:$0xff]  ;;  %v3342_v24 = vld [vmem:[%s7453_s27 + $0x178] sm:$0xff] }
 0xacb   : >> { %v6046_v28 = vpack.c.bf16 %v3323_v19, %v3307_v18  ;;  %v6102_v19 = vpack.c.bf16 %v4083_v13, %v4082_v12  ;;  %v4093_v12 = vld [vmem:[%s7456_s10 + $0x178] sm:$0xff] }
 0xacc   : >> { %v6976_v35 = vadd.f32 %v5243_v20, %v3287_v31  ;;  %v3325_v20 = vld [vmem:[%s7453_s27 + $0xf0] sm:$0xff]  ;;  %v6048_v31 = vpack.c.bf16 %v3356_v22, %v3340_v21 }
 0xacd   : >> { %v6054_v29 = vpack.c.bf16 %v3325_v20, %v3309_v60  ;;  %v4052_v60 = vld [vmem:[%s7456_s10 + $0x30] sm:$0xff]  ;;  %v4053_v20 = vld [vmem:[%s7456_s10 + $0x38] sm:$0xff] }
 0xace   : >> { %5244 = vmatmul.mubr.msk.f32.vlgmr.msra.gmra.mrb[24].mxu0 %vm1243_vm6, %v6976_v35  ;;  %5245 = vmatmul.mubr.msk.f32.vlgmr.msra.gmra.mrb[24].mxu1 %vm1243_vm6, %v6976_v35 }
 0xacf   : >> { %6015 = vmatpush1.bf16.msra.mxu0 %v6014_v32  ;;  %6023 = vmatpush1.bf16.msra.mxu1 %v6022_v33  ;;  %v6056_v32 = vpack.c.bf16 %v3358_v25, %v3342_v24  ;;  %v3355_v33 = vld [vmem:[%s7453_s27 + $0x1e0] sm:$0xff]  ;;  %v4084_v24 = vld [vmem:[%s7456_s10 + $0x130] sm:$0xff]  ;;  %v4085_v25 = vld [vmem:[%s7456_s10 + $0x138] sm:$0xff] }
 0xad0   : >> { %6017 = vmatprep.subr.bf16.mxu0 %v6016_v23  ;;  %6025 = vmatprep.subr.bf16.mxu1 %v6024_v37  ;;  %v3357_v23 = vld [vmem:[%s7453_s27 + $0x1f0] sm:$0xff]  ;;  %v6050_v37 = vpack.c.bf16 %v3355_v33, %v3339_v30  ;;  %v6074_v30 = vpack.c.bf16 %v4053_v20, %v4052_v60  ;;  %v4055_v33 = vld [vmem:[%s7456_s10 + $0x48] sm:$0xff]  ;;  %v3379_v60 = vlaneseq }
 0xad1   : >> { %3668 = vmatprep.mubr.f32.mxu0 %v6461_v5  ;;  %3739 = vmatprep.mubr.f32.mxu1 %v6461_v5  ;;  %v6058_v38 = vpack.c.bf16 %v3357_v23, %v3341_v34 }
 0xad2   : >> { %v7115_v20 = vshrl.u32 %v3379_v60, 7  ;;  %v4165_v60 = vld [vmem:[%s7456_s10 + $0x3b8] sm:$0xff] }
 0xad3   : >> { %6019 = vmatpush1.bf16.msra.mxu0 %v6018_v41  ;;  %6027 = vmatpush1.bf16.msra.mxu1 %v6026_v42  ;;  %v4062_v41 = vld [vmem:[%s7456_s10 + $0x80] sm:$0xff]  ;;  %v4063_v42 = vld [vmem:[%s7456_s10 + $0x88] sm:$0xff] }
 0xad4   : >> { %3612 = vmatprep.subr.mxu0 %v3364_v43  ;;  %3683 = vmatprep.subr.mxu1 %v3366_v44  ;;  %v4094_v43 = vld [vmem:[%s7456_s10 + $0x180] sm:$0xff]  ;;  %v6060_v54 = vpack.c.bf16 %v4063_v42, %v4062_v41  ;;  %v4104_v41 = vld [vmem:[%s7456_s10 + $0x1d0] sm:$0xff]  ;;  %v4105_v42 = vld [vmem:[%s7456_s10 + $0x1d8] sm:$0xff] }
 0xad5   : >> { %v3371_v44 = vld [vmem:[%s7453_s27 + $0x260] sm:$0xff]  ;;  %v6092_v55 = vpack.c.bf16 %v4095_v45, %v4094_v43  ;;  %v4057_v45 = vld [vmem:[%s7456_s10 + $0x58] sm:$0xff] }
 0xad7   : >> { %3613 = vmatpush1.msra.mxu0 %v3363_v47  ;;  %3684 = vmatpush1.msra.mxu1 %v3365_v49  ;;  %v4047_v47 = vld [vmem:[%s7456_s10 + $0x8] sm:$0xff]  ;;  %v4078_v49 = vld [vmem:[%s7456_s10 + $0x100] sm:$0xff] }
 0xad8   : >> { %5246 = vmatmul.mubr.msk.f32.vlgmr.msra.gmra.mrb[26].mxu0 %vm1243_vm6, %v6976_v35  ;;  %5247 = vmatmul.mubr.msk.f32.vlgmr.msra.gmra.mrb[26].mxu1 %vm1243_vm6, %v6976_v35  ;;  %v6062_v56 = vpack.c.bf16 %v4047_v47, %v4046_v46  ;;  %v6094_v57 = vpack.c.bf16 %v4079_v50, %v4078_v49  ;;  %v6112_v47 = vpack.c.bf16 %v4105_v42, %v4104_v41  ;;  %v4088_v49 = vld [vmem:[%s7456_s10 + $0x150] sm:$0xff]  ;;  %v4089_v50 = vld [vmem:[%s7456_s10 + $0x158] sm:$0xff]  ;;  %v4143_v41 = vld [vmem:[%s7456_s10 + $0x308] sm:$0xff] }
 0xad9   : >> { %6029 = vmatprep.subr.bf16.mxu0 %v6028_v59  ;;  %6037 = vmatprep.subr.bf16.mxu1 %v6036_v61  ;;  %v4049_v59 = vld [vmem:[%s7456_s10 + $0x18] sm:$0xff]  ;;  %v4128_v42 = vld [vmem:[%s7456_s10 + $0x290] sm:$0xff] }
 0xada   : >> { %6031 = vmatpush1.bf16.msra.mxu0 %v6030_v62  ;;  %6039 = vmatpush1.bf16.msra.mxu1 %v6038_v63  ;;  %v6096_v62 = vpack.c.bf16 %v4097_v53, %v4096_v52  ;;  %v4080_v63 = vld [vmem:[%s7456_s10 + $0x110] sm:$0xff]  ;;  %v6066_v7 = vpack.c.bf16 %v4049_v59, %v4048_v58  ;;  %v4106_v52 = vld [vmem:[%s7456_s10 + $0x1e0] sm:$0xff]  ;;  %v4107_v53 = vld [vmem:[%s7456_s10 + $0x1e8] sm:$0xff] }
 0xadb   : >> { %6033 = vmatprep.subr.bf16.mxu0 %v6032_v1  ;;  %6041 = vmatprep.subr.bf16.mxu1 %v6040_v3  ;;  %v4066_v1 = vld [vmem:[%s7456_s10 + $0xa0] sm:$0xff]  ;;  %v4067_v3 = vld [vmem:[%s7456_s10 + $0xa8] sm:$0xff]  ;;  %v6116_v58 = vpack.c.bf16 %v4107_v53, %v4106_v52  ;;  %v3409_v52 = vsub.s32 7, %v7115_v20  ;;  %v4112_v53 = vld [vmem:[%s7456_s10 + $0x210] sm:$0xff] }
 0xadc   : >> { %3810 = vmatprep.mubr.f32.mxu0 %v6461_v5  ;;  %3881 = vmatprep.mubr.f32.mxu1 %v6461_v5  ;;  %v4059_v59 = vld [vmem:[%s7456_s10 + $0x68] sm:$0xff] }
 0xade   : >> { %6035 = vmatpush1.bf16.msra.mxu0 %v6034_v8  ;;  %6043 = vmatpush1.bf16.msra.mxu1 %v6042_v9  ;;  %v6098_v8 = vpack.c.bf16 %v4081_v0, %v4080_v63  ;;  %v4050_v9 = vld [vmem:[%s7456_s10 + $0x20] sm:$0xff] }
 0xadf   : >> { %3754 = vmatprep.subr.mxu0 %v3368_v10  ;;  %3825 = vmatprep.subr.mxu1 %v3370_v11  ;;  %v4051_v10 = vld [vmem:[%s7456_s10 + $0x28] sm:$0xff]  ;;  %v6100_v11 = vpack.c.bf16 %v4099_v6, %v4098_v4  ;;  %v4108_v4 = vld [vmem:[%s7456_s10 + $0x1f0] sm:$0xff] }
 0xae0   : >> { %v6070_v18 = vpack.c.bf16 %v4051_v10, %v4050_v9  ;;  %v4061_v9 = vld [vmem:[%s7456_s10 + $0x78] sm:$0xff] }
 0xae2   : >> { %3755 = vmatpush1.msra.mxu0 %v3367_v15  ;;  %3826 = vmatpush1.msra.mxu1 %v3369_v16  ;;  %v4069_v15 = vld [vmem:[%s7456_s10 + $0xb8] sm:$0xff]  ;;  %v4100_v16 = vld [vmem:[%s7456_s10 + $0x1b0] sm:$0xff] }
 0xae3   : >> { %5248 = vmatmul.mubr.msk.f32.vlgmr.msra.gmra.mrb[28].mxu0 %vm1243_vm6, %v6976_v35  ;;  %5249 = vmatmul.mubr.msk.f32.vlgmr.msra.gmra.mrb[28].mxu1 %vm1243_vm6, %v6976_v35  ;;  %v6072_v21 = vpack.c.bf16 %v4069_v15, %v4068_v14  ;;  %v6104_v22 = vpack.c.bf16 %v4101_v17, %v4100_v16  ;;  %v4126_v14 = vld [vmem:[%s7456_s10 + $0x280] sm:$0xff]  ;;  %v4127_v15 = vld [vmem:[%s7456_s10 + $0x288] sm:$0xff] }
 0xae4   : >> { %6045 = vmatprep.subr.bf16.mxu0 %v6044_v26  ;;  %6053 = vmatprep.subr.bf16.mxu1 %v6052_v27  ;;  %v4070_v26 = vld [vmem:[%s7456_s10 + $0xc0] sm:$0xff]  ;;  %v4071_v27 = vld [vmem:[%s7456_s10 + $0xc8] sm:$0xff]  ;;  %v6124_v17 = vpack.c.bf16 %v4127_v15, %v4126_v14  ;;  %v4132_v15 = vld [vmem:[%s7456_s10 + $0x2b0] sm:$0xff] }
 0xae5   : >> { %6047 = vmatpush1.bf16.msra.mxu0 %v6046_v28  ;;  %6055 = vmatpush1.bf16.msra.mxu1 %v6054_v29  ;;  %v4102_v28 = vld [vmem:[%s7456_s10 + $0x1c0] sm:$0xff]  ;;  %v4103_v29 = vld [vmem:[%s7456_s10 + $0x1c8] sm:$0xff]  ;;  %v6076_v34 = vpack.c.bf16 %v4071_v27, %v4070_v26  ;;  %v3393_v26 = vsub.s32 3, %v7115_v20 }
 0xae6   : >> { %6049 = vmatprep.subr.bf16.mxu0 %v6048_v31  ;;  %6057 = vmatprep.subr.bf16.mxu1 %v6056_v32  ;;  %v6106_v31 = vpack.c.bf16 %v4085_v25, %v4084_v24  ;;  %v4054_v32 = vld [vmem:[%s7456_s10 + $0x40] sm:$0xff]  ;;  %v6108_v23 = vpack.c.bf16 %v4103_v29, %v4102_v28  ;;  %v3385_v25 = vsub.s32 1, %v7115_v20  ;;  %v4147_v14 = vld [vmem:[%s7456_s10 + $0x328] sm:$0xff] }
 0xae7   : >> { %3952 = vmatprep.mubr.f32.mxu0 %v6461_v5  ;;  %4023 = vmatprep.mubr.f32.mxu1 %v6461_v5  ;;  %v4065_v5 = vld [vmem:[%s7456_s10 + $0x98] sm:$0xff]  ;;  %v6078_v43 = vpack.c.bf16 %v4055_v33, %v4054_v32  ;;  %v4158_v16 = vld [vmem:[%s7456_s10 + $0x380] sm:$0xff] }
 0xae8   : >> { %v6064_v61 = vpack.c.bf16 %v4065_v5, %v4064_v51  ;;  %v4074_v51 = vld [vmem:[%s7456_s10 + $0xe0] sm:$0xff]  ;;  %v4075_v5 = vld [vmem:[%s7456_s10 + $0xe8] sm:$0xff] }
 0xae9   : >> { %6051 = vmatpush1.bf16.msra.mxu0 %v6050_v37  ;;  %6059 = vmatpush1.bf16.msra.mxu1 %v6058_v38  ;;  %v4086_v37 = vld [vmem:[%s7456_s10 + $0x140] sm:$0xff]  ;;  %v4087_v38 = vld [vmem:[%s7456_s10 + $0x148] sm:$0xff] }
 0xaea   : >> { %3896 = vmatprep.subr.mxu0 %v3372_v39  ;;  %3967 = vmatprep.subr.mxu1 %v3374_v40  ;;  %v4072_v39 = vld [vmem:[%s7456_s10 + $0xd0] sm:$0xff]  ;;  %v4073_v40 = vld [vmem:[%s7456_s10 + $0xd8] sm:$0xff]  ;;  %v7120_v24 = vld [vmem:[%s7457_s15] sm:$0xff] }
 0xaeb   : >> { %v6080_v46 = vpack.c.bf16 %v4073_v40, %v4072_v39  ;;  %v3386_v29 = vrot.slane %v7120_v24, %v3385_v25  ;;  %v4110_v33 = vld [vmem:[%s7456_s10 + $0x200] sm:$0xff] }
 0xaec   : >> { %v4142_v40 = vld [vmem:[%s7456_s10 + $0x300] sm:$0xff] }
 0xaed   : >> { %3897 = vmatpush1.msra.mxu0 %v3371_v44  ;;  %3968 = vmatpush1.msra.mxu1 %v3373_v48  ;;  %v6110_v44 = vpack.c.bf16 %v4087_v38, %v4086_v37  ;;  %v4056_v48 = vld [vmem:[%s7456_s10 + $0x50] sm:$0xff] }
 0xaee   : >> { %5250 = vmatmul.mubr.msk.f32.vlgmr.msra.gmra.mrb[30].mxu0 %vm1243_vm6, %v6976_v35  ;;  %5251 = vmatmul.mubr.msk.f32.vlgmr.msra.gmra.mrb[30].mxu1 %vm1243_vm6, %v6976_v35  ;;  %v6068_v35 = vpack.c.bf16 %v4067_v3, %v4066_v1  ;;  %v4076_v1 = vld [vmem:[%s7456_s10 + $0xf0] sm:$0xff]  ;;  %v4077_v3 = vld [vmem:[%s7456_s10 + $0xf8] sm:$0xff] }
 0xaef   : >> { %6061 = vmatprep.subr.bf16.mxu0 %v6060_v54  ;;  %6093 = vmatprep.subr.bf16.mxu1 %v6092_v55  ;;  %v6082_v54 = vpack.c.bf16 %v4057_v45, %v4056_v48  ;;  %v6114_v55 = vpack.c.bf16 %v4089_v50, %v4088_v49  ;;  %v6088_v6 = vpack.c.bf16 %v4077_v3, %v4076_v1  ;;  %v4129_v48 = vld [vmem:[%s7456_s10 + $0x298] sm:$0xff]  ;;  %v4160_v45 = vld [vmem:[%s7456_s10 + $0x390] sm:$0xff]  ;;  %v3401_v49 = vsub.s32 5, %v7115_v20  ;;  %v4163_v1 = vld [vmem:[%s7456_s10 + $0x3a8] sm:$0xff] }
 0xaf0   : >> { %6063 = vmatpush3.bf16.msra.mxu0 %v6062_v56  ;;  %6095 = vmatpush3.bf16.msra.mxu1 %v6094_v57  ;;  %v4058_v56 = vld [vmem:[%s7456_s10 + $0x60] sm:$0xff]  ;;  %v6084_v57 = vpack.c.bf16 %v4075_v5, %v4074_v51  ;;  %v6158_v5 = vpack.c.bf16 %v4143_v41, %v4142_v40  ;;  %v4135_v41 = vld [vmem:[%s7456_s10 + $0x2c8] sm:$0xff] }
 0xaf1   : >> { %6065 = vmatprep.subr.bf16.mxu0 %v6064_v61  ;;  %6097 = vmatprep.subr.bf16.mxu1 %v6096_v62  ;;  %v4090_v61 = vld [vmem:[%s7456_s10 + $0x160] sm:$0xff]  ;;  %v4091_v62 = vld [vmem:[%s7456_s10 + $0x168] sm:$0xff]  ;;  %v6086_v63 = vpack.c.bf16 %v4059_v59, %v4058_v56  ;;  %v4144_v59 = vld [vmem:[%s7456_s10 + $0x310] sm:$0xff]  ;;  %v3402_v3 = vrot.slane %v7120_v24, %v3401_v49 }
 0xaf2   : >> { %v6118_v0 = vpack.c.bf16 %v4091_v62, %v4090_v61  ;;  %v4145_v61 = vld [vmem:[%s7456_s10 + $0x318] sm:$0xff]  ;;  %v4130_v62 = vld [vmem:[%s7456_s10 + $0x2a0] sm:$0xff] }
 0xaf3   : >> { %v4134_v40 = vld [vmem:[%s7456_s10 + $0x2c0] sm:$0xff] }
 0xaf4   : >> { %6067 = vmatpush3.bf16.msra.mxu0 %v6066_v7  ;;  %6099 = vmatpush3.bf16.msra.mxu1 %v6098_v8  ;;  %v4109_v7 = vld [vmem:[%s7456_s10 + $0x1f8] sm:$0xff]  ;;  %v4060_v8 = vld [vmem:[%s7456_s10 + $0x70] sm:$0xff] }
 0xaf5   : >> { %6069 = vmatprep.subr.bf16.mxu0 %v6068_v35  ;;  %6101 = vmatprep.subr.bf16.mxu1 %v6100_v11  ;;  %v6120_v10 = vpack.c.bf16 %v4109_v7, %v4108_v4  ;;  %v6090_v35 = vpack.c.bf16 %v4061_v9, %v4060_v8  ;;  %v4092_v11 = vld [vmem:[%s7456_s10 + $0x170] sm:$0xff]  ;;  %v3410_v4 = vrot.slane %v7120_v24, %v3409_v52 }
 0xaf6   : >> { %v6122_v13 = vpack.c.bf16 %v4093_v12, %v4092_v11  ;;  %v6162_v7 = vpack.c.bf16 %v4145_v61, %v4144_v59  ;;  %v4169_v59 = vld [vmem:[%s7456_s10 + $0x3d8] sm:$0xff] }
 0xaf8   : >> { %6071 = vmatpush3.bf16.msra.mxu0 %v6070_v18  ;;  %6103 = vmatpush3.bf16.msra.mxu1 %v6102_v19  ;;  %v4159_v18 = vld [vmem:[%s7456_s10 + $0x388] sm:$0xff] }
 0xaf9   : >> { %6073 = vmatprep.subr.bf16.mxu0 %v6072_v21  ;;  %6105 = vmatprep.subr.bf16.mxu1 %v6104_v22  ;;  %v6156_v19 = vpack.c.bf16 %v4159_v18, %v4158_v16  ;;  %v3381_v21 = vsub.s32 0, %v7115_v20  ;;  %v3389_v22 = vsub.s32 2, %v7115_v20  ;;  %v4133_v18 = vld [vmem:[%s7456_s10 + $0x2b8] sm:$0xff] }
 0xafb   : >> { %v3382_v27 = vrot.slane %v7120_v24, %v3381_v21  ;;  %v3390_v28 = vrot.slane %v7120_v24, %v3389_v22 }
 0xafc   : >> { %6075 = vmatpush3.bf16.msra.mxu0 %v6074_v30  ;;  %6107 = vmatpush3.bf16.msra.mxu1 %v6106_v31  ;;  %v3394_v30 = vrot.slane %v7120_v24, %v3393_v26 }
 0xafd   : >> { %6077 = vmatprep.subr.bf16.mxu0 %v6076_v34  ;;  %6109 = vmatprep.subr.bf16.mxu1 %v6108_v23  ;;  %v4111_v34 = vld [vmem:[%s7456_s10 + $0x208] sm:$0xff] }
 0xb00   : >> { %6079 = vmatpush3.bf16.msra.mxu0 %v6078_v43  ;;  %6111 = vmatpush3.bf16.msra.mxu1 %v6110_v44 }
 0xb01   : >> { %6081 = vmatprep.subr.bf16.mxu0 %v6080_v46  ;;  %6113 = vmatprep.subr.bf16.mxu1 %v6112_v47  ;;  %v4161_v46 = vld [vmem:[%s7456_s10 + $0x398] sm:$0xff]  ;;  %v6126_v47 = vpack.c.bf16 %v4111_v34, %v4110_v33  ;;  %v4148_v33 = vld [vmem:[%s7456_s10 + $0x330] sm:$0xff] }
 0xb04   : >> { %6083 = vmatpush3.bf16.msra.mxu0 %v6082_v54  ;;  %6115 = vmatpush3.bf16.msra.mxu1 %v6114_v55  ;;  %v4113_v54 = vld [vmem:[%s7456_s10 + $0x218] sm:$0xff] }
 0xb05   : >> { %6085 = vmatprep.subr.bf16.mxu0 %v6084_v57  ;;  %6117 = vmatprep.subr.bf16.mxu1 %v6116_v58  ;;  %v6128_v57 = vpack.c.bf16 %v4129_v48, %v4128_v42  ;;  %v6160_v58 = vpack.c.bf16 %v4161_v46, %v4160_v45  ;;  %v7179_v42 = vld [vmem:[%s7457_s15 + $0x8] sm:$0xff]  ;;  %v6140_v46 = vpack.c.bf16 %v4135_v41, %v4134_v40  ;;  %v4124_v40 = vld [vmem:[%s7456_s10 + $0x270] sm:$0xff]  ;;  %v4125_v41 = vld [vmem:[%s7456_s10 + $0x278] sm:$0xff] }
 0xb08   : >> { %6087 = vmatpush3.bf16.msra.mxu0 %v6086_v63  ;;  %6119 = vmatpush3.bf16.msra.mxu1 %v6118_v0  ;;  %v4131_v63 = vld [vmem:[%s7456_s10 + $0x2a8] sm:$0xff]  ;;  %v4162_v0 = vld [vmem:[%s7456_s10 + $0x3a0] sm:$0xff] }
 0xb09   : >> { %6089 = vmatprep.subr.bf16.mxu0 %v6088_v6  ;;  %6121 = vmatprep.subr.bf16.mxu1 %v6120_v10  ;;  %v6130_v6 = vpack.c.bf16 %v4113_v54, %v4112_v53  ;;  %v6132_v8 = vpack.c.bf16 %v4131_v63, %v4130_v62  ;;  %v6164_v9 = vpack.c.bf16 %v4163_v1, %v4162_v0  ;;  %v4114_v10 = vld [vmem:[%s7456_s10 + $0x220] sm:$0xff]  ;;  %v4120_v0 = vld [vmem:[%s7456_s10 + $0x250] sm:$0xff]  ;;  %v4121_v1 = vld [vmem:[%s7456_s10 + $0x258] sm:$0xff] }
 0xb0a   : >> { %v3422_v53 = vrot.slane %v7179_v42, %v3389_v22 }
 0xb0c   : >> { %6091 = vmatpush3.bf16.msra.mxu0 %v6090_v35  ;;  %6123 = vmatpush3.bf16.msra.mxu1 %v6122_v13  ;;  %v4115_v35 = vld [vmem:[%s7456_s10 + $0x228] sm:$0xff]  ;;  %v4146_v13 = vld [vmem:[%s7456_s10 + $0x320] sm:$0xff] }
 0xb0d   : >> { %6125 = vmatprep.subr.bf16.mxu0 %v6124_v17  ;;  %6157 = vmatprep.subr.bf16.mxu1 %v6156_v19  ;;  %v4164_v19 = vld [vmem:[%s7456_s10 + $0x3b0] sm:$0xff] }
 0xba1   : >> { %v3528_v31 = vpop.f32.mrb[24].mxu0  ;;  %v3599_v32 = vpop.f32.mrb[24].mxu1 }
 0xba2   : >> { %v3529_v23 = vadd.f32 %v3528_v31, %v3382_v27  ;;  %v3600_v37 = vadd.f32 %v3599_v32, %v3390_v28  ;;  %v3530_v38 = vpop.f32.mrb[25].mxu0  ;;  %v3601_v39 = vpop.f32.mrb[25].mxu1  ;;  %v4116_v31 = vld [vmem:[%s7456_s10 + $0x230] sm:$0xff]  ;;  %v4117_v32 = vld [vmem:[%s7456_s10 + $0x238] sm:$0xff] }
 0xba3   : >> { %v3531_v43 = vadd.f32 %v3530_v38, %v3386_v29  ;;  %v3602_v44 = vadd.f32 %v3601_v39, %v3394_v30  ;;  %v6134_v29 = vpack.c.bf16 %v4115_v35, %v4114_v10  ;;  %v6166_v30 = vpack.c.bf16 %v4147_v14, %v4146_v13  ;;  %v4149_v39 = vld [vmem:[%s7456_s10 + $0x338] sm:$0xff]  ;;  %v4138_v35 = vld [vmem:[%s7456_s10 + $0x2e0] sm:$0xff]  ;;  %v4139_v13 = vld [vmem:[%s7456_s10 + $0x2e8] sm:$0xff] }
 0xba4   : >> { %v4030_v55 = vmax.f32 %v3529_v23, 0.0  ;;  %v4032_v56 = vmax.f32 %v3600_v37, 0.0  ;;  %v6136_v37 = vpack.c.bf16 %v4133_v18, %v4132_v15  ;;  %v6168_v38 = vpack.c.bf16 %v4165_v60, %v4164_v19  ;;  %v4153_v10 = vld [vmem:[%s7456_s10 + $0x358] sm:$0xff]  ;;  %v4170_v14 = vld [vmem:[%s7456_s10 + $0x3e0] sm:$0xff]  ;;  %v4171_v15 = vld [vmem:[%s7456_s10 + $0x3e8] sm:$0xff] }
 0xba5   : >> { %v4031_v50 = vmax.f32 %v3531_v43, 0.0  ;;  %v4033_v51 = vmax.f32 %v3602_v44, 0.0  ;;  %v4166_v43 = vld [vmem:[%s7456_s10 + $0x3c0] sm:$0xff]  ;;  %v4167_v44 = vld [vmem:[%s7456_s10 + $0x3c8] sm:$0xff]  ;;  %v6138_v48 = vpack.c.bf16 %v4117_v32, %v4116_v31  ;;  %v6170_v45 = vpack.c.bf16 %v4149_v39, %v4148_v33  ;;  %v4140_v32 = vld [vmem:[%s7456_s10 + $0x2f0] sm:$0xff] }
 0xba6   : >> { %v6172_v54 = vpack.c.bf16 %v4167_v44, %v4166_v43  ;;  %v6148_v19 = vpack.c.bf16 %v4139_v13, %v4138_v35  ;;  %v4122_v60 = vld [vmem:[%s7456_s10 + $0x260] sm:$0xff]  ;;  %v4155_v31 = vld [vmem:[%s7456_s10 + $0x368] sm:$0xff]  ;;  %v4141_v33 = vld [vmem:[%s7456_s10 + $0x2f8] sm:$0xff] }
 0xba7   : >> { %4373 = vmatprep.mubr.f32.mxu0 %v4031_v50  ;;  %4443 = vmatprep.mubr.f32.mxu1 %v4033_v51  ;;  %v4119_v50 = vld [vmem:[%s7456_s10 + $0x248] sm:$0xff]  ;;  %v4150_v51 = vld [vmem:[%s7456_s10 + $0x340] sm:$0xff]  ;;  %v4156_v43 = vld [vmem:[%s7456_s10 + $0x370] sm:$0xff] }
 0xba8   : >> { %4374 = vmatmul.mubr.f32.vlgmr.msra.gmra.mrb[32].mxu0 %v4030_v55  ;;  %4444 = vmatmul.mubr.f32.vlgmr.msra.gmra.mrb[32].mxu1 %v4032_v56  ;;  %v4151_v55 = vld [vmem:[%s7456_s10 + $0x348] sm:$0xff]  ;;  %v4136_v56 = vld [vmem:[%s7456_s10 + $0x2d0] sm:$0xff]  ;;  %v4193_v13 = vld [vmem:[%s7456_s10 + $0x498] sm:$0xff] }
 0xba9   : >> { %6127 = vmatpush3.bf16.msra.mxu0 %v6126_v47  ;;  %6159 = vmatpush3.bf16.msra.mxu1 %v6158_v5  ;;  %v4118_v47 = vld [vmem:[%s7456_s10 + $0x240] sm:$0xff]  ;;  %v3414_v5 = vrot.slane %v7179_v42, %v3381_v21  ;;  %v6174_v21 = vpack.c.bf16 %v4151_v55, %v4150_v51  ;;  %v4223_v55 = vld [vmem:[%s7456_s10 + $0x588] sm:$0xff]  ;;  %v4192_v35 = vld [vmem:[%s7456_s10 + $0x490] sm:$0xff] }
 0xbaa   : >> { %6129 = vmatprep.subr.bf16.mxu0 %v6128_v57  ;;  %6161 = vmatprep.subr.bf16.mxu1 %v6160_v58  ;;  %v4137_v57 = vld [vmem:[%s7456_s10 + $0x2d8] sm:$0xff]  ;;  %v4168_v58 = vld [vmem:[%s7456_s10 + $0x3d0] sm:$0xff]  ;;  %v6142_v61 = vpack.c.bf16 %v4119_v50, %v4118_v47  ;;  %v4190_v47 = vld [vmem:[%s7456_s10 + $0x480] sm:$0xff] }
 0xbab   : >> { %v7162_v11 = vpop.f32.mrb[26].mxu0  ;;  %v7164_v12 = vpop.f32.mrb[26].mxu1  ;;  %v6144_v22 = vpack.c.bf16 %v4137_v57, %v4136_v56  ;;  %v4191_v50 = vld [vmem:[%s7456_s10 + $0x488] sm:$0xff]  ;;  %v3426_v56 = vrot.slane %v7179_v42, %v3393_v26  ;;  %v4174_v26 = vld [vmem:[%s7456_s10 + $0x400] sm:$0xff] }
 0xbac   : >> { %v3672_v16 = vpop.f32.mrb[27].mxu0  ;;  %v3743_v17 = vpop.f32.mrb[27].mxu1 }
 0xbad   : >> { %v3673_v27 = vadd.f32 %v3672_v16, %v3402_v3  ;;  %v3744_v28 = vadd.f32 %v3743_v17, %v3410_v4  ;;  %6131 = vmatpush3.bf16.msra.mxu0 %v6130_v6  ;;  %6163 = vmatpush3.bf16.msra.mxu1 %v6162_v7  ;;  %v4152_v3 = vld [vmem:[%s7456_s10 + $0x350] sm:$0xff]  ;;  %v3397_v16 = vsub.s32 4, %v7115_v20  ;;  %v6146_v17 = vpack.c.bf16 %v4121_v1, %v4120_v0  ;;  %v4175_v0 = vld [vmem:[%s7456_s10 + $0x408] sm:$0xff] }
 0xbae   : >> { %6133 = vmatprep.subr.bf16.mxu0 %v6132_v8  ;;  %6165 = vmatprep.subr.bf16.mxu1 %v6164_v9  ;;  %v6176_v9 = vpack.c.bf16 %v4169_v59, %v4168_v58  ;;  %v6178_v18 = vpack.c.bf16 %v4153_v10, %v4152_v3  ;;  %v6154_v59 = vpack.c.bf16 %v4125_v41, %v4124_v40  ;;  %v4206_v3 = vld [vmem:[%s7456_s10 + $0x500] sm:$0xff]  ;;  %v4179_v41 = vld [vmem:[%s7456_s10 + $0x428] sm:$0xff] }
 0xbaf   : >> { %v4035_v34 = vmax.f32 %v3673_v27, 0.0  ;;  %v4037_v23 = vmax.f32 %v3744_v28, 0.0  ;;  %v4123_v27 = vld [vmem:[%s7456_s10 + $0x268] sm:$0xff]  ;;  %v4154_v28 = vld [vmem:[%s7456_s10 + $0x360] sm:$0xff] }
 0xbb0   : >> { %v6150_v39 = vpack.c.bf16 %v4123_v27, %v4122_v60  ;;  %v4177_v60 = vld [vmem:[%s7456_s10 + $0x418] sm:$0xff]  ;;  %v4178_v40 = vld [vmem:[%s7456_s10 + $0x420] sm:$0xff] }
 0xbb1   : >> { %6135 = vmatpush3.bf16.msra.mxu0 %v6134_v29  ;;  %4513 = vmatprep.mubr.f32.mxu0 %v4035_v34  ;;  %v3405_v29 = vsub.s32 6, %v7115_v20  ;;  %v4172_v34 = vld [vmem:[%s7456_s10 + $0x3f0] sm:$0xff]  ;;  %v4271_v20 = vld [vmem:[%s7456_s10 + $0x708] sm:$0xff] }
 0xbb2   : >> { %6167 = vmatpush3.bf16.msra.mxu1 %v6166_v30  ;;  %4583 = vmatprep.mubr.f32.mxu1 %v4037_v23  ;;  %v6180_v30 = vpack.c.bf16 %v4171_v15, %v4170_v14  ;;  %v4173_v23 = vld [vmem:[%s7456_s10 + $0x3f8] sm:$0xff]  ;;  %v6190_v15 = vpack.c.bf16 %v4175_v0, %v4174_v26 }
 0xbb3   : >> { %6137 = vmatprep.subr.bf16.mxu0 %v6136_v37  ;;  %6169 = vmatprep.subr.bf16.mxu1 %v6168_v38  ;;  %v3398_v37 = vrot.slane %v7120_v24, %v3397_v16  ;;  %v3430_v38 = vrot.slane %v7179_v42, %v3397_v16  ;;  %v3438_v44 = vrot.slane %v7179_v42, %v3405_v29  ;;  %v4224_v16 = vld [vmem:[%s7456_s10 + $0x590] sm:$0xff] }
 0xbb4   : >> { %v3406_v51 = vrot.slane %v7120_v24, %v3405_v29  ;;  %v4209_v29 = vld [vmem:[%s7456_s10 + $0x518] sm:$0xff] }
 0xbb5   : >> { %6139 = vmatpush3.bf16.msra.mxu0 %v6138_v48  ;;  %v6182_v48 = vpack.c.bf16 %v4155_v31, %v4154_v28  ;;  %v6192_v28 = vpack.c.bf16 %v4193_v13, %v4192_v35  ;;  %v4215_v35 = vld [vmem:[%s7456_s10 + $0x548] sm:$0xff]  ;;  %v4200_v13 = vld [vmem:[%s7456_s10 + $0x4d0] sm:$0xff] }
 0xbb6   : >> { %v3812_v62 = vpop.f32.mrb[28].mxu0  ;;  %v3883_v63 = vpop.f32.mrb[28].mxu1  ;;  %6171 = vmatpush3.bf16.msra.mxu1 %v6170_v45  ;;  %6141 = vmatprep.subr.bf16.mxu0 %v6140_v46  ;;  %v6152_v45 = vpack.c.bf16 %v4141_v33, %v4140_v32  ;;  %v4157_v46 = vld [vmem:[%s7456_s10 + $0x378] sm:$0xff]  ;;  %v3742_v1 = vadd.f32 %v7164_v12, %v3406_v51  ;;  %v4226_v33 = vld [vmem:[%s7456_s10 + $0x5a0] sm:$0xff]  ;;  %v6198_v51 = vpack.c.bf16 %v4179_v41, %v4178_v40  ;;  %v4219_v40 = vld [vmem:[%s7456_s10 + $0x568] sm:$0xff] }
 0xbb7   : >> { %v7200_v4 = vadd.f32 %v3812_v62, %v3414_v5  ;;  %v7202_v6 = vadd.f32 %v3883_v63, %v3422_v53  ;;  %v7204_v7 = vpop.f32.mrb[29].mxu0  ;;  %v7206_v8 = vpop.f32.mrb[29].mxu1  ;;  %6173 = vmatprep.subr.bf16.mxu1 %v6172_v54  ;;  %v6184_v5 = vpack.c.bf16 %v4173_v23, %v4172_v34  ;;  %v3418_v53 = vrot.slane %v7179_v42, %v3385_v25  ;;  %v4222_v54 = vld [vmem:[%s7456_s10 + $0x580] sm:$0xff]  ;;  %v4225_v12 = vld [vmem:[%s7456_s10 + $0x598] sm:$0xff]  ;;  %v4227_v34 = vld [vmem:[%s7456_s10 + $0x5a8] sm:$0xff] }
 0xbb8   : >> { %v6186_v24 = vpack.c.bf16 %v4157_v46, %v4156_v43  ;;  %v3671_v62 = vadd.f32 %v7162_v11, %v3398_v37  ;;  %v6220_v11 = vpack.c.bf16 %v4223_v55, %v4222_v54  ;;  %v3886_v14 = vadd.f32 %v7206_v8, %v3426_v56  ;;  %v4194_v8 = vld [vmem:[%s7456_s10 + $0x4a0] sm:$0xff]  ;;  %v4197_v46 = vld [vmem:[%s7456_s10 + $0x4b8] sm:$0xff]  ;;  %v4180_v54 = vld [vmem:[%s7456_s10 + $0x430] sm:$0xff] }
 0xbb9   : >> { %6143 = vmatpush3.bf16.msra.mxu0 %v6142_v61  ;;  %v6188_v61 = vpack.c.bf16 %v4191_v50, %v4190_v47  ;;  %v3815_v10 = vadd.f32 %v7204_v7, %v3418_v53  ;;  %v4208_v7 = vld [vmem:[%s7456_s10 + $0x510] sm:$0xff]  ;;  %v4036_v27 = vmax.f32 %v3742_v1, 0.0  ;;  %v6224_v32 = vpack.c.bf16 %v4225_v12, %v4224_v16  ;;  %v4210_v43 = vld [vmem:[%s7456_s10 + $0x520] sm:$0xff]  ;;  %v4229_v50 = vld [vmem:[%s7456_s10 + $0x5b8] sm:$0xff] }
 0xbba   : >> { %6175 = vmatpush3.bf16.msra.mxu1 %v6174_v21  ;;  %6145 = vmatprep.subr.bf16.mxu0 %v6144_v22  ;;  %v4041_v23 = vmax.f32 %v3886_v14, 0.0  ;;  %v4228_v47 = vld [vmem:[%s7456_s10 + $0x5b0] sm:$0xff]  ;;  %v4181_v55 = vld [vmem:[%s7456_s10 + $0x438] sm:$0xff] }
 0xbbb   : >> { %6177 = vmatprep.subr.bf16.mxu1 %v6176_v9  ;;  %v4207_v9 = vld [vmem:[%s7456_s10 + $0x508] sm:$0xff]  ;;  %v4039_v31 = vmax.f32 %v3815_v10, 0.0  ;;  %v4212_v56 = vld [vmem:[%s7456_s10 + $0x530] sm:$0xff]  ;;  %v6202_v26 = vpack.c.bf16 %v4181_v55, %v4180_v54  ;;  %v4201_v14 = vld [vmem:[%s7456_s10 + $0x4d8] sm:$0xff] }
 0xbbc   : >> { %v4233_v16 = vld [vmem:[%s7456_s10 + $0x5d8] sm:$0xff]  ;;  %v4204_v41 = vld [vmem:[%s7456_s10 + $0x4f0] sm:$0xff]  ;;  %v4254_v55 = vld [vmem:[%s7456_s10 + $0x680] sm:$0xff] }
 0xbbd   : >> { %6147 = vmatpush3.bf16.msra.mxu0 %v6146_v17  ;;  %v4034_v17 = vmax.f32 %v3671_v62, 0.0  ;;  %v4231_v62 = vld [vmem:[%s7456_s10 + $0x5c8] sm:$0xff]  ;;  %v4221_v54 = vld [vmem:[%s7456_s10 + $0x578] sm:$0xff] }
 0xbbe   : >> { %6179 = vmatpush3.bf16.msra.mxu1 %v6178_v18  ;;  %6149 = vmatprep.subr.bf16.mxu0 %v6148_v19  ;;  %v6222_v18 = vpack.c.bf16 %v4207_v9, %v4206_v3  ;;  %v4176_v19 = vld [vmem:[%s7456_s10 + $0x410] sm:$0xff]  ;;  %v4183_v3 = vld [vmem:[%s7456_s10 + $0x448] sm:$0xff]  ;;  %v4214_v9 = vld [vmem:[%s7456_s10 + $0x540] sm:$0xff] }
 0xbbf   : >> { %6181 = vmatprep.subr.bf16.mxu1 %v6180_v30  ;;  %v4195_v30 = vld [vmem:[%s7456_s10 + $0x4a8] sm:$0xff]  ;;  %v6194_v37 = vpack.c.bf16 %v4177_v60, %v4176_v19  ;;  %v4184_v19 = vld [vmem:[%s7456_s10 + $0x450] sm:$0xff]  ;;  %v4185_v60 = vld [vmem:[%s7456_s10 + $0x458] sm:$0xff] }
 0xbc1   : >> { %v3954_v57 = vpop.f32.mrb[30].mxu0  ;;  %v4025_v58 = vpop.f32.mrb[30].mxu1  ;;  %6151 = vmatpush3.bf16.msra.mxu0 %v6150_v39  ;;  %v6196_v39 = vpack.c.bf16 %v4195_v30, %v4194_v8  ;;  %v4203_v8 = vld [vmem:[%s7456_s10 + $0x4e8] sm:$0xff]  ;;  %v4234_v30 = vld [vmem:[%s7456_s10 + $0x5e0] sm:$0xff] }
 0xbc2   : >> { %v7242_v25 = vadd.f32 %v3954_v57, %v3430_v38  ;;  %v7244_v63 = vadd.f32 %v4025_v58, %v3438_v44  ;;  %v7246_v21 = vpop.f32.mrb[31].mxu0  ;;  %v7248_v22 = vpop.f32.mrb[31].mxu1  ;;  %6183 = vmatpush3.bf16.msra.mxu1 %v6182_v48  ;;  %6153 = vmatprep.subr.bf16.mxu0 %v6152_v45  ;;  %v6226_v38 = vpack.c.bf16 %v4209_v29, %v4208_v7  ;;  %v4211_v48 = vld [vmem:[%s7456_s10 + $0x528] sm:$0xff]  ;;  %v4196_v45 = vld [vmem:[%s7456_s10 + $0x4b0] sm:$0xff]  ;;  %v4213_v58 = vld [vmem:[%s7456_s10 + $0x538] sm:$0xff] }
 0xbc3   : >> { %6185 = vmatprep.subr.bf16.mxu1 %v6184_v5  ;;  %v6228_v44 = vpack.c.bf16 %v4227_v34, %v4226_v33  ;;  %v6230_v5 = vpack.c.bf16 %v4211_v48, %v4210_v43  ;;  %v6200_v53 = vpack.c.bf16 %v4197_v46, %v4196_v45  ;;  %v6232_v57 = vpack.c.bf16 %v4229_v50, %v4228_v47  ;;  %v4216_v7 = vld [vmem:[%s7456_s10 + $0x550] sm:$0xff]  ;;  %v4202_v29 = vld [vmem:[%s7456_s10 + $0x4e0] sm:$0xff]  ;;  %v4205_v43 = vld [vmem:[%s7456_s10 + $0x4f8] sm:$0xff] }
 0xbc4   : >> { %v6234_v0 = vpack.c.bf16 %v4213_v58, %v4212_v56  ;;  %v6212_v34 = vpack.c.bf16 %v4203_v8, %v4202_v29  ;;  %v4237_v48 = vld [vmem:[%s7456_s10 + $0x5f8] sm:$0xff]  ;;  %v6216_v47 = vpack.c.bf16 %v4205_v43, %v4204_v41  ;;  %v4188_v50 = vld [vmem:[%s7456_s10 + $0x470] sm:$0xff]  ;;  %v4255_v56 = vld [vmem:[%s7456_s10 + $0x688] sm:$0xff] }
 0xbc5   : >> { %6155 = vmatpush3.bf16.msra.mxu0 %v6154_v59  ;;  %v4198_v59 = vld [vmem:[%s7456_s10 + $0x4c0] sm:$0xff] }
 0xbc6   : >> { %6187 = vmatpush3.bf16.msra.mxu1 %v6186_v24  ;;  %6189 = vmatprep.subr.bf16.mxu0 %v6188_v61  ;;  %v4199_v24 = vld [vmem:[%s7456_s10 + $0x4c8] sm:$0xff]  ;;  %v4230_v61 = vld [vmem:[%s7456_s10 + $0x5c0] sm:$0xff] }
 0xbc7   : >> { %6221 = vmatprep.subr.bf16.mxu1 %v6220_v11  ;;  %v6204_v1 = vpack.c.bf16 %v4199_v24, %v4198_v59  ;;  %v4182_v11 = vld [vmem:[%s7456_s10 + $0x440] sm:$0xff]  ;;  %v6236_v10 = vpack.c.bf16 %v4231_v62, %v4230_v61  ;;  %v4287_v59 = vld [vmem:[%s7456_s10 + $0x788] sm:$0xff]  ;;  %v3442_v24 = vrot.slane %v7179_v42, %v3409_v52  ;;  %v4256_v52 = vld [vmem:[%s7456_s10 + $0x690] sm:$0xff] }
 0xbc8   : >> { %4514 = vmatmul.mubr.f32.vlgmr.msra.gmra.mrb[34].mxu0 %v4034_v17  ;;  %v6206_v12 = vpack.c.bf16 %v4183_v3, %v4182_v11  ;;  %v6238_v17 = vpack.c.bf16 %v4215_v35, %v4214_v9  ;;  %v4286_v58 = vld [vmem:[%s7456_s10 + $0x780] sm:$0xff]  ;;  %v4288_v35 = vld [vmem:[%s7456_s10 + $0x790] sm:$0xff] }
 0xbc9   : >> { %4584 = vmatmul.mubr.f32.vlgmr.msra.gmra.mrb[34].mxu1 %v4036_v27  ;;  %6191 = vmatpush3.bf16.msra.mxu0 %v6190_v15  ;;  %v4232_v15 = vld [vmem:[%s7456_s10 + $0x5d0] sm:$0xff]  ;;  %v4270_v11 = vld [vmem:[%s7456_s10 + $0x700] sm:$0xff]  ;;  %v4028_v9 = vadd.f32 %v7248_v22, %v3442_v24 }
 0xbca   : >> { %4653 = vmatprep.mubr.f32.mxu0 %v4039_v31  ;;  %6223 = vmatpush3.bf16.msra.mxu1 %v6222_v18  ;;  %v6208_v18 = vpack.c.bf16 %v4201_v14, %v4200_v13  ;;  %v6240_v27 = vpack.c.bf16 %v4233_v16, %v4232_v15  ;;  %v4235_v31 = vld [vmem:[%s7456_s10 + $0x5e8] sm:$0xff]  ;;  %v4289_v13 = vld [vmem:[%s7456_s10 + $0x798] sm:$0xff]  ;;  %v4038_v14 = vmax.f32 %v7200_v4, 0.0  ;;  %v6286_v15 = vpack.c.bf16 %v4271_v20, %v4270_v11  ;;  %v4240_v16 = vld [vmem:[%s7456_s10 + $0x610] sm:$0xff] }
 0xbcb   : >> { %4723 = vmatprep.mubr.f32.mxu1 %v4041_v23  ;;  %6193 = vmatprep.subr.bf16.mxu0 %v6192_v28  ;;  %v4217_v28 = vld [vmem:[%s7456_s10 + $0x558] sm:$0xff]  ;;  %v4186_v23 = vld [vmem:[%s7456_s10 + $0x460] sm:$0xff]  ;;  %v6288_v4 = vpack.c.bf16 %v4289_v13, %v4288_v35  ;;  %v4045_v29 = vmax.f32 %v4028_v9, 0.0  ;;  %v4280_v9 = vld [vmem:[%s7456_s10 + $0x750] sm:$0xff] }
 0xbcc   : >> { %6225 = vmatprep.subr.bf16.mxu1 %v6224_v32  ;;  %v6210_v32 = vpack.c.bf16 %v4185_v60, %v4184_v19  ;;  %v6242_v33 = vpack.c.bf16 %v4217_v28, %v4216_v7  ;;  %v4258_v19 = vld [vmem:[%s7456_s10 + $0x6a0] sm:$0xff]  ;;  %v4259_v60 = vld [vmem:[%s7456_s10 + $0x6a8] sm:$0xff]  ;;  %v4281_v35 = vld [vmem:[%s7456_s10 + $0x758] sm:$0xff] }
 0xbcd   : >> { %6195 = vmatpush3.bf16.msra.mxu0 %v6194_v37  ;;  %v4187_v37 = vld [vmem:[%s7456_s10 + $0x468] sm:$0xff]  ;;  %v4278_v24 = vld [vmem:[%s7456_s10 + $0x740] sm:$0xff] }
 0xbce   : >> { %6227 = vmatpush3.bf16.msra.mxu1 %v6226_v38  ;;  %6197 = vmatprep.subr.bf16.mxu0 %v6196_v39  ;;  %v4218_v38 = vld [vmem:[%s7456_s10 + $0x560] sm:$0xff]  ;;  %v6244_v39 = vpack.c.bf16 %v4235_v31, %v4234_v30  ;;  %v6214_v45 = vpack.c.bf16 %v4187_v37, %v4186_v23  ;;  %v4291_v28 = vld [vmem:[%s7456_s10 + $0x7a8] sm:$0xff]  ;;  %v6260_v30 = vpack.c.bf16 %v4259_v60, %v4258_v19  ;;  %v4260_v37 = vld [vmem:[%s7456_s10 + $0x6b0] sm:$0xff] }
 0xbcf   : >> { %6229 = vmatprep.subr.bf16.mxu1 %v6228_v44  ;;  %v4236_v44 = vld [vmem:[%s7456_s10 + $0x5f0] sm:$0xff]  ;;  %v6246_v46 = vpack.c.bf16 %v4219_v40, %v4218_v38  ;;  %v4242_v31 = vld [vmem:[%s7456_s10 + $0x620] sm:$0xff]  ;;  %v4275_v23 = vld [vmem:[%s7456_s10 + $0x728] sm:$0xff] }
 0xbd0   : >> { %v4261_v38 = vld [vmem:[%s7456_s10 + $0x6b8] sm:$0xff]  ;;  %v4266_v13 = vld [vmem:[%s7456_s10 + $0x6e0] sm:$0xff] }
 0xbd1   : >> { %6199 = vmatpush3.bf16.msra.mxu0 %v6198_v51  ;;  %v4189_v51 = vld [vmem:[%s7456_s10 + $0x478] sm:$0xff]  ;;  %v4282_v19 = vld [vmem:[%s7456_s10 + $0x760] sm:$0xff] }
 0xbd2   : >> { %6231 = vmatpush3.bf16.msra.mxu1 %v6230_v5  ;;  %6201 = vmatprep.subr.bf16.mxu0 %v6200_v53  ;;  %v4220_v5 = vld [vmem:[%s7456_s10 + $0x570] sm:$0xff]  ;;  %v6248_v53 = vpack.c.bf16 %v4237_v48, %v4236_v44  ;;  %v6218_v61 = vpack.c.bf16 %v4189_v51, %v4188_v50  ;;  %v4293_v40 = vld [vmem:[%s7456_s10 + $0x7b8] sm:$0xff]  ;;  %v6264_v44 = vpack.c.bf16 %v4261_v38, %v4260_v37  ;;  %v4262_v51 = vld [vmem:[%s7456_s10 + $0x6c0] sm:$0xff] }
 0xbd3   : >> { %6233 = vmatprep.subr.bf16.mxu1 %v6232_v57  ;;  %v3434_v57 = vrot.slane %v7179_v42, %v3401_v49  ;;  %v6250_v62 = vpack.c.bf16 %v4221_v54, %v4220_v5  ;;  %v6284_v49 = vpack.c.bf16 %v4287_v59, %v4286_v58  ;;  %v4257_v42 = vld [vmem:[%s7456_s10 + $0x698] sm:$0xff]  ;;  %v4244_v48 = vld [vmem:[%s7456_s10 + $0x630] sm:$0xff]  ;;  %v4263_v5 = vld [vmem:[%s7456_s10 + $0x6c8] sm:$0xff] }
 0xbd4   : >> { %v6256_v22 = vpack.c.bf16 %v4257_v42, %v4256_v52  ;;  %v4277_v50 = vld [vmem:[%s7456_s10 + $0x738] sm:$0xff]  ;;  %v4295_v54 = vld [vmem:[%s7456_s10 + $0x7c8] sm:$0xff]  ;;  %v4246_v58 = vld [vmem:[%s7456_s10 + $0x640] sm:$0xff] }
 0xbd5   : >> { %6203 = vmatpush3.bf16.msra.mxu0 %v6202_v26  ;;  %v6252_v26 = vpack.c.bf16 %v4255_v56, %v4254_v55  ;;  %v3957_v3 = vadd.f32 %v7246_v21, %v3434_v57  ;;  %v4241_v21 = vld [vmem:[%s7456_s10 + $0x618] sm:$0xff]  ;;  %v6268_v57 = vpack.c.bf16 %v4263_v5, %v4262_v51  ;;  %v4247_v59 = vld [vmem:[%s7456_s10 + $0x648] sm:$0xff]  ;;  %v4248_v52 = vld [vmem:[%s7456_s10 + $0x650] sm:$0xff] }
 0xbd6   : >> { %6235 = vmatpush3.bf16.msra.mxu1 %v6234_v0  ;;  %6205 = vmatprep.subr.bf16.mxu0 %v6204_v1  ;;  %v4238_v0 = vld [vmem:[%s7456_s10 + $0x600] sm:$0xff]  ;;  %v4239_v1 = vld [vmem:[%s7456_s10 + $0x608] sm:$0xff]  ;;  %v6270_v11 = vpack.c.bf16 %v4247_v59, %v4246_v58  ;;  %v4249_v42 = vld [vmem:[%s7456_s10 + $0x658] sm:$0xff] }
 0xbd7   : >> { %6237 = vmatprep.subr.bf16.mxu1 %v6236_v10  ;;  %v6254_v10 = vpack.c.bf16 %v4239_v1, %v4238_v0  ;;  %v4043_v7 = vmax.f32 %v3957_v3, 0.0  ;;  %v4265_v0 = vld [vmem:[%s7456_s10 + $0x6d8] sm:$0xff]  ;;  %v4296_v1 = vld [vmem:[%s7456_s10 + $0x7d0] sm:$0xff] }
 0xbd9   : >> { %6207 = vmatpush3.bf16.msra.mxu0 %v6206_v12  ;;  %v4272_v12 = vld [vmem:[%s7456_s10 + $0x710] sm:$0xff] }
 0xbda   : >> { %6239 = vmatpush3.bf16.msra.mxu1 %v6238_v17  ;;  %6209 = vmatprep.subr.bf16.mxu0 %v6208_v18  ;;  %v4040_v17 = vmax.f32 %v7202_v6, 0.0  ;;  %v4273_v18 = vld [vmem:[%s7456_s10 + $0x718] sm:$0xff]  ;;  %v6258_v6 = vpack.c.bf16 %v4241_v21, %v4240_v16  ;;  %v4299_v16 = vld [vmem:[%s7456_s10 + $0x7e8] sm:$0xff]  ;;  %v6274_v21 = vpack.c.bf16 %v4249_v42, %v4248_v52 }
 0xbdb   : >> { %6241 = vmatprep.subr.bf16.mxu1 %v6240_v27  ;;  %v4290_v27 = vld [vmem:[%s7456_s10 + $0x7a0] sm:$0xff]  ;;  %v6290_v8 = vpack.c.bf16 %v4273_v18, %v4272_v12  ;;  %v6306_v12 = vpack.c.bf16 %v4281_v35, %v4280_v9  ;;  %v4251_v18 = vld [vmem:[%s7456_s10 + $0x668] sm:$0xff] }
 0xbdd   : >> { %6211 = vmatpush3.bf16.msra.mxu0 %v6210_v32  ;;  %v4243_v32 = vld [vmem:[%s7456_s10 + $0x628] sm:$0xff] }
 0xbde   : >> { %6243 = vmatpush3.bf16.msra.mxu1 %v6242_v33  ;;  %6213 = vmatprep.subr.bf16.mxu0 %v6212_v34  ;;  %v4274_v33 = vld [vmem:[%s7456_s10 + $0x720] sm:$0xff]  ;;  %v6292_v34 = vpack.c.bf16 %v4291_v28, %v4290_v27  ;;  %v6262_v41 = vpack.c.bf16 %v4243_v32, %v4242_v31  ;;  %v4269_v27 = vld [vmem:[%s7456_s10 + $0x6f8] sm:$0xff]  ;;  %v4300_v28 = vld [vmem:[%s7456_s10 + $0x7f0] sm:$0xff] }
 0xbdf   : >> { %6245 = vmatprep.subr.bf16.mxu1 %v6244_v39  ;;  %v4292_v39 = vld [vmem:[%s7456_s10 + $0x7b0] sm:$0xff]  ;;  %v6294_v43 = vpack.c.bf16 %v4275_v23, %v4274_v33  ;;  %v4253_v32 = vld [vmem:[%s7456_s10 + $0x678] sm:$0xff] }
 0xbe0   : >> { %v4252_v31 = vld [vmem:[%s7456_s10 + $0x670] sm:$0xff]  ;;  %v4285_v23 = vld [vmem:[%s7456_s10 + $0x778] sm:$0xff] }
 0xbe1   : >> { %6215 = vmatpush3.bf16.msra.mxu0 %v6214_v45  ;;  %v4245_v45 = vld [vmem:[%s7456_s10 + $0x638] sm:$0xff]  ;;  %v6282_v37 = vpack.c.bf16 %v4253_v32, %v4252_v31  ;;  %v4990_v31 = vld [vmem:[%s6628_s20 + $0x8] sm:$0xff] (%p1275_p4) }
 0xbe2   : >> { %6247 = vmatpush3.bf16.msra.mxu1 %v6246_v46  ;;  %6217 = vmatprep.subr.bf16.mxu0 %v6216_v47  ;;  %v4276_v46 = vld [vmem:[%s7456_s10 + $0x730] sm:$0xff]  ;;  %v6296_v47 = vpack.c.bf16 %v4293_v40, %v4292_v39  ;;  %v6266_v55 = vpack.c.bf16 %v4245_v45, %v4244_v48  ;;  %v4042_v39 = vmax.f32 %v7242_v25, 0.0  ;;  %v4044_v40 = vmax.f32 %v7244_v63, 0.0 }
 0xbe3   : >> { %6249 = vmatprep.subr.bf16.mxu1 %v6248_v53  ;;  %v4294_v53 = vld [vmem:[%s7456_s10 + $0x7c0] sm:$0xff]  ;;  %v6298_v56 = vpack.c.bf16 %v4277_v50, %v4276_v46 }
 0xbe5   : >> { %6219 = vmatpush3.bf16.msra.mxu0 %v6218_v61  ;;  %v6300_v61 = vpack.c.bf16 %v4295_v54, %v4294_v53 }
 0xbe6   : >> { %6251 = vmatpush3.bf16.msra.mxu1 %v6250_v62  ;;  %6253 = vmatprep.subr.bf16.mxu0 %v6252_v26  ;;  %v4279_v62 = vld [vmem:[%s7456_s10 + $0x748] sm:$0xff]  ;;  %v4264_v26 = vld [vmem:[%s7456_s10 + $0x6d0] sm:$0xff] }
 0xbe7   : >> { %6285 = vmatprep.subr.bf16.mxu1 %v6284_v49  ;;  %v4297_v49 = vld [vmem:[%s7456_s10 + $0x7d8] sm:$0xff]  ;;  %v6302_v20 = vpack.c.bf16 %v4279_v62, %v4278_v24  ;;  %v6272_v3 = vpack.c.bf16 %v4265_v0, %v4264_v26 }
 0xbe8   : >> { %4654 = vmatmul.mubr.f32.vlgmr.msra.gmra.mrb[36].mxu0 %v4038_v14  ;;  %v4267_v14 = vld [vmem:[%s7456_s10 + $0x6e8] sm:$0xff] }
 0xbe9   : >> { %4724 = vmatmul.mubr.f32.vlgmr.msra.gmra.mrb[36].mxu1 %v4040_v17  ;;  %6255 = vmatpush3.bf16.msra.mxu0 %v6254_v10  ;;  %v6304_v10 = vpack.c.bf16 %v4297_v49, %v4296_v1  ;;  %v6276_v17 = vpack.c.bf16 %v4267_v14, %v4266_v13 }
 0xbea   : >> { %4793 = vmatprep.mubr.f32.mxu0 %v4043_v7  ;;  %6287 = vmatpush3.bf16.msra.mxu1 %v6286_v15  ;;  %v4298_v15 = vld [vmem:[%s7456_s10 + $0x7e0] sm:$0xff]  ;;  %v4283_v7 = vld [vmem:[%s7456_s10 + $0x768] sm:$0xff] }
 0xbeb   : >> { %4863 = vmatprep.mubr.f32.mxu1 %v4045_v29  ;;  %6257 = vmatprep.subr.bf16.mxu0 %v6256_v22  ;;  %v4250_v22 = vld [vmem:[%s7456_s10 + $0x660] sm:$0xff]  ;;  %v6308_v60 = vpack.c.bf16 %v4299_v16, %v4298_v15  ;;  %v4301_v29 = vld [vmem:[%s7456_s10 + $0x7f8] sm:$0xff] }
 0xbec   : >> { %6289 = vmatprep.subr.bf16.mxu1 %v6288_v4  ;;  %v4268_v4 = vld [vmem:[%s7456_s10 + $0x6f0] sm:$0xff]  ;;  %v6312_v33 = vpack.c.bf16 %v4301_v29, %v4300_v28 }
 0xbed   : >> { %6259 = vmatpush3.bf16.msra.mxu0 %v6258_v6  ;;  %v6278_v6 = vpack.c.bf16 %v4251_v18, %v4250_v22  ;;  %v5253_v18 = vld [vmem:[%s7460_s11] ss:$0 sm:$0xff] (%p1275_p4)  ;;  %s7462_s11 = scalar_lea.vmem (%p1275_p4), %s6636_s4, %s6655_s0 }
 0xbee   : >> { %6291 = vmatpush3.bf16.msra.mxu1 %v6290_v8  ;;  %6261 = vmatprep.subr.bf16.mxu0 %v6260_v30  ;;  %v6310_v8 = vpack.c.bf16 %v4283_v7, %v4282_v19  ;;  %v6280_v30 = vpack.c.bf16 %v4269_v27, %v4268_v4 }
 0xbef   : >> { %6293 = vmatprep.subr.bf16.mxu1 %v6292_v34  ;;  %v4284_v34 = vld [vmem:[%s7456_s10 + $0x770] sm:$0xff] }
 0xbf0   : >> { %v6314_v38 = vpack.c.bf16 %v4285_v23, %v4284_v34 }
 0xbf1   : >> { %6263 = vmatpush3.bf16.msra.mxu0 %v6262_v41 }
 0xbf2   : >> { %6295 = vmatpush3.bf16.msra.mxu1 %v6294_v43  ;;  %6265 = vmatprep.subr.bf16.mxu0 %v6264_v44  ;;  %v5252_v44 = vld [vmem:[%s7458_s16] ss:$0 sm:$0xff]  ;;  %s7459_s16 = sld [smem:[#allocation17_spill]] (%p1275_p4) }
 0xbf3   : >> { %6297 = vmatprep.subr.bf16.mxu1 %v6296_v47 }
 0xbf5   : >> { %6267 = vmatpush3.bf16.msra.mxu0 %v6266_v55 }
 0xbf6   : >> { %6299 = vmatpush3.bf16.msra.mxu1 %v6298_v56  ;;  %6269 = vmatprep.subr.bf16.mxu0 %v6268_v57 }
 0xbf7   : >> { %6301 = vmatprep.subr.bf16.mxu1 %v6300_v61 }
 0xbf8   : > { %v4872_v13 = vld [vmem:[%s7459_s16] sm:$0xff] (%p1275_p4)  ;;  %v4873_v14 = vld [vmem:[%s7459_s16 + $0x8] sm:$0xff] (%p1275_p4)  ;;  %v4874_v15 = vld [vmem:[%s7459_s16 + $0x10] sm:$0xff] (%p1275_p4) }
 0xbf9   : >> { %6271 = vmatpush3.bf16.msra.mxu0 %v6270_v11  ;;  %v6317_v16 = vpack.c.bf16 (%p1275_p4), %v4873_v14, %v4872_v13 }
 0xbfa   : >> { %6303 = vmatpush3.bf16.msra.mxu1 %v6302_v20  ;;  %6273 = vmatprep.subr.bf16.mxu0 %v6272_v3 }
 0xbfb   : >> { %6305 = vmatprep.subr.bf16.mxu1 %v6304_v10 }
 0xbfd   : >> { %6275 = vmatpush3.bf16.msra.mxu0 %v6274_v21  ;;  %v4875_v21 = vld [vmem:[%s7459_s16 + $0x18] sm:$0xff] (%p1275_p4) }
 0xbfe   : >> { %6307 = vmatpush3.bf16.msra.mxu1 %v6306_v12  ;;  %6277 = vmatprep.subr.bf16.mxu0 %v6276_v17  ;;  %v6320_v12 = vpack.c.bf16 (%p1275_p4), %v4875_v21, %v4874_v15  ;;  %v4876_v17 = vld [vmem:[%s7459_s16 + $0x20] sm:$0xff] (%p1275_p4) }
 0xbff   : >> { %6309 = vmatprep.subr.bf16.mxu1 %v6308_v60 }
 0xc01   : >> { %6279 = vmatpush3.bf16.msra.mxu0 %v6278_v6 }
 0xc02   : >> { %6311 = vmatpush3.bf16.msra.mxu1 %v6310_v8  ;;  %6281 = vmatprep.subr.bf16.mxu0 %v6280_v30  ;;  %v4989_v30 = vld [vmem:[%s6628_s20] sm:$0xff] (%p1275_p4) }
 0xc03   : >> { %6313 = vmatprep.subr.bf16.mxu1 %v6312_v33  ;;  %v6323_v32 = vpack.c.bf16 (%p1275_p4), %v4990_v31, %v4989_v30 }
 0xc05   : >> { %6283 = vmatpush3.bf16.msra.mxu0 %v6282_v37 }
 0xc06   : >> { %6315 = vmatpush3.bf16.msra.mxu1 %v6314_v38  ;;  %v5255_v38 = vld [vmem:[%s7461_s18] ss:$0 sm:$0xff] (%p1275_p4) }
 0xc08   : >> { %4794 = vmatmul.mubr.f32.vlgmr.msra.gmra.mrb[38].mxu0 %v4042_v39 }
 0xc09   : >> { %4864 = vmatmul.mubr.f32.vlgmr.msra.gmra.mrb[38].mxu1 %v4044_v40  ;;  %5898 = vmatprep.mubr.msk.f32.mxu0 (%p1275_p4), %vm6458_vm1, %v6457_v2  ;;  %v5256_v40 = vld [vmem:[%s6623_s12] ss:$0 sm:$0xff] (%p1275_p4) }
 0xc0a   : > { %5905 = vmatprep.mubr.msk.f32.mxu1 (%p1275_p4), %vm6458_vm1, %v6457_v2 }
 0xc7b   : >> { %v5397_v41 = vpop.f32.mrb[32].mxu0  ;;  %v5432_v43 = vpop.f32.mrb[32].mxu1 }
 0xc7c   : >> { %v5398_v48 = vpop.f32.mrb[33].mxu0  ;;  %v5433_v45 = vpop.f32.mrb[33].mxu1 }
 0xc7d   : >> { %v5399_v46 = vadd.f32 %v5398_v48, %v5397_v41  ;;  %v5434_v47 = vadd.f32 %v5433_v45, %v5432_v43 }
 0xc7f   : >> { %v4376_v50 = vadd.f32 %v5399_v46, %v5252_v44  ;;  %v5257_v44 = vld [vmem:[#allocation3] ss:$0 sm:$0xff] (%p1275_p4) }
 0xc81   : >> { %v4446_v51 = vadd.f32 %v5434_v47, %v4376_v50 }
 0xc9b   : >> { %v5467_v5 = vpop.f32.mrb[34].mxu0 }
 0xc9c   : >> { %v5502_v53 = vpop.f32.mrb[34].mxu1  ;;  %v5468_v54 = vpop.f32.mrb[35].mxu0 }
 0xc9d   : >> { %v5469_v55 = vadd.f32 %v5468_v54, %v5467_v5  ;;  %v5503_v56 = vpop.f32.mrb[35].mxu1 }
 0xc9e   : >> { %v5504_v25 = vadd.f32 %v5503_v56, %v5502_v53 }
 0xc9f   : >> { %v4516_v57 = vadd.f32 %v5469_v55, %v4446_v51 }
 0xca1   : >> { %v4586_v58 = vadd.f32 %v5504_v25, %v4516_v57 }
 0xcbb   : >> { %v5537_v63 = vpop.f32.mrb[36].mxu0 }
 0xcbc   : >> { %v5572_v59 = vpop.f32.mrb[36].mxu1  ;;  %v5538_v24 = vpop.f32.mrb[37].mxu0 }
 0xcbd   : >> { %v5539_v61 = vadd.f32 %v5538_v24, %v5537_v63  ;;  %v5573_v62 = vpop.f32.mrb[37].mxu1 }
 0xcbe   : >> { %v5574_v26 = vadd.f32 %v5573_v62, %v5572_v59 }
 0xcbf   : >> { %v4656_v0 = vadd.f32 %v5539_v61, %v4586_v58 }
 0xcc1   : >> { %v4726_v1 = vadd.f32 %v5574_v26, %v4656_v0 }
 0xcdb   : >> { %v5607_v49 = vpop.f32.mrb[38].mxu0 }
 0xcdc   : >> { %v5642_v11 = vpop.f32.mrb[38].mxu1  ;;  %v5608_v20 = vpop.f32.mrb[39].mxu0 }
 0xcdd   : >> { %v5609_v3 = vadd.f32 %v5608_v20, %v5607_v49  ;;  %v5643_v52 = vpop.f32.mrb[39].mxu1 }
 0xcde   : >> { %v5644_v42 = vadd.f32 %v5643_v52, %v5642_v11 }
 0xcdf   : >> { %v4796_v9 = vadd.f32 %v5609_v3, %v4726_v1  ;;  %1277 = sbr.rel (!%p1275_p4) target bundleno = 925 (0x39d), region = 225 }
 0xce1   : >> { %v4866_v10 = vadd.f32 %v5644_v42, %v4796_v9 }
 0xce3   : >> { %v4869_v35 = vadd.f32 %v4866_v10, %v6935_v36  ;;  %v6464_v36 = vmov (%p1275_p4), 0.0|0.0  }
 0xce4   : > { %6316 = vmatprep.subr.bf16.mxu0 (%p1275_p4), %v6464_v36  ;;  %6322 = vmatprep.subr.bf16.mxu1 (%p1275_p4), %v6464_v36 }
 0xce5   : >> { %4870 = vst.msk [vmem:[#allocation2] sm:$0xff] %vm1243_vm6, %v4869_v35  ;;  %6318 = vmatpush3.bf16.msra.mxu0 (%p1275_p4), %v6317_v16  ;;  %6324 = vmatpush3.bf16.msra.mxu1 (%p1275_p4), %v6323_v32 }
 0xce6   : > { %6319 = vmatprep.subr.bf16.mxu0 %v6464_v36 }
 0xce9   : > { %6321 = vmatpush3.bf16.msra.mxu0 %v6320_v12 }
 0xcea   : > { %5896 = vmatprep.subr.mxu0 %v6457_v2 }
 0xcec   : > { %v4871_v22 = vld [vmem:[#allocation2 + $0x3] sm:$0x1f] }
 0xced   : > { %5897 = vmatpush3.msra.mxu0 %v4876_v17 }
 0xcee   : > { %5899 = vmatmul.mubr.msk.f32.vlgmr.msra.gmra.mrb[0].mxu0 %vm1243_vm6, %v4871_v22 }
 0xdc1   : > { %v4953_v19 = vpop.f32.mrb[0].mxu0 }
 0xdc2   : > { %v4954_v60 = vadd.f32 %v5253_v18, %v4953_v19  ;;  %v5900_v7 = vpop.f32.mrb[1].mxu0 }
 0xdc4   : > { %v4957_v4 = vmax.f32 %v4954_v60, 0.0 }
 0xdc6   : > { %v4961_v27 = vsel %vm4960_vm12, %v4957_v4, 0.0 }
 0xdc7   : > { %4962 = vadd.xlane.f32.xlu0 %v4961_v27 }
 0xe54   : > { %v4963_v28 = vpop.xlane.xlu0 %4962 }
 0xe55   : > { %v4965_v29 = vmul.f32 0.0625, %v4963_v28 }
 0xe57   : > { %v4966_v2 = vsub.f32 %v4957_v4, %v4965_v29 }
 0xe59   : > { %v4967_v6 = vmul.f32 %v4966_v2, %v4966_v2 }
 0xe5b   : > { %v4968_v8 = vsel %vm4960_vm12, %v4967_v6, 0.0 }
 0xe5c   : > { %4969 = vadd.xlane.f32.xlu0 %v4968_v8 }
 0xee9   : > { %v4970_v33 = vpop.xlane.xlu0 %4969 }
 0xeea   : > { %v4971_v34 = vmul.f32 0.0625, %v4970_v33 }
 0xeec   : > { %v4972_v23 = vadd.f32 1e-05, %v4971_v34 }
 0xeee   : > { %6406 = vrsqrt.f32 %v4972_v23 }
 0xef8   : > { %v6407_v37 = vpop.eup %6406 }
 0xef9   : > { %v4974_v39 = vmul.f32 %v6407_v37, %v4966_v2 }
 0xefb   : > { %v4981_v41 = vmul.f32 %v5255_v38, %v4974_v39 }
 0xefd   : > { %v4988_v43 = vadd.f32 %v5256_v40, %v4981_v41 }
 0xeff   : > { %5906 = vmatmul.mubr.msk.f32.vlgmr.msra.gmra.mrb[0].mxu1 %vm4998_vm13, %v4988_v43 }
 0xfd2   : > { %v5068_v48 = vpop.f32.mrb[0].mxu1 }
 0xfd3   : > { %v5069_v45 = vadd.f32 %v5257_v44, %v5068_v48  ;;  %v5907_v46 = vpop.f32.mrb[1].mxu1 }
 0xfd5   : > { %5073 = vst.msk [vmem:[%s7462_s11] sm:$0x1f] %vm5072_vm14, %v5069_v45 }
 0xfd6 PF: > { %s79_s7 = sadd.s32 1, %s6418_s7  }
 0xfd7   : > { %p76_p5 = scmp.ge.s32.totalorder %s79_s7, 4  }
 0xfd9   :  { %78 = sbr.rel (!%p76_p5) target bundleno = 65 (0x41), region = 236 }

</bundles_post_ra>
